<compile_context>
chip_gen: v7x
topology: tpu7x:2x2x1
jax: 0.10.0
libtpu: 0.0.40
codegen_flags: <defaults>
</compile_context>

<pallas_src>
import math

import jax
import jax.numpy as jnp
from jax import lax
from jax.experimental import pallas as pl
from jax.experimental.pallas import tpu as pltpu

EPS = 1e-5                     # nn.BatchNorm2d default
_HIGHEST = lax.Precision.HIGHEST


# ----------------------------- wrapper-side helpers -------------------------

def _lane_channel(N, C, W):
    lane = jnp.arange(N * C * W)
    return (lane // W) % C


def _per_lane(p, N, C, W):
    """Splat a per-channel (C,) parameter to a (1, N*C*W) per-lane row."""
    return p[_lane_channel(N, C, W)].reshape(1, -1).astype(jnp.float32)


def _pack_params(g1, b1, cb1, g2, b2, cb2, N, C, W):
    """Pack six per-lane parameter rows into one dense (8, NCW) tile."""
    rows = [_per_lane(p, N, C, W) for p in (g1, b1, cb1, g2, b2, cb2)]
    rows.append(jnp.zeros((2, N * C * W), jnp.float32))       # pad to 8 rows
    return jnp.concatenate(rows, axis=0)


def _channel_avg_matrix(N, C, H, W):
    """(NCW, NCW) block-averaging matrix A.

    For column sums s (1, NCW):  (s @ A)[l] = per-channel mean of the tensor,
    splat over every lane of that channel.  A[l_in, l_out] = 1/(N*H*W) iff the
    two lanes carry the same channel.
    """
    c = _lane_channel(N, C, W)
    same_c = (c[:, None] == c[None, :]).astype(jnp.float32)
    return same_c / float(N * H * W)


def _conv_mix_matrices(wt, N, C, W):
    """(3, NCW, NCW) lane-mixing matrices M_ky for a 3x3 same-padded conv.

    On the packed (H, NCW) layout (lane l = (n, c, w)), the conv is
        out = sum_ky  zpad[ky:ky+H, :] @ M_ky
    with M_ky[l_in, l_out] = wt[co(l_out), ci(l_in), ky, kx],
    kx = w(l_in) - w(l_out) + 1, nonzero only when both lanes belong to the
    same batch sample and |w(l_in) - w(l_out)| <= 1.  W-boundary zero padding
    and batch separation are baked into the matrix zeros; the H boundary is
    handled by the zeroed halo rows of the zpad scratch.
    """
    NCW = N * C * W
    lane = jnp.arange(NCW)
    n_l = lane // (C * W)
    c_l = (lane // W) % C
    w_l = lane % W
    same_n = n_l[:, None] == n_l[None, :]            # [l_in, l_out]
    dw = w_l[:, None] - w_l[None, :]                 # w_in - w_out
    valid = same_n & (jnp.abs(dw) <= 1)
    kx = jnp.clip(dw + 1, 0, 2)
    co = c_l[None, :]                                # output channel (l_out)
    ci = c_l[:, None]                                # input channel (l_in)
    mats = []
    for ky in range(3):
        wt_ky = wt[:, :, ky, :]                      # (C_out, C_in, 3)
        vals = wt_ky[co, ci, kx]                     # (NCW, NCW)
        mats.append(jnp.where(valid, vals, 0.0))
    return jnp.stack(mats).astype(jnp.float32)


# --------------------------------- forward ----------------------------------

def res_unit_forward(x, g1, b1, w1, cb1, g2, b2, w2, cb2):
    """x: (N, C, H, W) f32; conv weights: (C, C, 3, 3); BN params / biases: (C,)."""
    N, C, H, W = x.shape
    NCW = N * C * W

    def kernel(x_ref, avg_ref, params_ref, mats_ref, out_ref, zpad_ref):
        x_val = x_ref[...]                           # (H, NCW) f32
        params = params_ref[...]                     # (8, NCW)
        g1_row, b1_row, cb1_row = params[0:1], params[1:2], params[2:3]
        g2_row, b2_row, cb2_row = params[3:4], params[4:5], params[5:6]
        avg = avg_ref[...]                           # (NCW, NCW)

        def bn_relu(t, g_row, b_row):
            # Training-mode BN (batch stats, biased variance) + ReLU.
            # Per-channel mean / mean-of-squares via one MXU matmul instead of
            # a serial per-channel cross-lane reduction loop.
            col_s = jnp.sum(t, axis=0, keepdims=True)        # (1, NCW)
            col_ss = jnp.sum(t * t, axis=0, keepdims=True)   # (1, NCW)
            stats = jnp.dot(jnp.concatenate([col_s, col_ss], axis=0), avg,
                            preferred_element_type=jnp.float32,
                            precision=_HIGHEST)              # (2, NCW)
            mean_row = stats[0:1]
            # TODO(synk): single-pass variance (E[x^2]-E[x]^2); fine for BN-scale
            # data, switch to two-pass if inputs ever have |mean| >> std.
            var_row = stats[1:2] - mean_row * mean_row
            inv_row = lax.rsqrt(var_row + EPS)               # EUP
            return jnp.maximum((t - mean_row) * (g_row * inv_row) + b_row, 0.0)

        def conv3x3(base, cb_row):
            # 3x3 "same" conv = 3 lane-mixing matmuls (one per ky) on the MXU.
            acc = cb_row                                      # (1, NCW) broadcast
            for ky in range(3):
                acc = acc + jnp.dot(zpad_ref[ky:ky + H, :],
                                    mats_ref[base + ky],
                                    preferred_element_type=jnp.float32,
                                    precision=_HIGHEST)
            return acc

        # Zero only the 1-row H halos; interior rows are overwritten per stage.
        zero_row = jnp.zeros((1, NCW), jnp.float32)
        zpad_ref[0:1, :] = zero_row
        zpad_ref[H + 1:H + 2, :] = zero_row

        # relu(bn1(x)) -> padded scratch; conv1 output stays in registers.
        zpad_ref[1:H + 1, :] = bn_relu(x_val, g1_row, b1_row)
        y = conv3x3(0, cb1_row)

        # Fused BN2 + ReLU straight from registers into the reused scratch.
        zpad_ref[1:H + 1, :] = bn_relu(y, g2_row, b2_row)

        # conv2 + residual, lane-dense writeback.
        out_ref[...] = conv3x3(3, cb2_row) + x_val

    # ---- wrapper-side layout plumbing (packing + matrix prebuild) ----
    xp = jnp.transpose(x, (2, 0, 1, 3)).reshape(H, NCW).astype(jnp.float32)
    conv_mats = jnp.concatenate(
        [_conv_mix_matrices(w1, N, C, W), _conv_mix_matrices(w2, N, C, W)],
        axis=0)                                              # (6, NCW, NCW)
    args = (xp,
            _channel_avg_matrix(N, C, H, W),
            _pack_params(g1, b1, cb1, g2, b2, cb2, N, C, W),
            conv_mats)

    vmem = pl.BlockSpec(memory_space=pltpu.MemorySpace.VMEM)
    out_packed = pl.pallas_call(
        kernel,
        out_shape=jax.ShapeDtypeStruct((H, NCW), jnp.float32),
        in_specs=[vmem] * len(args),
        out_specs=vmem,
        scratch_shapes=[pltpu.VMEM((H + 2, NCW), jnp.float32)],
    )(*args)

    return jnp.transpose(out_packed.reshape(H, N, C, W), (1, 2, 0, 3))


# --------------------------------- reference --------------------------------

def ref_forward(x, g1, b1, w1, cb1, g2, b2, w2, cb2):
    """Pure-JAX reference (training-mode BN, same-padded 3x3 convs)."""
    def bn(t, g, b):
        m = t.mean(axis=(0, 2, 3), keepdims=True)
        v = ((t - m) ** 2).mean(axis=(0, 2, 3), keepdims=True)
        return (t - m) / jnp.sqrt(v + EPS) * g.reshape(1, -1, 1, 1) + b.reshape(1, -1, 1, 1)

    def conv(t, w, cb):
        y = lax.conv_general_dilated(t, w, (1, 1), 'SAME',
                                     dimension_numbers=('NCHW', 'OIHW', 'NCHW'))
        return y + cb.reshape(1, -1, 1, 1)

    z = jax.nn.relu(bn(x, g1, b1))
    z = conv(z, w1, cb1)
    z = jax.nn.relu(bn(z, g2, b2))
    z = conv(z, w2, cb2)
    return z + x


if __name__ == "__main__":
    N, C, H, W = 2, 4, 16, 16  # residual add requires in_channels == out_channels
    key = jax.random.PRNGKey(0)
    ks = jax.random.split(key, 9)
    fan = 1.0 / math.sqrt(C * 3 * 3)

    x = jax.random.normal(ks[0], (N, C, H, W), jnp.float32)
    g1 = 1.0 + 0.1 * jax.random.normal(ks[1], (C,), jnp.float32)
    b1 = 0.1 * jax.random.normal(ks[2], (C,), jnp.float32)
    w1 = fan * jax.random.normal(ks[3], (C, C, 3, 3), jnp.float32)
    cb1 = 0.1 * jax.random.normal(ks[4], (C,), jnp.float32)
    g2 = 1.0 + 0.1 * jax.random.normal(ks[5], (C,), jnp.float32)
    b2 = 0.1 * jax.random.normal(ks[6], (C,), jnp.float32)
    w2 = fan * jax.random.normal(ks[7], (C, C, 3, 3), jnp.float32)
    cb2 = 0.1 * jax.random.normal(ks[8], (C,), jnp.float32)

    out = res_unit_forward(x, g1, b1, w1, cb1, g2, b2, w2, cb2)
    out = jax.block_until_ready(out)

    expected = ref_forward(x, g1, b1, w1, cb1, g2, b2, w2, cb2)
    if not jnp.allclose(out, expected, atol=1e-4, rtol=1e-4):
        raise AssertionError("Pallas ResUnit output does not match JAX reference")

    print("KERNEL_OK")
</pallas_src>

<mosaic_0001>
module attributes {stable_mosaic.version = 11 : i64} {
  func.func @kernel(%arg0: memref<16x128xf32, #tpu.memory_space<vmem>>, %arg1: memref<128x128xf32, #tpu.memory_space<vmem>>, %arg2: memref<8x128xf32, #tpu.memory_space<vmem>>, %arg3: memref<6x128x128xf32, #tpu.memory_space<vmem>>, %arg4: memref<16x128xf32, #tpu.memory_space<vmem>>, %arg5: memref<18x128xf32, #tpu.memory_space<vmem>>) attributes {dimension_semantics = [], scalar_prefetch = 0 : i64, scratch_operands = 1 : i64, tpu.core_type = #tpu.core_type<tc>} {
    %c0 = arith.constant 0 : index
    %c0_0 = arith.constant 0 : index
    %0 = vector.load %arg0[%c0, %c0_0] : memref<16x128xf32, #tpu.memory_space<vmem>>, vector<16x128xf32>
    %c0_1 = arith.constant 0 : index
    %c0_2 = arith.constant 0 : index
    %1 = vector.load %arg2[%c0_1, %c0_2] : memref<8x128xf32, #tpu.memory_space<vmem>>, vector<8x128xf32>
    %2 = vector.extract_strided_slice %1 {offsets = [0, 0], sizes = [1, 128], strides = [1, 1]} : vector<8x128xf32> to vector<1x128xf32>
    %3 = vector.extract_strided_slice %1 {offsets = [1, 0], sizes = [1, 128], strides = [1, 1]} : vector<8x128xf32> to vector<1x128xf32>
    %4 = vector.extract_strided_slice %1 {offsets = [2, 0], sizes = [1, 128], strides = [1, 1]} : vector<8x128xf32> to vector<1x128xf32>
    %5 = vector.extract_strided_slice %1 {offsets = [3, 0], sizes = [1, 128], strides = [1, 1]} : vector<8x128xf32> to vector<1x128xf32>
    %6 = vector.extract_strided_slice %1 {offsets = [4, 0], sizes = [1, 128], strides = [1, 1]} : vector<8x128xf32> to vector<1x128xf32>
    %7 = vector.extract_strided_slice %1 {offsets = [5, 0], sizes = [1, 128], strides = [1, 1]} : vector<8x128xf32> to vector<1x128xf32>
    %c0_3 = arith.constant 0 : index
    %c0_4 = arith.constant 0 : index
    %8 = vector.load %arg1[%c0_3, %c0_4] : memref<128x128xf32, #tpu.memory_space<vmem>>, vector<128x128xf32>
    %cst = arith.constant 0.000000e+00 : f32
    %9 = vector.broadcast %cst : f32 to vector<1x128xf32>
    %c0_5 = arith.constant 0 : index
    %c0_6 = arith.constant 0 : index
    %10 = vector.load %arg5[%c0_5, %c0_6] : memref<18x128xf32, #tpu.memory_space<vmem>>, vector<1x128xf32>
    tpu.vector_store %arg5[%c0_5, %c0_6], %9 {strides = array<i32>} : memref<18x128xf32, #tpu.memory_space<vmem>>, vector<1x128xf32>,
    %c17 = arith.constant 17 : index
    %c0_7 = arith.constant 0 : index
    %11 = vector.load %arg5[%c17, %c0_7] : memref<18x128xf32, #tpu.memory_space<vmem>>, vector<1x128xf32>
    tpu.vector_store %arg5[%c17, %c0_7], %9 {strides = array<i32>} : memref<18x128xf32, #tpu.memory_space<vmem>>, vector<1x128xf32>,
    %cst_8 = arith.constant dense<0.000000e+00> : vector<128xf32>
    %12 = vector.multi_reduction <add>, %0, %cst_8 [0] : vector<16x128xf32> to vector<128xf32>
    %13 = vector.shape_cast %12 : vector<128xf32> to vector<1x128xf32>
    %14 = arith.mulf %0, %0 : vector<16x128xf32>
    %cst_9 = arith.constant dense<0.000000e+00> : vector<128xf32>
    %15 = vector.multi_reduction <add>, %14, %cst_9 [0] : vector<16x128xf32> to vector<128xf32>
    %16 = vector.shape_cast %15 : vector<128xf32> to vector<1x128xf32>
    %17 = tpu.concatenate %13, %16 in 0 : vector<1x128xf32>, vector<1x128xf32> -> vector<2x128xf32>
    %cst_10 = arith.constant dense<0.000000e+00> : vector<2x128xf32>
    %18 = tpu.matmul %17, %8, %cst_10 {dimension_numbers = #tpu.dot_dimension_numbers<[1], [0], [0], [1], [0, 0, 1, 1], [], []>, precision = #tpu.contract_precision<fp32>} : vector<2x128xf32>, vector<128x128xf32>, vector<2x128xf32> -> vector<2x128xf32>
    %19 = vector.extract_strided_slice %18 {offsets = [0, 0], sizes = [1, 128], strides = [1, 1]} : vector<2x128xf32> to vector<1x128xf32>
    %20 = vector.extract_strided_slice %18 {offsets = [1, 0], sizes = [1, 128], strides = [1, 1]} : vector<2x128xf32> to vector<1x128xf32>
    %21 = arith.mulf %19, %19 : vector<1x128xf32>
    %22 = arith.subf %20, %21 : vector<1x128xf32>
    %cst_11 = arith.constant 9.99999974E-6 : f32
    %23 = vector.broadcast %cst_11 : f32 to vector<1x128xf32>
    %24 = arith.addf %22, %23 : vector<1x128xf32>
    %25 = math.rsqrt %24 : vector<1x128xf32>
    %26 = vector.broadcast %19 : vector<1x128xf32> to vector<16x128xf32>
    %27 = arith.subf %0, %26 : vector<16x128xf32>
    %28 = arith.mulf %2, %25 : vector<1x128xf32>
    %29 = vector.broadcast %28 : vector<1x128xf32> to vector<16x128xf32>
    %30 = arith.mulf %27, %29 : vector<16x128xf32>
    %31 = vector.broadcast %3 : vector<1x128xf32> to vector<16x128xf32>
    %32 = arith.addf %30, %31 : vector<16x128xf32>
    %cst_12 = arith.constant 0.000000e+00 : f32
    %33 = vector.broadcast %cst_12 : f32 to vector<16x128xf32>
    %34 = arith.maximumf %32, %33 : vector<16x128xf32>
    %c1 = arith.constant 1 : index
    %c0_13 = arith.constant 0 : index
    %35 = vector.load %arg5[%c1, %c0_13] : memref<18x128xf32, #tpu.memory_space<vmem>>, vector<16x128xf32>
    tpu.vector_store %arg5[%c1, %c0_13], %34 {strides = array<i32>} : memref<18x128xf32, #tpu.memory_space<vmem>>, vector<16x128xf32>,
    %c0_14 = arith.constant 0 : index
    %c0_15 = arith.constant 0 : index
    %36 = vector.load %arg5[%c0_14, %c0_15] : memref<18x128xf32, #tpu.memory_space<vmem>>, vector<16x128xf32>
    %c0_16 = arith.constant 0 : index
    %c0_17 = arith.constant 0 : index
    %c0_18 = arith.constant 0 : index
    %37 = vector.load %arg3[%c0_16, %c0_17, %c0_18] : memref<6x128x128xf32, #tpu.memory_space<vmem>>, vector<1x128x128xf32>
    %38 = vector.shape_cast %37 : vector<1x128x128xf32> to vector<128x128xf32>
    %cst_19 = arith.constant dense<0.000000e+00> : vector<16x128xf32>
    %39 = tpu.matmul %36, %38, %cst_19 {dimension_numbers = #tpu.dot_dimension_numbers<[1], [0], [0], [1], [0, 0, 1, 1], [], []>, precision = #tpu.contract_precision<fp32>} : vector<16x128xf32>, vector<128x128xf32>, vector<16x128xf32> -> vector<16x128xf32>
    %40 = vector.broadcast %4 : vector<1x128xf32> to vector<16x128xf32>
    %41 = arith.addf %40, %39 : vector<16x128xf32>
    %c1_20 = arith.constant 1 : index
    %c0_21 = arith.constant 0 : index
    %42 = vector.load %arg5[%c1_20, %c0_21] : memref<18x128xf32, #tpu.memory_space<vmem>>, vector<16x128xf32>
    %c1_22 = arith.constant 1 : index
    %c0_23 = arith.constant 0 : index
    %c0_24 = arith.constant 0 : index
    %43 = vector.load %arg3[%c1_22, %c0_23, %c0_24] : memref<6x128x128xf32, #tpu.memory_space<vmem>>, vector<1x128x128xf32>
    %44 = vector.shape_cast %43 : vector<1x128x128xf32> to vector<128x128xf32>
    %cst_25 = arith.constant dense<0.000000e+00> : vector<16x128xf32>
    %45 = tpu.matmul %42, %44, %cst_25 {dimension_numbers = #tpu.dot_dimension_numbers<[1], [0], [0], [1], [0, 0, 1, 1], [], []>, precision = #tpu.contract_precision<fp32>} : vector<16x128xf32>, vector<128x128xf32>, vector<16x128xf32> -> vector<16x128xf32>
    %46 = arith.addf %41, %45 : vector<16x128xf32>
    %c2 = arith.constant 2 : index
    %c0_26 = arith.constant 0 : index
    %47 = vector.load %arg5[%c2, %c0_26] : memref<18x128xf32, #tpu.memory_space<vmem>>, vector<16x128xf32>
    %c2_27 = arith.constant 2 : index
    %c0_28 = arith.constant 0 : index
    %c0_29 = arith.constant 0 : index
    %48 = vector.load %arg3[%c2_27, %c0_28, %c0_29] : memref<6x128x128xf32, #tpu.memory_space<vmem>>, vector<1x128x128xf32>
    %49 = vector.shape_cast %48 : vector<1x128x128xf32> to vector<128x128xf32>
    %cst_30 = arith.constant dense<0.000000e+00> : vector<16x128xf32>
    %50 = tpu.matmul %47, %49, %cst_30 {dimension_numbers = #tpu.dot_dimension_numbers<[1], [0], [0], [1], [0, 0, 1, 1], [], []>, precision = #tpu.contract_precision<fp32>} : vector<16x128xf32>, vector<128x128xf32>, vector<16x128xf32> -> vector<16x128xf32>
    %51 = arith.addf %46, %50 : vector<16x128xf32>
    %cst_31 = arith.constant dense<0.000000e+00> : vector<128xf32>
    %52 = vector.multi_reduction <add>, %51, %cst_31 [0] : vector<16x128xf32> to vector<128xf32>
    %53 = vector.shape_cast %52 : vector<128xf32> to vector<1x128xf32>
    %54 = arith.mulf %51, %51 : vector<16x128xf32>
    %cst_32 = arith.constant dense<0.000000e+00> : vector<128xf32>
    %55 = vector.multi_reduction <add>, %54, %cst_32 [0] : vector<16x128xf32> to vector<128xf32>
    %56 = vector.shape_cast %55 : vector<128xf32> to vector<1x128xf32>
    %57 = tpu.concatenate %53, %56 in 0 : vector<1x128xf32>, vector<1x128xf32> -> vector<2x128xf32>
    %cst_33 = arith.constant dense<0.000000e+00> : vector<2x128xf32>
    %58 = tpu.matmul %57, %8, %cst_33 {dimension_numbers = #tpu.dot_dimension_numbers<[1], [0], [0], [1], [0, 0, 1, 1], [], []>, precision = #tpu.contract_precision<fp32>} : vector<2x128xf32>, vector<128x128xf32>, vector<2x128xf32> -> vector<2x128xf32>
    %59 = vector.extract_strided_slice %58 {offsets = [0, 0], sizes = [1, 128], strides = [1, 1]} : vector<2x128xf32> to vector<1x128xf32>
    %60 = vector.extract_strided_slice %58 {offsets = [1, 0], sizes = [1, 128], strides = [1, 1]} : vector<2x128xf32> to vector<1x128xf32>
    %61 = arith.mulf %59, %59 : vector<1x128xf32>
    %62 = arith.subf %60, %61 : vector<1x128xf32>
    %cst_34 = arith.constant 9.99999974E-6 : f32
    %63 = vector.broadcast %cst_34 : f32 to vector<1x128xf32>
    %64 = arith.addf %62, %63 : vector<1x128xf32>
    %65 = math.rsqrt %64 : vector<1x128xf32>
    %66 = vector.broadcast %59 : vector<1x128xf32> to vector<16x128xf32>
    %67 = arith.subf %51, %66 : vector<16x128xf32>
    %68 = arith.mulf %5, %65 : vector<1x128xf32>
    %69 = vector.broadcast %68 : vector<1x128xf32> to vector<16x128xf32>
    %70 = arith.mulf %67, %69 : vector<16x128xf32>
    %71 = vector.broadcast %6 : vector<1x128xf32> to vector<16x128xf32>
    %72 = arith.addf %70, %71 : vector<16x128xf32>
    %cst_35 = arith.constant 0.000000e+00 : f32
    %73 = vector.broadcast %cst_35 : f32 to vector<16x128xf32>
    %74 = arith.maximumf %72, %73 : vector<16x128xf32>
    %c1_36 = arith.constant 1 : index
    %c0_37 = arith.constant 0 : index
    %75 = vector.load %arg5[%c1_36, %c0_37] : memref<18x128xf32, #tpu.memory_space<vmem>>, vector<16x128xf32>
    tpu.vector_store %arg5[%c1_36, %c0_37], %74 {strides = array<i32>} : memref<18x128xf32, #tpu.memory_space<vmem>>, vector<16x128xf32>,
    %c0_38 = arith.constant 0 : index
    %c0_39 = arith.constant 0 : index
    %76 = vector.load %arg5[%c0_38, %c0_39] : memref<18x128xf32, #tpu.memory_space<vmem>>, vector<16x128xf32>
    %c3 = arith.constant 3 : index
    %c0_40 = arith.constant 0 : index
    %c0_41 = arith.constant 0 : index
    %77 = vector.load %arg3[%c3, %c0_40, %c0_41] : memref<6x128x128xf32, #tpu.memory_space<vmem>>, vector<1x128x128xf32>
    %78 = vector.shape_cast %77 : vector<1x128x128xf32> to vector<128x128xf32>
    %cst_42 = arith.constant dense<0.000000e+00> : vector<16x128xf32>
    %79 = tpu.matmul %76, %78, %cst_42 {dimension_numbers = #tpu.dot_dimension_numbers<[1], [0], [0], [1], [0, 0, 1, 1], [], []>, precision = #tpu.contract_precision<fp32>} : vector<16x128xf32>, vector<128x128xf32>, vector<16x128xf32> -> vector<16x128xf32>
    %80 = vector.broadcast %7 : vector<1x128xf32> to vector<16x128xf32>
    %81 = arith.addf %80, %79 : vector<16x128xf32>
    %c1_43 = arith.constant 1 : index
    %c0_44 = arith.constant 0 : index
    %82 = vector.load %arg5[%c1_43, %c0_44] : memref<18x128xf32, #tpu.memory_space<vmem>>, vector<16x128xf32>
    %c4 = arith.constant 4 : index
    %c0_45 = arith.constant 0 : index
    %c0_46 = arith.constant 0 : index
    %83 = vector.load %arg3[%c4, %c0_45, %c0_46] : memref<6x128x128xf32, #tpu.memory_space<vmem>>, vector<1x128x128xf32>
    %84 = vector.shape_cast %83 : vector<1x128x128xf32> to vector<128x128xf32>
    %cst_47 = arith.constant dense<0.000000e+00> : vector<16x128xf32>
    %85 = tpu.matmul %82, %84, %cst_47 {dimension_numbers = #tpu.dot_dimension_numbers<[1], [0], [0], [1], [0, 0, 1, 1], [], []>, precision = #tpu.contract_precision<fp32>} : vector<16x128xf32>, vector<128x128xf32>, vector<16x128xf32> -> vector<16x128xf32>
    %86 = arith.addf %81, %85 : vector<16x128xf32>
    %c2_48 = arith.constant 2 : index
    %c0_49 = arith.constant 0 : index
    %87 = vector.load %arg5[%c2_48, %c0_49] : memref<18x128xf32, #tpu.memory_space<vmem>>, vector<16x128xf32>
    %c5 = arith.constant 5 : index
    %c0_50 = arith.constant 0 : index
    %c0_51 = arith.constant 0 : index
    %88 = vector.load %arg3[%c5, %c0_50, %c0_51] : memref<6x128x128xf32, #tpu.memory_space<vmem>>, vector<1x128x128xf32>
    %89 = vector.shape_cast %88 : vector<1x128x128xf32> to vector<128x128xf32>
    %cst_52 = arith.constant dense<0.000000e+00> : vector<16x128xf32>
    %90 = tpu.matmul %87, %89, %cst_52 {dimension_numbers = #tpu.dot_dimension_numbers<[1], [0], [0], [1], [0, 0, 1, 1], [], []>, precision = #tpu.contract_precision<fp32>} : vector<16x128xf32>, vector<128x128xf32>, vector<16x128xf32> -> vector<16x128xf32>
    %91 = arith.addf %86, %90 : vector<16x128xf32>
    %92 = arith.addf %91, %0 : vector<16x128xf32>
    %c0_53 = arith.constant 0 : index
    %c0_54 = arith.constant 0 : index
    %93 = vector.load %arg4[%c0_53, %c0_54] : memref<16x128xf32, #tpu.memory_space<vmem>>, vector<16x128xf32>
    tpu.vector_store %arg4[%c0_53, %c0_54], %92 {strides = array<i32>} : memref<16x128xf32, #tpu.memory_space<vmem>>, vector<16x128xf32>,
    return
  }
}

</mosaic_0001>

<bundles_post_ra>
// kernel: tpu_custom_call.1
= control target key start
LH: loop header
LB: loop body
LE: loop exit
PB: predicated region body
PF: predicated region fallthrough
CT: control target
= control target key end

     0   :  { %9 = vsyncpa [#allocation4], 0  ;;  %s12320_s0 = inlined_call_operand.hbm [shape: f32[16,128], index: 0, kind: input, shape index: {}]   ;;  %s12321_s1 = inlined_call_operand.hbm [shape: f32[128,128], index: 1, kind: input, shape index: {}]   ;;  %s12322_s2 = inlined_call_operand.hbm [shape: f32[8,128], index: 2, kind: input, shape index: {}]   ;;  %s12323_s3 = inlined_call_operand.hbm [shape: f32[6,128,128], index: 3, kind: input, shape index: {}]   ;;  %s12324_s4 = inlined_call_operand.hbm [shape: f32[16,128], index: 4, kind: output, shape index: {}]  }
   0x1   :  { %10 = vsyncpa [#allocation7], 0 }
   0x2   :  { %11 = vsyncpa [#allocation10], 0 }
   0x3   :  { %12 = vsyncpa [#allocation5], 0  ;;  %s9935_s15 = smov [#allocation6]   ;;  %s9936_s17 = smov [#allocation3]  }
   0x4   :  { %s30_s16 = sshll.u32 %s9935_s15, 4  ;;  %s18_s18 = sshll.u32 %s9936_s17, 4  ;;  %s31_s16 = int_to_ptr.vmem [resolvable:$true] %s30_s16  ;;  %s9970_s18 = int_to_ptr.vmem [resolvable:$true] %s18_s18 }
   0x5   :  { %s9817_s21 = scalar_lea.hbm %s12321_s1, 2048 }
   0x6   :  { %p9818_p0 = scmp.ne.s32.totalorder %s12321_s1, %s9817_s21  ;;  %p9821_p1 = scmp.lt.u32.totalorder %s9817_s21, %s12321_s1 }
   0x8   :  { %p9823_p2 = pnand %p9821_p1, %p9818_p0 }
   0xa   :  { %9826 = shalt.err (!%p9823_p2)
}
   0xb   :  { %s9827_s26 = scalar_lea.vmem %s31_s16, 2048  ;;  %p9832_p4 = scmp.lt.s32.totalorder %s31_s16, %s31_s16 }
   0xc   :  { %p9828_p3 = scmp.ne.s32.totalorder %s31_s16, %s9827_s26  ;;  %p9833_p5 = scmp.lt.s32.totalorder %s9827_s26, %s9827_s26 }
   0xe   :  { %p9834_p6 = por %p9833_p5, %p9832_p4 }
  0x10   :  { %p9835_p7 = pnand %p9834_p6, %p9828_p3 }
  0x12   :  { %9838 = shalt.err (!%p9835_p7)
}
  0x13   :  { %s9937_s27 = smov 128   ;;  %s9938_s28 = smov 8  }
  0x14   :  { %36 = dma.hbm_to_vmem [thread:$0]  %s12321_s1, 2048, %s31_s16, [#allocation7], %s9937_s27, %s9937_s27, %s9938_s28  }
  0x15   :  { %s9839_s7 = scalar_lea.hbm %s12320_s0, 256 }
  0x16   :  { %p9840_p8 = scmp.ne.s32.totalorder %s12320_s0, %s9839_s7  ;;  %p9843_p9 = scmp.lt.u32.totalorder %s9839_s7, %s12320_s0 }
  0x18   :  { %p9845_p10 = pnand %p9843_p9, %p9840_p8 }
  0x1a   :  { %9848 = shalt.err (!%p9845_p10)
}
  0x1b   :  { %s9849_s12 = scalar_lea.vmem %s9970_s18, 256  ;;  %p9854_p12 = scmp.lt.s32.totalorder %s9970_s18, %s9970_s18 }
  0x1c   :  { %p9850_p11 = scmp.ne.s32.totalorder %s9970_s18, %s9849_s12  ;;  %p9855_p13 = scmp.lt.s32.totalorder %s9849_s12, %s9849_s12 }
  0x1e   :  { %p9856_p0 = por %p9855_p13, %p9854_p12 }
  0x20   :  { %p9857_p1 = pnand %p9856_p0, %p9850_p11 }
  0x22   :  { %9860 = shalt.err (!%p9857_p1)
}
  0x23   :  { %24 = dma.hbm_to_vmem [thread:$0]  %s12320_s0, 256, %s9970_s18, [#allocation4], %s9937_s27, %s9937_s27, %s9938_s28  }
  0x24   :  { %s9939_s14 = smov [#allocation8]   ;;  %s9940_s16 = smov [#allocation9]  }
  0x25   :  { %s43_s15 = sshll.u32 %s9939_s14, 4  ;;  %s52_s17 = sshll.u32 %s9940_s16, 4  ;;  %s44_s15 = int_to_ptr.vmem [resolvable:$true] %s43_s15  ;;  %s10007_s17 = int_to_ptr.vmem [resolvable:$true] %s52_s17 }
  0x26   :  { %s9861_s21 = scalar_lea.hbm %s12322_s2, 128 }
  0x27   :  { %p9862_p2 = scmp.ne.s32.totalorder %s12322_s2, %s9861_s21  ;;  %p9865_p3 = scmp.lt.u32.totalorder %s9861_s21, %s12322_s2 }
  0x29   :  { %p9867_p4 = pnand %p9865_p3, %p9862_p2 }
  0x2b   :  { %9870 = shalt.err (!%p9867_p4)
}
  0x2c   :  { %s9871_s0 = scalar_lea.vmem %s44_s15, 128  ;;  %p9876_p6 = scmp.lt.s32.totalorder %s44_s15, %s44_s15 }
  0x2d   :  { %p9872_p5 = scmp.ne.s32.totalorder %s44_s15, %s9871_s0  ;;  %p9877_p7 = scmp.lt.s32.totalorder %s9871_s0, %s9871_s0 }
  0x2f   :  { %p9878_p8 = por %p9877_p7, %p9876_p6 }
  0x31   :  { %p9879_p9 = pnand %p9878_p8, %p9872_p5 }
  0x33   :  { %9882 = shalt.err (!%p9879_p9)
}
  0x34   :  { %46 = dma.hbm_to_vmem [thread:$0]  %s12322_s2, 128, %s44_s15, [#allocation7]  }
  0x35   :  { %s9883_s5 = scalar_lea.hbm %s12323_s3, 12288 }
  0x36   :  { %p9884_p10 = scmp.ne.s32.totalorder %s12323_s3, %s9883_s5  ;;  %p9887_p11 = scmp.lt.u32.totalorder %s9883_s5, %s12323_s3 }
  0x38   :  { %p9889_p12 = pnand %p9887_p11, %p9884_p10 }
  0x3a   :  { %9892 = shalt.err (!%p9889_p12)
}
  0x3b   :  { %s9893_s10 = scalar_lea.vmem %s10007_s17, 12288  ;;  %p9898_p0 = scmp.lt.s32.totalorder %s10007_s17, %s10007_s17 }
  0x3c   :  { %p9894_p13 = scmp.ne.s32.totalorder %s10007_s17, %s9893_s10  ;;  %p9899_p1 = scmp.lt.s32.totalorder %s9893_s10, %s9893_s10 }
  0x3e   :  { %p9900_p2 = por %p9899_p1, %p9898_p0 }
  0x40   :  { %p9901_p3 = pnand %p9900_p2, %p9894_p13 }
  0x42   :  { %9904 = shalt.err (!%p9901_p3)
}
  0x43   :  { %58 = dma.hbm_to_vmem [thread:$0]  %s12323_s3, 12288, %s10007_s17, [#allocation10], %s9937_s27, %s9937_s27, %s9938_s28  }
  0x44   :  { %9927 = dma.done.wait [#allocation4], 256  }
  0x45   :  { %9928 = vsyncadd [#allocation4], 4294967040 }
  0x46   :  { %9929 = dma.done.wait [#allocation7], 2176  }
  0x47   :  { %9930 = vsyncadd [#allocation7], 4294965120 }
  0x48   :  { %9931 = dma.done.wait [#allocation10], 12288  }
  0x49   :  { %9932 = vsyncadd [#allocation10], 4294955008  ;;  %v12325_v0 = vmov 0.0|0.0   ;;  %vm9942_vm0 = vmmov 0   ;;  %v12327_v1 = vmov 0.0   ;;  %v74_v2 = vld [vmem:[#allocation6] sm:$0xff] }
  0x4a   :  { %8267 = vmatprep.subr.bf16.mxu1 %v12325_v0  ;;  %6619 = vmatprep.mubr.msk.f32.mxu1 %vm9942_vm0, %v12327_v1  ;;  %90 = vst [vmem:[#allocation2] sm:$0x1] %v12327_v1  ;;  %91 = vst [vmem:[#allocation2 + $0x11] sm:$0x1] %v12327_v1  ;;  %v75_v3 = vld [vmem:[#allocation6 + $0x8] sm:$0xff]  ;;  %v76_v4 = vld [vmem:[#allocation6 + $0x10] sm:$0xff] }
  0x4b   :  { %8987 = vmatprep.subr.bf16.mxu0 %v12325_v0  ;;  %7459 = vmatprep.mubr.msk.f32.mxu0 %vm9942_vm0, %v12327_v1  ;;  %v111_v5 = vand.u32 4294901760, %v74_v2  ;;  %v114_v6 = vand.u32 4294901760, %v75_v3  ;;  %v77_v7 = vld [vmem:[#allocation6 + $0x18] sm:$0xff]  ;;  %v117_v8 = vand.u32 4294901760, %v76_v4  ;;  %v78_v10 = vld [vmem:[#allocation6 + $0x20] sm:$0xff]  ;;  %v10049_v11 = vld [vmem:[#allocation6 + $0x28] sm:$0xff] }
  0x4c   :  { %v120_v9 = vand.u32 4294901760, %v77_v7  ;;  %v123_v14 = vand.u32 4294901760, %v78_v10  ;;  %v126_v15 = vand.u32 4294901760, %v10049_v11  ;;  %v10057_v16 = vld [vmem:[#allocation3] sm:$0xff]  ;;  %v10059_v17 = vld [vmem:[#allocation3 + $0x8] sm:$0xff]  ;;  %v10080_v28 = vld [vmem:[#allocation6 + $0x40] sm:$0xff] }
  0x4d   :  { %v10051_v12 = vpack.c.bf16 %v114_v6, %v111_v5  ;;  %v10063_v18 = vld [vmem:[#allocation6 + $0x30] sm:$0xff]  ;;  %v10065_v19 = vld [vmem:[#allocation6 + $0x38] sm:$0xff]  ;;  %v92_v20 = vadd.f32 %v10059_v17, %v10057_v16  ;;  %v99_v21 = vmul.f32 %v10057_v16, %v10057_v16  ;;  %v100_v22 = vmul.f32 %v10059_v17, %v10059_v17  ;;  %v10082_v29 = vld [vmem:[#allocation6 + $0x48] sm:$0xff]  ;;  %s9944_s3 = smov [#allocation11]  }
  0x4e   :  { %v10054_v13 = vpack.c.bf16 %v120_v9, %v117_v8  ;;  %v10075_v24 = vpack.c.bf16 %v126_v15, %v123_v14  ;;  %v129_v25 = vand.u32 4294901760, %v10063_v18  ;;  %v132_v26 = vand.u32 4294901760, %v10065_v19  ;;  %v10086_v32 = vld [vmem:[#allocation6 + $0x50] sm:$0xff]  ;;  %v85_v38 = vld [vmem:[#allocation6 + $0x58] sm:$0xff]  ;;  %v86_v39 = vld [vmem:[#allocation6 + $0x60] sm:$0xff]  ;;  %s5721_s12 = sshll.u32 %s9944_s3, 4  ;;  %s5722_s12 = int_to_ptr.vmem [resolvable:$true] %s5721_s12 }
  0x4f   :  { %12407 = vst [vmem:[#allocation16_spill] sm:$0xff] %v10051_v12  ;;  %8269 = vmatpush3.bf16.msra.mxu1 %v10051_v12  ;;  %8989 = vmatpush3.bf16.msra.mxu0 %v10051_v12  ;;  %v93_v23 = vrot.slane %v92_v20, 4  ;;  %v101_v27 = vadd.f32 %v100_v22, %v99_v21  ;;  %v135_v35 = vand.u32 4294901760, %v10080_v28  ;;  %v138_v36 = vand.u32 4294901760, %v10082_v29  ;;  %v87_v43 = vld [vmem:[#allocation6 + $0x68] sm:$0xff]  ;;  %v88_v44 = vld [vmem:[#allocation6 + $0x70] sm:$0xff]  ;;  %p9910_p5 = scmp.lt.s32.totalorder %s5722_s12, %s5722_s12 }
  0x50   :  { %12408 = vst [vmem:[#allocation17_spill] sm:$0xff] %v10054_v13  ;;  %8270 = vmatprep.subr.bf16.mxu1 %v12325_v0  ;;  %8990 = vmatprep.subr.bf16.mxu0 %v12325_v0  ;;  %12409 = vst [vmem:[#allocation18_spill] sm:$0xff] %v10075_v24  ;;  %v10093_v34 = vpack.c.bf16 %v132_v26, %v129_v25  ;;  %v10098_v41 = vsub.f32 %v74_v2, %v111_v5  ;;  %v141_v42 = vand.u32 4294901760, %v10086_v32  ;;  %v89_v45 = vld [vmem:[#allocation6 + $0x78] sm:$0xff]  ;;  %vm108_vm1 = vcmask 1040384   ;;  %s9905_s1 = scalar_lea.vmem %s5722_s12, 256 }
  0x51   :  { %v94_v30 = vadd.f32 %v93_v23, %v92_v20  ;;  %v102_v31 = vrot.slane %v101_v27, 4  ;;  %v10102_v47 = vsub.f32 %v75_v3, %v114_v6  ;;  %v10105_v49 = vsub.f32 %v76_v4, %v117_v8  ;;  %p9906_p4 = scmp.ne.s32.totalorder %s5722_s12, %s9905_s1  ;;  %p9911_p6 = scmp.lt.s32.totalorder %s9905_s1, %s9905_s1 }
  0x52   :  { %12410 = vst [vmem:[#allocation19_spill] sm:$0xff] %v10093_v34  ;;  %v10107_v50 = vsub.f32 %v77_v7, %v120_v9  ;;  %v10109_v51 = vsub.f32 %v78_v10, %v123_v14  ;;  %v10112_v52 = vpack.c.bf16 %v138_v36, %v135_v35  ;;  %v144_v53 = vand.u32 4294901760, %v85_v38 }
  0x53   :  { %8272 = vmatpush3.bf16.msra.mxu1 %v10054_v13  ;;  %8992 = vmatpush3.bf16.msra.mxu0 %v10054_v13  ;;  %v95_v33 = vrot.slane %v94_v30, 2  ;;  %v103_v37 = vadd.f32 %v102_v31, %v101_v27  ;;  %v147_v54 = vand.u32 4294901760, %v86_v39  ;;  %v150_v56 = vand.u32 4294901760, %v87_v43  ;;  %p9912_p7 = por %p9911_p6, %p9910_p5 }
  0x54   :  { %8273 = vmatprep.subr.bf16.mxu1 %v12325_v0  ;;  %8993 = vmatprep.subr.bf16.mxu0 %v12325_v0  ;;  %12411 = vst [vmem:[#allocation20_spill] sm:$0xff] %v10112_v52  ;;  %v153_v57 = vand.u32 4294901760, %v88_v44  ;;  %v156_v58 = vand.u32 4294901760, %v89_v45  ;;  %v204_v59 = vand.u32 4294901760, %v10098_v41  ;;  %v211_v62 = vand.u32 4294901760, %v10102_v47 }
  0x55   :  { %v96_v40 = vadd.f32 %v95_v33, %v94_v30  ;;  %v104_v46 = vrot.slane %v103_v37, 2  ;;  %v10119_v63 = vsub.f32 %v10049_v11, %v126_v15  ;;  %v218_v2 = vand.u32 4294901760, %v10105_v49  ;;  %p9913_p8 = pnand %p9912_p7, %p9906_p4 }
  0x56   :  { %v225_v3 = vand.u32 4294901760, %v10107_v50  ;;  %v232_v4 = vand.u32 4294901760, %v10109_v51  ;;  %v10126_v5 = vpack.c.bf16 %v144_v53, %v141_v42  ;;  %v10129_v7 = vpack.c.bf16 %v150_v56, %v147_v54 }
  0x57   :  { %8275 = vmatpush3.bf16.msra.mxu1 %v10075_v24  ;;  %8995 = vmatpush3.bf16.msra.mxu0 %v10075_v24  ;;  %v97_v48 = vrot.slane %v96_v40, 1  ;;  %v105_v55 = vadd.f32 %v104_v46, %v103_v37  ;;  %v10131_v8 = vpack.c.bf16 %v156_v58, %v153_v57  ;;  %v205_v10 = vsub.f32 %v10098_v41, %v204_v59 }
  0x58   :  { %8276 = vmatprep.subr.bf16.mxu1 %v12325_v0  ;;  %8996 = vmatprep.subr.bf16.mxu0 %v12325_v0  ;;  %12412 = vst [vmem:[#allocation21_spill] sm:$0xff] %v10126_v5  ;;  %12413 = vst [vmem:[#allocation22_spill] sm:$0xff] %v10129_v7  ;;  %v212_v11 = vsub.f32 %v10102_v47, %v211_v62  ;;  %v239_v14 = vand.u32 4294901760, %v10119_v63  ;;  %v219_v20 = vsub.f32 %v10105_v49, %v218_v2 }
  0x59   :  { %v98_v60 = vadd.f32 %v97_v48, %v96_v40  ;;  %v106_v61 = vrot.slane %v105_v55, 1  ;;  %12414 = vst [vmem:[#allocation23_spill] sm:$0xff] %v10131_v8  ;;  %v226_v21 = vsub.f32 %v10107_v50, %v225_v3  ;;  %v10144_v22 = vsub.f32 %v10109_v51, %v232_v4 }
  0x5a   :  { %v10150_v23 = vsub.f32 %v10063_v18, %v129_v25  ;;  %v10155_v27 = vsub.f32 %v10065_v19, %v132_v26  ;;  %v10158_v30 = vsub.f32 %v10080_v28, %v135_v35  ;;  %v10161_v31 = vsub.f32 %v10082_v29, %v138_v36 }
  0x5b   :  { %8278 = vmatpush3.bf16.msra.mxu1 %v10093_v34  ;;  %8998 = vmatpush3.bf16.msra.mxu0 %v10093_v34  ;;  %v107_v6 = vadd.f32 %v106_v61, %v105_v55  ;;  %v10168_v37 = vsub.f32 %v10086_v32, %v141_v42  ;;  %v10170_v18 = vsub.f32 %v85_v38, %v144_v53  ;;  %v206_v35 = vand.u32 4294901760, %v205_v10 }
  0x5c   :  { %8279 = vmatprep.subr.bf16.mxu1 %v12325_v0  ;;  %8999 = vmatprep.subr.bf16.mxu0 %v12325_v0  ;;  %v10173_v19 = vsub.f32 %v86_v39, %v147_v54  ;;  %v10175_v25 = vsub.f32 %v87_v43, %v150_v56  ;;  %v10177_v26 = vsub.f32 %v88_v44, %v153_v57  ;;  %v213_v36 = vand.u32 4294901760, %v212_v11 }
  0x5d   :  { %v109_v9 = vsel %vm108_vm1, %v98_v60, %v107_v6  ;;  %v10179_v28 = vsub.f32 %v89_v45, %v156_v58  ;;  %v240_v32 = vsub.f32 %v10119_v63, %v239_v14  ;;  %v220_v38 = vand.u32 4294901760, %v219_v20 }
  0x5e   :  { %v10139_v15 = vand.u32 4294901760, %v109_v9  ;;  %v246_v39 = vand.u32 4294901760, %v10150_v23  ;;  %v253_v40 = vand.u32 4294901760, %v10155_v27  ;;  %v260_v42 = vand.u32 4294901760, %v10158_v30 }
  0x5f   :  { %8281 = vmatpush3.bf16.msra.mxu1 %v10112_v52  ;;  %9001 = vmatpush3.bf16.msra.mxu0 %v10112_v52  ;;  %v267_v44 = vand.u32 4294901760, %v10161_v31  ;;  %v274_v45 = vand.u32 4294901760, %v10168_v37  ;;  %v281_v46 = vand.u32 4294901760, %v10170_v18  ;;  %v288_v48 = vand.u32 4294901760, %v10173_v19 }
  0x60   :  { %8282 = vmatprep.subr.bf16.mxu1 %v12325_v0  ;;  %9002 = vmatprep.subr.bf16.mxu0 %v12325_v0  ;;  %v10165_v33 = vsub.f32 %v109_v9, %v10139_v15  ;;  %v295_v53 = vand.u32 4294901760, %v10175_v25  ;;  %v302_v54 = vand.u32 4294901760, %v10177_v26  ;;  %v309_v55 = vand.u32 4294901760, %v10179_v28 }
  0x61   :  { %v10200_v57 = vpack.c.bf16 %v211_v62, %v204_v59  ;;  %v10202_v58 = vpack.c.bf16 %v225_v3, %v218_v2  ;;  %v10204_v60 = vpack.c.bf16 %v239_v14, %v232_v4  ;;  %v10208_v61 = vpack.c.bf16 %v213_v36, %v206_v35 }
  0x62   :  { %v193_v29 = vand.u32 4294901760, %v10165_v33  ;;  %v227_v6 = vand.u32 4294901760, %v226_v21  ;;  %v10210_v9 = vpack.c.bf16 %v253_v40, %v246_v39  ;;  %v10212_v10 = vpack.c.bf16 %v267_v44, %v260_v42 }
  0x63   :  { %8284 = vmatpush3.bf16.msra.mxu1 %v10126_v5  ;;  %9004 = vmatpush3.bf16.msra.mxu0 %v10126_v5  ;;  %12415 = vst [vmem:[#allocation24_spill] sm:$0xff] %v10200_v57  ;;  %12416 = vst [vmem:[#allocation25_spill] sm:$0xff] %v10202_v58  ;;  %v10215_v11 = vpack.c.bf16 %v281_v46, %v274_v45  ;;  %v10217_v59 = vpack.c.bf16 %v295_v53, %v288_v48  ;;  %v234_v2 = vand.u32 4294901760, %v10144_v22 }
  0x64   :  { %8285 = vmatprep.subr.bf16.mxu1 %v12325_v0  ;;  %9005 = vmatprep.subr.bf16.mxu0 %v12325_v0  ;;  %v194_v43 = vsub.f32 %v10165_v33, %v193_v29  ;;  %12417 = vst [vmem:[#allocation26_spill] sm:$0xff] %v10204_v60  ;;  %12418 = vst [vmem:[#allocation27_spill] sm:$0xff] %v10210_v9  ;;  %v10219_v62 = vpack.c.bf16 %v309_v55, %v302_v54  ;;  %v241_v4 = vand.u32 4294901760, %v240_v32 }
  0x65   :  { %12419 = vst [vmem:[#allocation28_spill] sm:$0xff] %v10212_v10  ;;  %12420 = vst [vmem:[#allocation29_spill] sm:$0xff] %v10215_v11  ;;  %v10225_v3 = vpack.c.bf16 %v227_v6, %v220_v38  ;;  %v247_v14 = vsub.f32 %v10150_v23, %v246_v39  ;;  %v254_v20 = vsub.f32 %v10155_v27, %v253_v40 }
  0x66   :  { %v195_v56 = vand.u32 4294901760, %v194_v43  ;;  %12421 = vst [vmem:[#allocation30_spill] sm:$0xff] %v10217_v59  ;;  %12422 = vst [vmem:[#allocation31_spill] sm:$0xff] %v10219_v62  ;;  %v261_v21 = vsub.f32 %v10158_v30, %v260_v42  ;;  %v10234_v22 = vpack.c.bf16 %v241_v4, %v234_v2  ;;  %v268_v38 = vsub.f32 %v10161_v31, %v267_v44 }
  0x67   :  { %8287 = vmatpush3.bf16.msra.mxu1 %v10129_v7  ;;  %9007 = vmatpush3.bf16.msra.mxu0 %v10129_v7  ;;  %v248_v35 = vand.u32 4294901760, %v247_v14  ;;  %v255_v36 = vand.u32 4294901760, %v254_v20  ;;  %v275_v43 = vsub.f32 %v10168_v37, %v274_v45  ;;  %v282_v42 = vsub.f32 %v10170_v18, %v281_v46 }
  0x68   :  { %8288 = vmatprep.subr.bf16.mxu1 %v12325_v0  ;;  %9008 = vmatprep.subr.bf16.mxu0 %v12325_v0  ;;  %v262_v32 = vand.u32 4294901760, %v261_v21  ;;  %v269_v40 = vand.u32 4294901760, %v268_v38  ;;  %v296_v4 = vsub.f32 %v10175_v25, %v295_v53  ;;  %v303_v20 = vsub.f32 %v10177_v26, %v302_v54 }
  0x69   :  { %v10239_v39 = vpack.c.bf16 %v255_v36, %v248_v35  ;;  %v276_v44 = vand.u32 4294901760, %v275_v43  ;;  %v283_v2 = vand.u32 4294901760, %v282_v42  ;;  %v10267_v54 = vpack.c.bf16 %v10102_v47, %v10098_v41  ;;  %v793_v43 = vld [vmem:[#allocation9 + $0x38] sm:$0xff] }
  0x6a   :  { %v10246_v6 = vpack.c.bf16 %v269_v40, %v262_v32  ;;  %v297_v46 = vand.u32 4294901760, %v296_v4  ;;  %v304_v35 = vand.u32 4294901760, %v303_v20  ;;  %v10282_v41 = vpack.c.bf16 %v10119_v63, %v10109_v51  ;;  %v792_v40 = vld [vmem:[#allocation9 + $0x30] sm:$0xff]  ;;  %v10391_v4 = vld [vmem:[#allocation9 + $0x48] sm:$0xff] }
  0x6b   :  { %8290 = vmatpush3.bf16.msra.mxu1 %v10131_v8  ;;  %9010 = vmatpush3.bf16.msra.mxu0 %v10131_v8  ;;  %12423 = vst [vmem:[#allocation32_spill] sm:$0xff] %v10239_v39  ;;  %v10251_v45 = vpack.c.bf16 %v283_v2, %v276_v44  ;;  %12428 = vst [vmem:[#allocation37_spill] sm:$0xff] %v10267_v54  ;;  %v10288_v47 = vpack.c.bf16 %v10155_v27, %v10150_v23  ;;  %v786_v23 = vld [vmem:[#allocation9] sm:$0xff]  ;;  %v787_v27 = vld [vmem:[#allocation9 + $0x8] sm:$0xff]  ;;  %v821_v42 = vand.u32 4294901760, %v792_v40 }
  0x6c   :  { %8291 = vmatprep.subr.bf16.mxu1 %v12325_v0  ;;  %9011 = vmatprep.subr.bf16.mxu0 %v12325_v0  ;;  %12424 = vst [vmem:[#allocation33_spill] sm:$0xff] %v10246_v6  ;;  %12430 = vst [vmem:[#allocation39_spill] sm:$0xff] %v10282_v41  ;;  %v10306_v51 = vpack.c.bf16 %v10175_v25, %v10173_v19  ;;  %v10312_v63 = vpack.c.bf16 %v10179_v28, %v10177_v26  ;;  %v10389_v2 = vld [vmem:[#allocation9 + $0x40] sm:$0xff] }
  0x6d   :  { %12425 = vst [vmem:[#allocation34_spill] sm:$0xff] %v10251_v45  ;;  %12431 = vst [vmem:[#allocation40_spill] sm:$0xff] %v10288_v47 }
  0x6e   :  { %6620 = vmatmul.mubr.f32.vlgmr.msra.gmra.mrb[0].mxu1 %v195_v56  ;;  %v289_v56 = vsub.f32 %v10173_v19, %v288_v48  ;;  %v310_v48 = vsub.f32 %v10179_v28, %v309_v55  ;;  %v10274_v55 = vpack.c.bf16 %v10107_v50, %v10105_v49  ;;  %v10294_v49 = vpack.c.bf16 %v10161_v31, %v10158_v30  ;;  %v790_v28 = vld [vmem:[#allocation9 + $0x20] sm:$0xff] }
  0x6f   :  { %8293 = vmatpush3.bf16.msra.mxu1 %v10208_v61  ;;  %6654 = vmatprep.mubr.msk.f32.mxu1 %vm9942_vm0, %v12327_v1  ;;  %v10300_v50 = vpack.c.bf16 %v10170_v18, %v10168_v37  ;;  %12434 = vst [vmem:[#allocation43_spill] sm:$0xff] %v10306_v51  ;;  %12435 = vst [vmem:[#allocation44_spill] sm:$0xff] %v10312_v63  ;;  %v803_v30 = vand.u32 4294901760, %v786_v23  ;;  %v806_v31 = vand.u32 4294901760, %v787_v27  ;;  %v788_v37 = vld [vmem:[#allocation9 + $0x10] sm:$0xff]  ;;  %v789_v18 = vld [vmem:[#allocation9 + $0x18] sm:$0xff] }
  0x70   :  { %8294 = vmatprep.subr.bf16.mxu1 %v12325_v0  ;;  %v290_v14 = vand.u32 4294901760, %v289_v56  ;;  %v311_v53 = vand.u32 4294901760, %v310_v48  ;;  %12429 = vst [vmem:[#allocation38_spill] sm:$0xff] %v10274_v55  ;;  %12432 = vst [vmem:[#allocation41_spill] sm:$0xff] %v10294_v49  ;;  %v809_v19 = vand.u32 4294901760, %v788_v37  ;;  %v812_v25 = vand.u32 4294901760, %v789_v18 }
  0x71   :  { %12433 = vst [vmem:[#allocation42_spill] sm:$0xff] %v10300_v50  ;;  %v824_v56 = vand.u32 4294901760, %v793_v43  ;;  %v10399_v48 = vld [vmem:[#allocation9 + $0x50] sm:$0xff] }
  0x72   :  { %v10257_v21 = vpack.c.bf16 %v297_v46, %v290_v14  ;;  %v10261_v36 = vpack.c.bf16 %v311_v53, %v304_v35  ;;  %v10379_v26 = vpack.c.bf16 %v812_v25, %v809_v19  ;;  %v827_v14 = vand.u32 4294901760, %v10389_v2  ;;  %v10401_v35 = vld [vmem:[#allocation9 + $0x58] sm:$0xff]  ;;  %v10403_v53 = vld [vmem:[#allocation9 + $0x60] sm:$0xff] }
  0x73   :  { %8296 = vmatpush3.bf16.msra.mxu1 %v10225_v3  ;;  %v10387_v44 = vpack.c.bf16 %v824_v56, %v821_v42  ;;  %v830_v46 = vand.u32 4294901760, %v10391_v4 }
  0x74   :  { %8297 = vmatprep.subr.bf16.mxu1 %v12325_v0  ;;  %12426 = vst [vmem:[#allocation35_spill] sm:$0xff] %v10257_v21  ;;  %12427 = vst [vmem:[#allocation36_spill] sm:$0xff] %v10261_v36 }
  0x75   :  { %v10397_v20 = vpack.c.bf16 %v830_v46, %v827_v14 }
  0x77   :  { %8299 = vmatpush3.bf16.msra.mxu1 %v10234_v22 }
  0x78   :  { %8300 = vmatprep.subr.bf16.mxu1 %v12325_v0 }
  0x7b   :  { %8302 = vmatpush3.bf16.msra.mxu1 %v10239_v39 }
  0x7c   :  { %8303 = vmatprep.subr.bf16.mxu1 %v12325_v0 }
  0x7f   :  { %8305 = vmatpush3.bf16.msra.mxu1 %v10246_v6 }
  0x80   :  { %8306 = vmatprep.subr.bf16.mxu1 %v12325_v0 }
  0x83   :  { %8308 = vmatpush3.bf16.msra.mxu1 %v10251_v45 }
  0x84   :  { %8309 = vmatprep.subr.bf16.mxu1 %v12325_v0 }
  0x87   :  { %8311 = vmatpush3.bf16.msra.mxu1 %v10257_v21 }
  0x88   :  { %8312 = vmatprep.subr.bf16.mxu1 %v12325_v0 }
  0x8b   :  { %8314 = vmatpush3.bf16.msra.mxu1 %v10261_v36 }
  0x8c   :  { %8315 = vmatprep.subr.bf16.mxu1 %v12325_v0 }
  0x8e   :  { %6655 = vmatmul.mubr.f32.vlgmr.msra.gmra.mrb[0].mxu1 %v10139_v15 }
  0x8f   :  { %8317 = vmatpush3.bf16.msra.mxu1 %v10267_v54  ;;  %6689 = vmatprep.mubr.msk.f32.mxu1 %vm9942_vm0, %v12327_v1 }
  0x90   :  { %8318 = vmatprep.subr.bf16.mxu1 %v12325_v0 }
  0x93   :  { %8320 = vmatpush3.bf16.msra.mxu1 %v10274_v55 }
  0x94   :  { %8321 = vmatprep.subr.bf16.mxu1 %v12325_v0 }
  0x97   :  { %8323 = vmatpush3.bf16.msra.mxu1 %v10282_v41 }
  0x98   :  { %8324 = vmatprep.subr.bf16.mxu1 %v12325_v0 }
  0x9b   :  { %8326 = vmatpush3.bf16.msra.mxu1 %v10288_v47  ;;  %v73_v47 = vld [vmem:[#allocation8] sm:$0xff] }
  0x9c   :  { %8327 = vmatprep.subr.bf16.mxu1 %v12325_v0 }
  0x9f   :  { %8329 = vmatpush3.bf16.msra.mxu1 %v10294_v49 }
  0xa0   :  { %8330 = vmatprep.subr.bf16.mxu1 %v12325_v0 }
  0xa3   :  { %8332 = vmatpush3.bf16.msra.mxu1 %v10300_v50 }
  0xa4   :  { %8333 = vmatprep.subr.bf16.mxu1 %v12325_v0 }
  0xa7   :  { %8335 = vmatpush3.bf16.msra.mxu1 %v10306_v51 }
  0xa8   :  { %8336 = vmatprep.subr.bf16.mxu1 %v12325_v0 }
  0xab   :  { %8338 = vmatpush3.bf16.msra.mxu1 %v10312_v63  ;;  %v758_v63 = vlaneseq }
  0xac   :  { %8339 = vmatprep.subr.bf16.mxu1 %v12325_v0 }
  0xad   :  { %v10600_v51 = vshrl.u32 %v758_v63, 7 }
  0xae   :  { %6690 = vmatmul.mubr.f32.vlgmr.msra.gmra.mrb[0].mxu1 %v10165_v33  ;;  %v10375_v33 = vpack.c.bf16 %v806_v31, %v803_v30 }
  0xaf   :  { %8341 = vmatpush3.bf16.msra.mxu1 %v10051_v12  ;;  %6724 = vmatprep.mubr.msk.f32.mxu1 %vm9942_vm0, %v12327_v1  ;;  %v10603_v50 = vsub.s32 0, %v10600_v51  ;;  %v776_v54 = vsub.s32 1, %v10600_v51 }
  0xb0   :  { %8342 = vmatprep.subr.bf16.mxu1 %v12325_v0 }
  0xb3   :  { %8344 = vmatpush3.bf16.msra.mxu1 %v10054_v13 }
  0xb4   :  { %8345 = vmatprep.subr.bf16.mxu1 %v12325_v0 }
  0xb7   :  { %8347 = vmatpush3.bf16.msra.mxu1 %v10075_v24 }
  0xb8   :  { %8348 = vmatprep.subr.bf16.mxu1 %v12325_v0 }
  0xbb   :  { %8350 = vmatpush3.bf16.msra.mxu1 %v10093_v34 }
  0xbc   :  { %8351 = vmatprep.subr.bf16.mxu1 %v12325_v0 }
  0xbf   :  { %8353 = vmatpush3.bf16.msra.mxu1 %v10112_v52 }
  0xc0   :  { %8354 = vmatprep.subr.bf16.mxu1 %v12325_v0 }
  0xc3   :  { %8356 = vmatpush3.bf16.msra.mxu1 %v10126_v5 }
  0xc4   :  { %8357 = vmatprep.subr.bf16.mxu1 %v12325_v0 }
  0xc7   :  { %8359 = vmatpush3.bf16.msra.mxu1 %v10129_v7 }
  0xc8   :  { %8360 = vmatprep.subr.bf16.mxu1 %v12325_v0 }
  0xcb   :  { %8362 = vmatpush3.bf16.msra.mxu1 %v10131_v8 }
  0xcc   :  { %8363 = vmatprep.subr.bf16.mxu1 %v12325_v0 }
  0xce   :  { %6725 = vmatmul.mubr.f32.vlgmr.msra.gmra.mrb[0].mxu1 %v193_v29  ;;  %v791_v29 = vld [vmem:[#allocation9 + $0x28] sm:$0xff] }
  0xcf   :  { %8365 = vmatpush3.bf16.msra.mxu1 %v10200_v57  ;;  %6759 = vmatprep.mubr.msk.f32.mxu1 %vm9942_vm0, %v12327_v1  ;;  %v818_v38 = vand.u32 4294901760, %v791_v29 }
  0xd0   :  { %8366 = vmatprep.subr.bf16.mxu1 %v12325_v0 }
  0xd3   :  { %8368 = vmatpush3.bf16.msra.mxu1 %v10202_v58 }
  0xd4   :  { %8369 = vmatprep.subr.bf16.mxu1 %v12325_v0 }
  0xd7   :  { %8371 = vmatpush3.bf16.msra.mxu1 %v10204_v60 }
  0xd8   :  { %8372 = vmatprep.subr.bf16.mxu1 %v12325_v0 }
  0xdb   :  { %8374 = vmatpush3.bf16.msra.mxu1 %v10210_v9 }
  0xdc   :  { %8375 = vmatprep.subr.bf16.mxu1 %v12325_v0 }
  0xdf   :  { %8377 = vmatpush3.bf16.msra.mxu1 %v10212_v10  ;;  %v10412_v10 = vld [vmem:[#allocation9 + $0x78] sm:$0xff] }
  0xe0   :  { %8378 = vmatprep.subr.bf16.mxu1 %v12325_v0 }
  0xe3   :  { %8380 = vmatpush3.bf16.msra.mxu1 %v10215_v11  ;;  %v10410_v11 = vld [vmem:[#allocation9 + $0x70] sm:$0xff] }
  0xe4   :  { %8381 = vmatprep.subr.bf16.mxu1 %v12325_v0  ;;  %v12350_v57 = vand.u32 4294901760, %v10410_v11 }
  0xe7   :  { %8383 = vmatpush3.bf16.msra.mxu1 %v10217_v59  ;;  %v12344_v59 = vand.u32 4294901760, %v10403_v53 }
  0xe8   :  { %8384 = vmatprep.subr.bf16.mxu1 %v12325_v0 }
  0xeb   :  { %8386 = vmatpush3.bf16.msra.mxu1 %v10219_v62  ;;  %v10407_v62 = vld [vmem:[#allocation9 + $0x68] sm:$0xff] }
  0xec   :  { %8387 = vmatprep.subr.bf16.mxu1 %v12325_v0  ;;  %v12343_v9 = vand.u32 4294901760, %v10407_v62 }
  0xee   :  { %6760 = vmatmul.mubr.f32.vlgmr.msra.gmra.mrb[0].mxu1 %v10139_v15  ;;  %v10423_v58 = vpack.c.bf16 %v12343_v9, %v12344_v59  ;;  %v10438_v9 = vsub.f32 %v787_v27, %v806_v31  ;;  %v10452_v27 = vsub.f32 %v789_v18, %v812_v25 }
  0xef   :  { %8389 = vmatpush3.bf16.msra.mxu1 %v10051_v12  ;;  %6794 = vmatprep.mubr.msk.f32.mxu1 %vm9942_vm0, %v12327_v1  ;;  %v836_v1 = vand.u32 4294901760, %v10401_v35 }
  0xf0   :  { %8390 = vmatprep.subr.bf16.mxu1 %v12325_v0 }
  0xf3   :  { %8392 = vmatpush3.bf16.msra.mxu1 %v10054_v13 }
  0xf4   :  { %8393 = vmatprep.subr.bf16.mxu1 %v12325_v0 }
  0xf7   :  { %8395 = vmatpush3.bf16.msra.mxu1 %v10075_v24  ;;  %v12357_v24 = vand.u32 4294901760, %v10452_v27 }
  0xf8   :  { %8396 = vmatprep.subr.bf16.mxu1 %v12325_v0 }
  0xfb   :  { %8398 = vmatpush3.bf16.msra.mxu1 %v10093_v34 }
  0xfc   :  { %8399 = vmatprep.subr.bf16.mxu1 %v12325_v0 }
  0xff   :  { %8401 = vmatpush3.bf16.msra.mxu1 %v10112_v52  ;;  %v12370_v52 = vand.u32 4294901760, %v10438_v9 }
 0x100   :  { %8402 = vmatprep.subr.bf16.mxu1 %v12325_v0 }
 0x103   :  { %8404 = vmatpush3.bf16.msra.mxu1 %v10126_v5  ;;  %v10436_v5 = vsub.f32 %v786_v23, %v803_v30  ;;  %v10450_v23 = vsub.f32 %v788_v37, %v809_v19  ;;  %v928_v37 = vsub.f32 %v10452_v27, %v12357_v24 }
 0x104   :  { %8405 = vmatprep.subr.bf16.mxu1 %v12325_v0 }
 0x105   :  { %v12355_v59 = vand.u32 4294901760, %v10436_v5  ;;  %v929_v19 = vand.u32 4294901760, %v928_v37 }
 0x107   :  { %8407 = vmatpush3.bf16.msra.mxu1 %v10129_v7  ;;  %v907_v34 = vsub.f32 %v10436_v5, %v12355_v59 }
 0x108   :  { %8408 = vmatprep.subr.bf16.mxu1 %v12325_v0  ;;  %v833_v0 = vand.u32 4294901760, %v10399_v48 }
 0x109   :  { %v908_v30 = vand.u32 4294901760, %v907_v34  ;;  %v10467_v34 = vsub.f32 %v791_v29, %v818_v38  ;;  %v10480_v29 = vsub.f32 %v792_v40, %v821_v42  ;;  %v10495_v40 = vsub.f32 %v10391_v4, %v830_v46 }
 0x10a   :  { %v10417_v60 = vpack.c.bf16 %v836_v1, %v833_v0  ;;  %v10509_v4 = vsub.f32 %v10399_v48, %v833_v0 }
 0x10b   :  { %8410 = vmatpush3.bf16.msra.mxu1 %v10131_v8  ;;  %v12349_v8 = vand.u32 4294901760, %v10412_v10  ;;  %v12360_v37 = vand.u32 4294901760, %v10480_v29 }
 0x10c   :  { %8412 = vmatprep.subr.bf16.mxu1 %v10375_v33 }
 0x10d   :  { %v10434_v7 = vpack.c.bf16 %v12349_v8, %v12350_v57  ;;  %v914_v8 = vsub.f32 %v10438_v9, %v12370_v52  ;;  %v12356_v57 = vand.u32 4294901760, %v10450_v23 }
 0x10e   :  { %6795 = vmatmul.mubr.f32.vlgmr.msra.gmra.mrb[0].mxu1 %v10139_v15  ;;  %v815_v15 = vand.u32 4294901760, %v790_v28 }
 0x10f   :  { %8414 = vmatpush3.bf16.msra.mxu1 %v10375_v33  ;;  %v915_v31 = vand.u32 4294901760, %v914_v8  ;;  %v921_v59 = vsub.f32 %v10450_v23, %v12356_v57 }
 0x110   :  { %8416 = vmatprep.subr.bf16.mxu1 %v10379_v26  ;;  %v10383_v32 = vpack.c.bf16 %v818_v38, %v815_v15  ;;  %v10465_v18 = vsub.f32 %v790_v28, %v815_v15  ;;  %v10482_v15 = vsub.f32 %v793_v43, %v824_v56  ;;  %v12361_v56 = vand.u32 4294901760, %v10495_v40 }
 0x111   :  { %v10457_v13 = vpack.c.bf16 %v915_v31, %v908_v30  ;;  %v922_v8 = vand.u32 4294901760, %v921_v59  ;;  %v12369_v30 = vand.u32 4294901760, %v10467_v34 }
 0x112   :  { %v12358_v25 = vand.u32 4294901760, %v10465_v18  ;;  %v12359_v24 = vand.u32 4294901760, %v10482_v15 }
 0x113   :  { %8418 = vmatpush3.bf16.msra.mxu1 %v10379_v26  ;;  %v10472_v31 = vpack.c.bf16 %v929_v19, %v922_v8  ;;  %v942_v28 = vsub.f32 %v10467_v34, %v12369_v30  ;;  %v949_v19 = vsub.f32 %v10480_v29, %v12360_v37 }
 0x114   :  { %8420 = vmatprep.subr.bf16.mxu1 %v10383_v32  ;;  %v935_v57 = vsub.f32 %v10465_v18, %v12358_v25  ;;  %v10492_v25 = vsub.f32 %v10389_v2, %v827_v14  ;;  %v970_v2 = vsub.f32 %v10495_v40, %v12361_v56  ;;  %v10512_v14 = vsub.f32 %v10401_v35, %v836_v1 }
 0x115   :  { %v943_v38 = vand.u32 4294901760, %v942_v28  ;;  %v950_v43 = vand.u32 4294901760, %v949_v19  ;;  %v12436_v1 = vand.u32 4294901760, %v10403_v53  ;;  %v12437_v35 = vand.u32 4294901760, %v10407_v62 }
 0x116   :  { %v936_v59 = vand.u32 4294901760, %v935_v57  ;;  %v956_v57 = vsub.f32 %v10482_v15, %v12359_v24  ;;  %v12365_v42 = vand.u32 4294901760, %v10492_v25  ;;  %v971_v19 = vand.u32 4294901760, %v970_v2 }
 0x117   :  { %8422 = vmatpush3.bf16.msra.mxu1 %v10383_v32  ;;  %v12362_v24 = vand.u32 4294901760, %v10512_v14  ;;  %v10529_v48 = vsub.f32 %v10403_v53, %v12436_v1  ;;  %v12438_v53 = vand.u32 4294901760, %v10410_v11 }
 0x118   :  { %8424 = vmatprep.subr.bf16.mxu1 %v10387_v44  ;;  %v10486_v8 = vpack.c.bf16 %v943_v38, %v936_v59  ;;  %v957_v28 = vand.u32 4294901760, %v956_v57  ;;  %v963_v59 = vsub.f32 %v10492_v25, %v12365_v42  ;;  %v12364_v57 = vand.u32 4294901760, %v10509_v4 }
 0x119   :  { %v984_v0 = vsub.f32 %v10512_v14, %v12362_v24  ;;  %v12363_v2 = vand.u32 4294901760, %v10529_v48  ;;  %v10546_v1 = vsub.f32 %v10410_v11, %v12438_v53 }
 0x11a   :  { %v10514_v46 = vpack.c.bf16 %v957_v28, %v950_v43  ;;  %v964_v38 = vand.u32 4294901760, %v963_v59  ;;  %v977_v56 = vsub.f32 %v10509_v4, %v12364_v57  ;;  %v10534_v43 = vsub.f32 %v10407_v62, %v12437_v35 }
 0x11b   :  { %8426 = vmatpush3.bf16.msra.mxu1 %v10387_v44  ;;  %v985_v59 = vand.u32 4294901760, %v984_v0  ;;  %v991_v24 = vsub.f32 %v10529_v48, %v12363_v2  ;;  %v12439_v62 = vand.u32 4294901760, %v10412_v10 }
 0x11c   :  { %8428 = vmatprep.subr.bf16.mxu1 %v10397_v20  ;;  %v10518_v37 = vpack.c.bf16 %v971_v19, %v964_v38  ;;  %v978_v28 = vand.u32 4294901760, %v977_v56  ;;  %v12368_v38 = vand.u32 4294901760, %v10534_v43 }
 0x11d   :  { %v10551_v56 = vsub.f32 %v10412_v10, %v12439_v62  ;;  %v992_v35 = vand.u32 4294901760, %v991_v24  ;;  %v10570_v24 = vpack.c.bf16 %v10438_v9, %v10436_v5 }
 0x11e   :  { %v10538_v19 = vpack.c.bf16 %v985_v59, %v978_v28  ;;  %v998_v0 = vsub.f32 %v10534_v43, %v12368_v38  ;;  %v12366_v28 = vand.u32 4294901760, %v10546_v1 }
 0x11f   :  { %8430 = vmatpush3.bf16.msra.mxu1 %v10397_v20  ;;  %v12367_v59 = vand.u32 4294901760, %v10551_v56 }
 0x120   :  { %8432 = vmatprep.subr.bf16.mxu1 %v10417_v60  ;;  %v999_v2 = vand.u32 4294901760, %v998_v0  ;;  %v1005_v11 = vsub.f32 %v10546_v1, %v12366_v28  ;;  %v10574_v0 = vpack.c.bf16 %v10452_v27, %v10450_v23  ;;  %v10578_v28 = vpack.c.bf16 %v10467_v34, %v10465_v18 }
 0x121   :  { %v1012_v53 = vsub.f32 %v10551_v56, %v12367_v59 }
 0x122   :  { %v10564_v10 = vpack.c.bf16 %v999_v2, %v992_v35  ;;  %v1006_v62 = vand.u32 4294901760, %v1005_v11  ;;  %v10582_v2 = vpack.c.bf16 %v10482_v15, %v10480_v29  ;;  %v10590_v35 = vpack.c.bf16 %v10512_v14, %v10509_v4 }
 0x123   :  { %8434 = vmatpush3.bf16.msra.mxu1 %v10417_v60  ;;  %v1013_v57 = vand.u32 4294901760, %v1012_v53  ;;  %v10594_v11 = vpack.c.bf16 %v10534_v43, %v10529_v48  ;;  %v10598_v53 = vpack.c.bf16 %v10551_v56, %v10546_v1 }
 0x124   :  { %8436 = vmatprep.subr.bf16.mxu1 %v10423_v58 }
 0x125   :  { %v10566_v42 = vpack.c.bf16 %v1013_v57, %v1006_v62  ;;  %v10586_v57 = vpack.c.bf16 %v10495_v40, %v10492_v25 }
 0x127   :  { %8438 = vmatpush3.bf16.msra.mxu1 %v10423_v58 }
 0x128   :  { %8440 = vmatprep.subr.bf16.mxu1 %v10434_v7 }
 0x12b   :  { %8442 = vmatpush3.bf16.msra.mxu1 %v10434_v7 }
 0x12c   :  { %8444 = vmatprep.subr.bf16.mxu1 %v10457_v13 }
 0x1e1   :  { %v747_v62 = vpop.f32.mrb[0].mxu1 }
 0x1e2   :  { %v751_v59 = vmul.f32 %v747_v62, %v747_v62  ;;  %v6796_v38 = vpop.f32.mrb[1].mxu1  ;;  %v761_v41 = vrot.slane %v747_v62, %v10603_v50 }
 0x1e4   :  { %v753_v30 = vrot.slane %v751_v59, 7  ;;  %v762_v38 = vsub.f32 %v10057_v16, %v761_v41 }
 0x1e6   :  { %v755_v52 = vsub.f32 %v747_v62, %v753_v30  ;;  %v763_v30 = vsub.f32 %v10059_v17, %v761_v41 }
 0x1e8   :  { %v756_v12 = vadd.f32 1e-05, %v755_v52 }
 0x1ea   :  { %9809 = vrsqrt.f32 %v756_v12  ;;  %v777_v12 = vrot.slane %v73_v47, %v776_v54 }
 0x1f4   :  { %v9810_v49 = vpop.eup %9809 }
 0x1f5   :  { %v765_v55 = vrot.slane %v9810_v49, 1 }
 0x1f7   :  { %v767_v36 = vmul.f32 %v765_v55, %v73_v47 }
 0x1f9   :  { %v771_v52 = vrot.slane %v767_v36, %v10603_v50 }
 0x1fb   :  { %v772_v63 = vmul.f32 %v771_v52, %v762_v38  ;;  %v773_v59 = vmul.f32 %v771_v52, %v763_v30 }
 0x1fd   :  { %v778_v21 = vadd.f32 %v777_v12, %v772_v63  ;;  %v779_v45 = vadd.f32 %v777_v12, %v773_v59  ;;  %v1501_v63 = vld [vmem:[#allocation9 + $0xb0] sm:$0xff]  ;;  %v1502_v59 = vld [vmem:[#allocation9 + $0xb8] sm:$0xff] }
 0x1ff   :  { %v10610_v6 = vmax.f32 %v778_v21, 0.0  ;;  %v10612_v39 = vmax.f32 %v779_v45, 0.0 }
 0x201   :  { %782 = vst [vmem:[#allocation2 + $0x1] sm:$0xff] %v10610_v6  ;;  %783 = vst [vmem:[#allocation2 + $0x9] sm:$0xff] %v10612_v39 }
 0x208   :  { %v784_v55 = vld [vmem:[#allocation2] sm:$0xff]  ;;  %v785_v49 = vld [vmem:[#allocation2 + $0x8] sm:$0xff] }
 0x209   :  { %v10616_v16 = vand.u32 4294901760, %v784_v55  ;;  %v10618_v17 = vand.u32 4294901760, %v785_v49 }
 0x20b   :  { %v884_v36 = vsub.f32 %v784_v55, %v10616_v16  ;;  %v10622_v54 = vsub.f32 %v785_v49, %v10618_v17  ;;  %v1530_v49 = vand.u32 4294901760, %v1501_v63 }
 0x20d   :  { %v885_v41 = vand.u32 4294901760, %v884_v36  ;;  %v895_v21 = vand.u32 4294901760, %v10622_v54 }
 0x20f   :  { %v886_v45 = vsub.f32 %v884_v36, %v885_v41  ;;  %v896_v47 = vsub.f32 %v10622_v54, %v895_v21 }
 0x211   :  { %v887_v62 = vand.u32 4294901760, %v886_v45  ;;  %v897_v38 = vand.u32 4294901760, %v896_v47  ;;  %v10754_v45 = vld [vmem:[#allocation9 + $0xd8] sm:$0xff]  ;;  %v10757_v47 = vld [vmem:[#allocation9 + $0xe0] sm:$0xff] }
 0x213   :  { %6829 = vmatprep.mubr.f32.mxu1 %v887_v62  ;;  %v10759_v62 = vld [vmem:[#allocation9 + $0xe8] sm:$0xff] }
 0x214   :  { %6830 = vmatmul.mubr.f32.vlgmr.msra.gmra.mrb[2].mxu1 %v897_v38 }
 0x215   :  { %8446 = vmatpush3.bf16.msra.mxu1 %v10457_v13  ;;  %6864 = vmatprep.mubr.f32.mxu1 %v10616_v16  ;;  %v12440_v13 = vand.u32 4294901760, %v10436_v5  ;;  %v12445_v5 = vand.u32 4294901760, %v10467_v34  ;;  %v12451_v34 = vand.u32 4294901760, %v10512_v14  ;;  %v1496_v14 = vld [vmem:[#allocation9 + $0x88] sm:$0xff] }
 0x216   :  { %8448 = vmatprep.subr.bf16.mxu1 %v10472_v31 }
 0x219   :  { %8450 = vmatpush3.bf16.msra.mxu1 %v10472_v31  ;;  %v12441_v31 = vand.u32 4294901760, %v10438_v9  ;;  %v12446_v9 = vand.u32 4294901760, %v10480_v29  ;;  %v12452_v29 = vand.u32 4294901760, %v10529_v48 }
 0x21a   :  { %8452 = vmatprep.subr.bf16.mxu1 %v10486_v8 }
 0x21d   :  { %8454 = vmatpush3.bf16.msra.mxu1 %v10486_v8  ;;  %v12442_v8 = vand.u32 4294901760, %v10450_v23 }
 0x21e   :  { %8456 = vmatprep.subr.bf16.mxu1 %v10514_v46 }
 0x221   :  { %8458 = vmatpush3.bf16.msra.mxu1 %v10514_v46 }
 0x222   :  { %8460 = vmatprep.subr.bf16.mxu1 %v10518_v37 }
 0x225   :  { %8462 = vmatpush3.bf16.msra.mxu1 %v10518_v37  ;;  %v8539_v37 = vpack.c.bf16 %v12441_v31, %v12440_v13 }
 0x226   :  { %8464 = vmatprep.subr.bf16.mxu1 %v10538_v19 }
 0x229   :  { %8466 = vmatpush3.bf16.msra.mxu1 %v10538_v19  ;;  %v12444_v19 = vand.u32 4294901760, %v10465_v18  ;;  %v12450_v18 = vand.u32 4294901760, %v10509_v4  ;;  %v10721_v4 = vand.u32 4294901760, %v10610_v6 }
 0x22a   :  { %8468 = vmatprep.subr.bf16.mxu1 %v10564_v10 }
 0x22d   :  { %8470 = vmatpush3.bf16.msra.mxu1 %v10564_v10  ;;  %v12447_v10 = vand.u32 4294901760, %v10482_v15  ;;  %v12453_v15 = vand.u32 4294901760, %v10534_v43  ;;  %v1497_v43 = vld [vmem:[#allocation9 + $0x90] sm:$0xff] }
 0x22e   :  { %8472 = vmatprep.subr.bf16.mxu1 %v10566_v42 }
 0x22f   :  { %v8551_v23 = vpack.c.bf16 %v12447_v10, %v12446_v9  ;;  %v10781_v10 = vld [vmem:[#allocation9 + $0xf0] sm:$0xff] }
 0x231   :  { %8474 = vmatpush3.bf16.msra.mxu1 %v10566_v42  ;;  %v12443_v42 = vand.u32 4294901760, %v10452_v27  ;;  %v12448_v27 = vand.u32 4294901760, %v10492_v25  ;;  %v12454_v25 = vand.u32 4294901760, %v10546_v1  ;;  %v1498_v1 = vld [vmem:[#allocation9 + $0x98] sm:$0xff] }
 0x232   :  { %8476 = vmatprep.subr.bf16.mxu1 %v10570_v24 }
 0x233   :  { %v8543_v46 = vpack.c.bf16 %v12443_v42, %v12442_v8  ;;  %v1545_v8 = vand.u32 4294901760, %v10754_v45  ;;  %v1548_v42 = vand.u32 4294901760, %v10757_v47 }
 0x234   :  { %6865 = vmatmul.mubr.f32.vlgmr.msra.gmra.mrb[2].mxu1 %v10618_v17 }
 0x235   :  { %8478 = vmatpush3.bf16.msra.mxu1 %v10570_v24  ;;  %6899 = vmatprep.mubr.f32.mxu1 %v884_v36  ;;  %v12449_v24 = vand.u32 4294901760, %v10495_v40  ;;  %v12455_v40 = vand.u32 4294901760, %v10551_v56  ;;  %v1518_v56 = vand.u32 4294901760, %v1497_v43  ;;  %v1504_v36 = vld [vmem:[#allocation9 + $0xc8] sm:$0xff] }
 0x236   :  { %8480 = vmatprep.subr.bf16.mxu1 %v10574_v0 }
 0x239   :  { %8482 = vmatpush3.bf16.msra.mxu1 %v10574_v0  ;;  %v8555_v0 = vpack.c.bf16 %v12449_v24, %v12448_v27  ;;  %v10785_v27 = vsub.f32 %v1497_v43, %v1518_v56 }
 0x23a   :  { %8484 = vmatprep.subr.bf16.mxu1 %v10578_v28 }
 0x23d   :  { %8486 = vmatpush3.bf16.msra.mxu1 %v10578_v28  ;;  %v8547_v28 = vpack.c.bf16 %v12445_v5, %v12444_v19  ;;  %v10773_v19 = vand.u32 4294901760, %v10612_v39 }
 0x23e   :  { %8488 = vmatprep.subr.bf16.mxu1 %v10582_v2 }
 0x241   :  { %8490 = vmatpush3.bf16.msra.mxu1 %v10582_v2  ;;  %v8559_v2 = vpack.c.bf16 %v12451_v34, %v12450_v18  ;;  %v10797_v18 = vsub.f32 %v10612_v39, %v10773_v19  ;;  %v1554_v34 = vand.u32 4294901760, %v10781_v10 }
 0x242   :  { %8492 = vmatprep.subr.bf16.mxu1 %v10586_v57 }
 0x245   :  { %8494 = vmatpush3.bf16.msra.mxu1 %v10586_v57  ;;  %v8563_v57 = vpack.c.bf16 %v12453_v15, %v12452_v29 }
 0x246   :  { %8496 = vmatprep.subr.bf16.mxu1 %v10590_v35 }
 0x249   :  { %8498 = vmatpush3.bf16.msra.mxu1 %v10590_v35  ;;  %v8567_v35 = vpack.c.bf16 %v12455_v40, %v12454_v25 }
 0x24a   :  { %8500 = vmatprep.subr.bf16.mxu1 %v10594_v11 }
 0x24d   :  { %8502 = vmatpush3.bf16.msra.mxu1 %v10594_v11  ;;  %v1521_v11 = vand.u32 4294901760, %v1498_v1 }
 0x24e   :  { %8504 = vmatprep.subr.bf16.mxu1 %v10598_v53 }
 0x24f   :  { %v10741_v30 = vpack.c.bf16 %v1521_v11, %v1518_v56  ;;  %v10787_v24 = vsub.f32 %v1498_v1, %v1521_v11 }
 0x251   :  { %8506 = vmatpush3.bf16.msra.mxu1 %v10598_v53  ;;  %v1500_v53 = vld [vmem:[#allocation9 + $0xa8] sm:$0xff]  ;;  %v1636_v39 = vand.u32 4294901760, %v10787_v24 }
 0x252   :  { %8508 = vmatprep.subr.bf16.mxu1 %v10375_v33 }
 0x253   :  { %v1637_v56 = vsub.f32 %v10787_v24, %v1636_v39 }
 0x254   :  { %6900 = vmatmul.mubr.f32.vlgmr.msra.gmra.mrb[2].mxu1 %v10622_v54 }
 0x255   :  { %8510 = vmatpush3.bf16.msra.mxu1 %v10375_v33  ;;  %6934 = vmatprep.mubr.f32.mxu1 %v885_v41 }
 0x256   :  { %8512 = vmatprep.subr.bf16.mxu1 %v10379_v26 }
 0x259   :  { %8514 = vmatpush3.bf16.msra.mxu1 %v10379_v26 }
 0x25a   :  { %8516 = vmatprep.subr.bf16.mxu1 %v10383_v32 }
 0x25d   :  { %8518 = vmatpush3.bf16.msra.mxu1 %v10383_v32 }
 0x25e   :  { %8520 = vmatprep.subr.bf16.mxu1 %v10387_v44 }
 0x261   :  { %8522 = vmatpush3.bf16.msra.mxu1 %v10387_v44 }
 0x262   :  { %8524 = vmatprep.subr.bf16.mxu1 %v10397_v20 }
 0x265   :  { %8526 = vmatpush3.bf16.msra.mxu1 %v10397_v20 }
 0x266   :  { %8528 = vmatprep.subr.bf16.mxu1 %v10417_v60 }
 0x269   :  { %8530 = vmatpush3.bf16.msra.mxu1 %v10417_v60 }
 0x26a   :  { %8532 = vmatprep.subr.bf16.mxu1 %v10423_v58 }
 0x26d   :  { %8534 = vmatpush3.bf16.msra.mxu1 %v10423_v58 }
 0x26e   :  { %8536 = vmatprep.subr.bf16.mxu1 %v10434_v7 }
 0x271   :  { %8538 = vmatpush3.bf16.msra.mxu1 %v10434_v7 }
 0x272   :  { %8540 = vmatprep.subr.bf16.mxu1 %v8539_v37 }
 0x274   :  { %6935 = vmatmul.mubr.f32.vlgmr.msra.gmra.mrb[2].mxu1 %v895_v21  ;;  %v1539_v21 = vand.u32 4294901760, %v1504_v36 }
 0x275   :  { %8542 = vmatpush3.bf16.msra.mxu1 %v8539_v37  ;;  %6969 = vmatprep.mubr.f32.mxu1 %v10616_v16 }
 0x276   :  { %8544 = vmatprep.subr.bf16.mxu1 %v8543_v46 }
 0x279   :  { %8546 = vmatpush3.bf16.msra.mxu1 %v8543_v46  ;;  %v1551_v46 = vand.u32 4294901760, %v10759_v62 }
 0x27a   :  { %8548 = vmatprep.subr.bf16.mxu1 %v8547_v28 }
 0x27d   :  { %8550 = vmatpush3.bf16.msra.mxu1 %v8547_v28 }
 0x27e   :  { %8552 = vmatprep.subr.bf16.mxu1 %v8551_v23 }
 0x281   :  { %8554 = vmatpush3.bf16.msra.mxu1 %v8551_v23  ;;  %v10783_v23 = vld [vmem:[#allocation9 + $0xf8] sm:$0xff] }
 0x282   :  { %8556 = vmatprep.subr.bf16.mxu1 %v8555_v0 }
 0x285   :  { %8558 = vmatpush3.bf16.msra.mxu1 %v8555_v0  ;;  %v10793_v0 = vpack.c.bf16 %v1551_v46, %v1548_v42 }
 0x286   :  { %8560 = vmatprep.subr.bf16.mxu1 %v8559_v2 }
 0x289   :  { %8562 = vmatpush3.bf16.msra.mxu1 %v8559_v2  ;;  %v1557_v2 = vand.u32 4294901760, %v10783_v23 }
 0x28a   :  { %8564 = vmatprep.subr.bf16.mxu1 %v8563_v57 }
 0x28d   :  { %8566 = vmatpush3.bf16.msra.mxu1 %v8563_v57  ;;  %v1629_v57 = vand.u32 4294901760, %v10785_v27 }
 0x28e   :  { %8568 = vmatprep.subr.bf16.mxu1 %v8567_v35 }
 0x28f   :  { %v1630_v1 = vsub.f32 %v10785_v27, %v1629_v57 }
 0x291   :  { %8570 = vmatpush3.bf16.msra.mxu1 %v8567_v35  ;;  %v10815_v35 = vsub.f32 %v1501_v63, %v1530_v49  ;;  %v10844_v63 = vsub.f32 %v1504_v36, %v1539_v21 }
 0x292   :  { %8572 = vmatprep.subr.bf16.mxu1 %v10375_v33 }
 0x294   :  { %6970 = vmatmul.mubr.f32.vlgmr.msra.gmra.mrb[2].mxu1 %v10618_v17 }
 0x295   :  { %8574 = vmatpush3.bf16.msra.mxu1 %v10375_v33  ;;  %7004 = vmatprep.mubr.f32.mxu1 %v10616_v16  ;;  %v1495_v33 = vld [vmem:[#allocation9 + $0x80] sm:$0xff] }
 0x296   :  { %8576 = vmatprep.subr.bf16.mxu1 %v10379_v26  ;;  %v1503_v16 = vld [vmem:[#allocation9 + $0xc0] sm:$0xff] }
 0x297   :  { %v1536_v41 = vand.u32 4294901760, %v1503_v16 }
 0x299   :  { %8578 = vmatpush3.bf16.msra.mxu1 %v10379_v26  ;;  %v10727_v26 = vsub.f32 %v10610_v6, %v10721_v4  ;;  %v1499_v6 = vld [vmem:[#allocation9 + $0xa0] sm:$0xff]  ;;  %v10766_v31 = vpack.c.bf16 %v1539_v21, %v1536_v41 }
 0x29a   :  { %8580 = vmatprep.subr.bf16.mxu1 %v10383_v32  ;;  %v1524_v52 = vand.u32 4294901760, %v1499_v6 }
 0x29b   :  { %v1594_v48 = vand.u32 4294901760, %v10727_v26 }
 0x29c   :  { %v10811_v25 = vsub.f32 %v1499_v6, %v1524_v52  ;;  %v12386_v6 = vand.u32 4294901760, %v10815_v35 }
 0x29d   :  { %8582 = vmatpush3.bf16.msra.mxu1 %v10383_v32  ;;  %v1512_v32 = vand.u32 4294901760, %v1495_v33 }
 0x29e   :  { %8584 = vmatprep.subr.bf16.mxu1 %v10387_v44  ;;  %v12389_v11 = vand.u32 4294901760, %v10811_v25 }
 0x29f   :  { %v10761_v38 = vsub.f32 %v1495_v33, %v1512_v32 }
 0x2a1   :  { %8586 = vmatpush3.bf16.msra.mxu1 %v10387_v44  ;;  %v1515_v44 = vand.u32 4294901760, %v1496_v14  ;;  %v1615_v5 = vand.u32 4294901760, %v10761_v38 }
 0x2a2   :  { %8588 = vmatprep.subr.bf16.mxu1 %v10397_v20 }
 0x2a3   :  { %v10763_v13 = vsub.f32 %v1496_v14, %v1515_v44  ;;  %v1616_v29 = vsub.f32 %v10761_v38, %v1615_v5  ;;  %v10824_v14 = vpack.c.bf16 %v1557_v2, %v1554_v34 }
 0x2a5   :  { %8590 = vmatpush3.bf16.msra.mxu1 %v10397_v20  ;;  %v10734_v20 = vpack.c.bf16 %v1515_v44, %v1512_v32  ;;  %v1622_v28 = vand.u32 4294901760, %v10763_v13  ;;  %v1604_v32 = vand.u32 4294901760, %v10797_v18  ;;  %v1617_v44 = vand.u32 4294901760, %v1616_v29 }
 0x2a6   :  { %8592 = vmatprep.subr.bf16.mxu1 %v10417_v60 }
 0x2a7   :  { %v1623_v15 = vsub.f32 %v10763_v13, %v1622_v28 }
 0x2a9   :  { %8594 = vmatpush3.bf16.msra.mxu1 %v10417_v60  ;;  %v1595_v60 = vsub.f32 %v10727_v26, %v1594_v48  ;;  %v1624_v43 = vand.u32 4294901760, %v1623_v15  ;;  %v1658_v15 = vsub.f32 %v10815_v35, %v12386_v6 }
 0x2aa   :  { %8596 = vmatprep.subr.bf16.mxu1 %v10423_v58 }
 0x2ab   :  { %v1596_v12 = vand.u32 4294901760, %v1595_v60 }
 0x2ad   :  { %8598 = vmatpush3.bf16.msra.mxu1 %v10423_v58  ;;  %v1527_v58 = vand.u32 4294901760, %v1500_v53 }
 0x2ae   :  { %8600 = vmatprep.subr.bf16.mxu1 %v10434_v7 }
 0x2af   :  { %v10746_v55 = vpack.c.bf16 %v1527_v58, %v1524_v52  ;;  %v10813_v40 = vsub.f32 %v1500_v53, %v1527_v58  ;;  %v1605_v52 = vsub.f32 %v10797_v18, %v1604_v32  ;;  %v8635_v58 = vpack.c.bf16 %v1624_v43, %v1617_v44 }
 0x2b0   :  { %v10866_v44 = vsub.f32 %v10754_v45, %v1545_v8 }
 0x2b1   :  { %8602 = vmatpush3.bf16.msra.mxu1 %v10434_v7  ;;  %v1533_v7 = vand.u32 4294901760, %v1502_v59  ;;  %v12387_v60 = vand.u32 4294901760, %v10813_v40  ;;  %v1606_v43 = vand.u32 4294901760, %v1605_v52  ;;  %v10880_v52 = vsub.f32 %v10757_v47, %v1548_v42 }
 0x2b2   :  { %8604 = vmatprep.subr.bf16.mxu1 %v10734_v20 }
 0x2b3   :  { %v10750_v54 = vpack.c.bf16 %v1533_v7, %v1530_v49  ;;  %v10817_v33 = vsub.f32 %v1502_v59, %v1533_v7  ;;  %v1631_v59 = vand.u32 4294901760, %v1630_v1  ;;  %v1638_v49 = vand.u32 4294901760, %v1637_v56 }
 0x2b4   :  { %7005 = vmatmul.mubr.f32.vlgmr.msra.gmra.mrb[2].mxu1 %v10618_v17  ;;  %v10752_v17 = vld [vmem:[#allocation9 + $0xd0] sm:$0xff]  ;;  %v1644_v7 = vsub.f32 %v10811_v25, %v12389_v11  ;;  %v1651_v29 = vsub.f32 %v10813_v40, %v12387_v60  ;;  %v1659_v60 = vand.u32 4294901760, %v1658_v15  ;;  %v1699_v47 = vand.u32 4294901760, %v10880_v52 }
 0x2b5   :  { %8606 = vmatpush3.bf16.msra.mxu1 %v10734_v20  ;;  %7039 = vmatprep.mubr.f32.mxu1 %v1596_v12  ;;  %v1542_v37 = vand.u32 4294901760, %v10752_v17  ;;  %v12388_v53 = vand.u32 4294901760, %v10817_v33  ;;  %v10842_v12 = vsub.f32 %v1503_v16, %v1536_v41  ;;  %v1678_v41 = vand.u32 4294901760, %v10844_v63 }
 0x2b6   :  { %8608 = vmatprep.subr.bf16.mxu1 %v10741_v30  ;;  %v8639_v1 = vpack.c.bf16 %v1638_v49, %v1631_v59  ;;  %v1645_v56 = vand.u32 4294901760, %v1644_v7  ;;  %v1652_v6 = vand.u32 4294901760, %v1651_v29  ;;  %v1700_v15 = vsub.f32 %v10880_v52, %v1699_v47 }
 0x2b7   :  { %v10779_v9 = vpack.c.bf16 %v1545_v8, %v1542_v37  ;;  %v1665_v16 = vsub.f32 %v10817_v33, %v12388_v53  ;;  %v1671_v36 = vand.u32 4294901760, %v10842_v12  ;;  %v10863_v21 = vsub.f32 %v10752_v17, %v1542_v37 }
 0x2b8   :  { %v1679_v17 = vsub.f32 %v10844_v63, %v1678_v41  ;;  %v1692_v37 = vand.u32 4294901760, %v10866_v44  ;;  %v8643_v8 = vpack.c.bf16 %v1652_v6, %v1645_v56 }
 0x2b9   :  { %8610 = vmatpush3.bf16.msra.mxu1 %v10741_v30  ;;  %v1666_v53 = vand.u32 4294901760, %v1665_v16  ;;  %v1672_v11 = vsub.f32 %v10842_v12, %v1671_v36  ;;  %v1685_v45 = vand.u32 4294901760, %v10863_v21 }
 0x2ba   :  { %8612 = vmatprep.subr.bf16.mxu1 %v10746_v55  ;;  %v1680_v7 = vand.u32 4294901760, %v1679_v17  ;;  %v1693_v6 = vsub.f32 %v10866_v44, %v1692_v37 }
 0x2bb   :  { %v8647_v59 = vpack.c.bf16 %v1666_v53, %v1659_v60  ;;  %v1673_v49 = vand.u32 4294901760, %v1672_v11  ;;  %v1686_v29 = vsub.f32 %v10863_v21, %v1685_v45 }
 0x2bc   :  { %v1694_v53 = vand.u32 4294901760, %v1693_v6  ;;  %v8675_v6 = vpack.c.bf16 %v10813_v40, %v10811_v25 }
 0x2bd   :  { %8614 = vmatpush3.bf16.msra.mxu1 %v10746_v55  ;;  %v8651_v11 = vpack.c.bf16 %v1680_v7, %v1673_v49  ;;  %v1687_v60 = vand.u32 4294901760, %v1686_v29  ;;  %v8667_v7 = vpack.c.bf16 %v10763_v13, %v10761_v38  ;;  %v8671_v29 = vpack.c.bf16 %v10787_v24, %v10785_v27 }
 0x2be   :  { %8616 = vmatprep.subr.bf16.mxu1 %v10750_v54  ;;  %v12456_v38 = vand.u32 4294901760, %v10811_v25  ;;  %v12457_v13 = vand.u32 4294901760, %v10813_v40  ;;  %v12459_v27 = vand.u32 4294901760, %v10817_v33  ;;  %v2197_v40 = vld [vmem:[#allocation2 + $0x2] sm:$0xff] }
 0x2c1   :  { %8618 = vmatpush3.bf16.msra.mxu1 %v10750_v54 }
 0x2c2   :  { %8620 = vmatprep.subr.bf16.mxu1 %v10766_v31 }
 0x2c5   :  { %8622 = vmatpush3.bf16.msra.mxu1 %v10766_v31 }
 0x2c6   :  { %8624 = vmatprep.subr.bf16.mxu1 %v10779_v9 }
 0x2c9   :  { %8626 = vmatpush3.bf16.msra.mxu1 %v10779_v9 }
 0x2ca   :  { %8628 = vmatprep.subr.bf16.mxu1 %v10793_v0 }
 0x2cd   :  { %8630 = vmatpush3.bf16.msra.mxu1 %v10793_v0 }
 0x2ce   :  { %8632 = vmatprep.subr.bf16.mxu1 %v10824_v14 }
 0x2d1   :  { %8634 = vmatpush3.bf16.msra.mxu1 %v10824_v14 }
 0x2d2   :  { %8636 = vmatprep.subr.bf16.mxu1 %v8635_v58 }
 0x2d4   :  { %7040 = vmatmul.mubr.f32.vlgmr.msra.gmra.mrb[2].mxu1 %v1606_v43 }
 0x2d5   :  { %8638 = vmatpush3.bf16.msra.mxu1 %v8635_v58  ;;  %7074 = vmatprep.mubr.f32.mxu1 %v10721_v4  ;;  %v10885_v58 = vsub.f32 %v10759_v62, %v1551_v46  ;;  %v10898_v62 = vsub.f32 %v10781_v10, %v1554_v34  ;;  %v10903_v46 = vsub.f32 %v10783_v23, %v1557_v2  ;;  %v1701_v2 = vand.u32 4294901760, %v1700_v15 }
 0x2d6   :  { %8640 = vmatprep.subr.bf16.mxu1 %v8639_v1  ;;  %v8655_v23 = vpack.c.bf16 %v1694_v53, %v1687_v60  ;;  %v8683_v60 = vpack.c.bf16 %v10844_v63, %v10842_v12  ;;  %v8687_v53 = vpack.c.bf16 %v10866_v44, %v10863_v21  ;;  %v2203_v12 = vld [vmem:[#allocation9 + $0x118] sm:$0xff]  ;;  %v2205_v21 = vld [vmem:[#allocation9 + $0x128] sm:$0xff] }
 0x2d7   :  { %v1706_v42 = vand.u32 4294901760, %v10885_v58  ;;  %v1713_v10 = vand.u32 4294901760, %v10898_v62  ;;  %v1720_v34 = vand.u32 4294901760, %v10903_v46  ;;  %v8691_v15 = vpack.c.bf16 %v10885_v58, %v10880_v52  ;;  %v2206_v52 = vld [vmem:[#allocation9 + $0x130] sm:$0xff] }
 0x2d9   :  { %8642 = vmatpush3.bf16.msra.mxu1 %v8639_v1  ;;  %v1707_v16 = vsub.f32 %v10885_v58, %v1706_v42  ;;  %v1714_v1 = vsub.f32 %v10898_v62, %v1713_v10  ;;  %v1721_v56 = vsub.f32 %v10903_v46, %v1720_v34  ;;  %v8759_v25 = vpack.c.bf16 %v1720_v34, %v1713_v10  ;;  %v2207_v58 = vld [vmem:[#allocation9 + $0x138] sm:$0xff] }
 0x2da   :  { %8644 = vmatprep.subr.bf16.mxu1 %v8643_v8 }
 0x2db   :  { %v1708_v43 = vand.u32 4294901760, %v1707_v16  ;;  %v1722_v49 = vand.u32 4294901760, %v1721_v56  ;;  %v8695_v16 = vpack.c.bf16 %v10903_v46, %v10898_v62  ;;  %v2208_v62 = vld [vmem:[#allocation9 + $0x140] sm:$0xff]  ;;  %v2209_v46 = vld [vmem:[#allocation9 + $0x148] sm:$0xff] }
 0x2dc   :  { %v2241_v34 = vand.u32 4294901760, %v2208_v62  ;;  %v2198_v56 = vld [vmem:[#allocation2 + $0xa] sm:$0xff] }
 0x2dd   :  { %8646 = vmatpush3.bf16.msra.mxu1 %v8643_v8  ;;  %v8659_v17 = vpack.c.bf16 %v1708_v43, %v1701_v2  ;;  %v1715_v8 = vand.u32 4294901760, %v1714_v1  ;;  %v11034_v2 = vld [vmem:[#allocation9 + $0x158] sm:$0xff]  ;;  %v11037_v43 = vld [vmem:[#allocation9 + $0x160] sm:$0xff]  ;;  %v11039_v1 = vld [vmem:[#allocation9 + $0x168] sm:$0xff] }
 0x2de   :  { %8648 = vmatprep.subr.bf16.mxu1 %v8647_v59 }
 0x2e1   :  { %8650 = vmatpush3.bf16.msra.mxu1 %v8647_v59  ;;  %v8663_v59 = vpack.c.bf16 %v1722_v49, %v1715_v8 }
 0x2e2   :  { %8652 = vmatprep.subr.bf16.mxu1 %v8651_v11 }
 0x2e5   :  { %8654 = vmatpush3.bf16.msra.mxu1 %v8651_v11  ;;  %v8679_v11 = vpack.c.bf16 %v10817_v33, %v10815_v35 }
 0x2e6   :  { %8656 = vmatprep.subr.bf16.mxu1 %v8655_v23 }
 0x2e9   :  { %8658 = vmatpush3.bf16.msra.mxu1 %v8655_v23  ;;  %v2244_v23 = vand.u32 4294901760, %v2209_v46 }
 0x2ea   :  { %8660 = vmatprep.subr.bf16.mxu1 %v8659_v17 }
 0x2eb   :  { %v11046_v49 = vpack.c.bf16 %v2244_v23, %v2241_v34 }
 0x2ed   :  { %8662 = vmatpush3.bf16.msra.mxu1 %v8659_v17 }
 0x2ee   :  { %8664 = vmatprep.subr.bf16.mxu1 %v8663_v59 }
 0x2f1   :  { %8666 = vmatpush3.bf16.msra.mxu1 %v8663_v59 }
 0x2f2   :  { %8668 = vmatprep.subr.bf16.mxu1 %v8667_v7 }
 0x2f4   :  { %7075 = vmatmul.mubr.f32.vlgmr.msra.gmra.mrb[2].mxu1 %v10773_v19 }
 0x2f5   :  { %8670 = vmatpush3.bf16.msra.mxu1 %v8667_v7  ;;  %7109 = vmatprep.mubr.f32.mxu1 %v10727_v26  ;;  %v8731_v26 = vpack.c.bf16 %v1622_v28, %v1615_v5  ;;  %v8739_v5 = vpack.c.bf16 %v12457_v13, %v12456_v38  ;;  %v12458_v28 = vand.u32 4294901760, %v10815_v35  ;;  %v11002_v35 = vand.u32 4294901760, %v2197_v40 }
 0x2f6   :  { %8672 = vmatprep.subr.bf16.mxu1 %v8671_v29  ;;  %v2250_v7 = vand.u32 4294901760, %v11034_v2 }
 0x2f7   :  { %v8743_v24 = vpack.c.bf16 %v12459_v27, %v12458_v28 }
 0x2f9   :  { %8674 = vmatpush3.bf16.msra.mxu1 %v8671_v29  ;;  %v2253_v29 = vand.u32 4294901760, %v11037_v43 }
 0x2fa   :  { %8676 = vmatprep.subr.bf16.mxu1 %v8675_v6 }
 0x2fd   :  { %8678 = vmatpush3.bf16.msra.mxu1 %v8675_v6  ;;  %v2256_v6 = vand.u32 4294901760, %v11039_v1 }
 0x2fe   :  { %8680 = vmatprep.subr.bf16.mxu1 %v8679_v11 }
 0x2ff   :  { %v11072_v13 = vpack.c.bf16 %v2256_v6, %v2253_v29 }
 0x301   :  { %8682 = vmatpush3.bf16.msra.mxu1 %v8679_v11  ;;  %v11052_v11 = vand.u32 4294901760, %v2198_v56 }
 0x302   :  { %8684 = vmatprep.subr.bf16.mxu1 %v8683_v60 }
 0x305   :  { %8686 = vmatpush3.bf16.msra.mxu1 %v8683_v60 }
 0x306   :  { %8688 = vmatprep.subr.bf16.mxu1 %v8687_v53 }
 0x309   :  { %8690 = vmatpush3.bf16.msra.mxu1 %v8687_v53 }
 0x30a   :  { %8692 = vmatprep.subr.bf16.mxu1 %v8691_v15 }
 0x30d   :  { %8694 = vmatpush3.bf16.msra.mxu1 %v8691_v15 }
 0x30e   :  { %8696 = vmatprep.subr.bf16.mxu1 %v8695_v16 }
 0x311   :  { %8698 = vmatpush3.bf16.msra.mxu1 %v8695_v16  ;;  %v11060_v16 = vld [vmem:[#allocation9 + $0x170] sm:$0xff] }
 0x312   :  { %8700 = vmatprep.subr.bf16.mxu1 %v10734_v20  ;;  %v2259_v28 = vand.u32 4294901760, %v11060_v16 }
 0x314   :  { %7110 = vmatmul.mubr.f32.vlgmr.msra.gmra.mrb[2].mxu1 %v10797_v18  ;;  %v8747_v18 = vpack.c.bf16 %v1678_v41, %v1671_v36  ;;  %v2226_v36 = vand.u32 4294901760, %v2203_v12  ;;  %v2204_v41 = vld [vmem:[#allocation9 + $0x120] sm:$0xff] }
 0x315   :  { %8702 = vmatpush3.bf16.msra.mxu1 %v10734_v20  ;;  %7144 = vmatprep.mubr.f32.mxu1 %v1594_v48  ;;  %v8735_v48 = vpack.c.bf16 %v1636_v39, %v1629_v57  ;;  %v8751_v57 = vpack.c.bf16 %v1692_v37, %v1685_v45  ;;  %v8755_v39 = vpack.c.bf16 %v1706_v42, %v1699_v47  ;;  %v2229_v45 = vand.u32 4294901760, %v2204_v41 }
 0x316   :  { %8704 = vmatprep.subr.bf16.mxu1 %v10741_v30  ;;  %v2235_v42 = vand.u32 4294901760, %v2206_v52  ;;  %v11066_v38 = vsub.f32 %v2203_v12, %v2226_v36 }
 0x319   :  { %8706 = vmatpush3.bf16.msra.mxu1 %v10741_v30 }
 0x31a   :  { %8708 = vmatprep.subr.bf16.mxu1 %v10746_v55 }
 0x31d   :  { %8710 = vmatpush3.bf16.msra.mxu1 %v10746_v55 }
 0x31e   :  { %8712 = vmatprep.subr.bf16.mxu1 %v10750_v54 }
 0x321   :  { %8714 = vmatpush3.bf16.msra.mxu1 %v10750_v54 }
 0x322   :  { %8716 = vmatprep.subr.bf16.mxu1 %v10766_v31 }
 0x325   :  { %8718 = vmatpush3.bf16.msra.mxu1 %v10766_v31 }
 0x326   :  { %8720 = vmatprep.subr.bf16.mxu1 %v10779_v9 }
 0x329   :  { %8722 = vmatpush3.bf16.msra.mxu1 %v10779_v9 }
 0x32a   :  { %8724 = vmatprep.subr.bf16.mxu1 %v10793_v0 }
 0x32d   :  { %8726 = vmatpush3.bf16.msra.mxu1 %v10793_v0 }
 0x32e   :  { %8728 = vmatprep.subr.bf16.mxu1 %v10824_v14 }
 0x331   :  { %8730 = vmatpush3.bf16.msra.mxu1 %v10824_v14 }
 0x332   :  { %8732 = vmatprep.subr.bf16.mxu1 %v8731_v26 }
 0x334   :  { %7145 = vmatmul.mubr.f32.vlgmr.msra.gmra.mrb[2].mxu1 %v1604_v32  ;;  %v2202_v32 = vld [vmem:[#allocation9 + $0x110] sm:$0xff] }
 0x335   :  { %8734 = vmatpush3.bf16.msra.mxu1 %v8731_v26  ;;  %7179 = vmatprep.mubr.f32.mxu1 %v10721_v4  ;;  %v2223_v63 = vand.u32 4294901760, %v2202_v32  ;;  %v11062_v26 = vld [vmem:[#allocation9 + $0x178] sm:$0xff] }
 0x336   :  { %8736 = vmatprep.subr.bf16.mxu1 %v8735_v48  ;;  %v2262_v27 = vand.u32 4294901760, %v11062_v26 }
 0x337   :  { %v11021_v44 = vpack.c.bf16 %v2226_v36, %v2223_v63 }
 0x339   :  { %8738 = vmatpush3.bf16.msra.mxu1 %v8735_v48  ;;  %v11064_v48 = vsub.f32 %v2202_v32, %v2223_v63 }
 0x33a   :  { %8740 = vmatprep.subr.bf16.mxu1 %v8739_v5 }
 0x33d   :  { %8742 = vmatpush3.bf16.msra.mxu1 %v8739_v5  ;;  %v11075_v5 = vsub.f32 %v2198_v56, %v11052_v11 }
 0x33e   :  { %8744 = vmatprep.subr.bf16.mxu1 %v8743_v24 }
 0x341   :  { %8746 = vmatpush3.bf16.msra.mxu1 %v8743_v24 }
 0x342   :  { %8748 = vmatprep.subr.bf16.mxu1 %v8747_v18 }
 0x345   :  { %8750 = vmatpush3.bf16.msra.mxu1 %v8747_v18 }
 0x346   :  { %8752 = vmatprep.subr.bf16.mxu1 %v8751_v57 }
 0x349   :  { %8754 = vmatpush3.bf16.msra.mxu1 %v8751_v57  ;;  %v2334_v57 = vand.u32 4294901760, %v11064_v48 }
 0x34a   :  { %8756 = vmatprep.subr.bf16.mxu1 %v8755_v39 }
 0x34b   :  { %v2335_v63 = vsub.f32 %v11064_v48, %v2334_v57 }
 0x34d   :  { %8758 = vmatpush3.bf16.msra.mxu1 %v8755_v39  ;;  %v2341_v39 = vand.u32 4294901760, %v11066_v38 }
 0x34e   :  { %8760 = vmatprep.subr.bf16.mxu1 %v8759_v25 }
 0x34f   :  { %v2342_v36 = vsub.f32 %v11066_v38, %v2341_v39 }
 0x351   :  { %8762 = vmatpush3.bf16.msra.mxu1 %v8759_v25  ;;  %v11089_v25 = vsub.f32 %v2204_v41, %v2229_v45 }
 0x352   :  { %8764 = vmatprep.subr.bf16.mxu1 %v10734_v20 }
 0x354   :  { %7180 = vmatmul.mubr.f32.vlgmr.msra.gmra.mrb[2].mxu1 %v10773_v19 }
 0x355   :  { %8766 = vmatpush3.bf16.msra.mxu1 %v10734_v20  ;;  %7214 = vmatprep.mubr.f32.mxu1 %v10721_v4  ;;  %v2200_v4 = vld [vmem:[#allocation9 + $0x100] sm:$0xff]  ;;  %v2201_v20 = vld [vmem:[#allocation9 + $0x108] sm:$0xff] }
 0x356   :  { %8768 = vmatprep.subr.bf16.mxu1 %v10741_v30  ;;  %v2220_v33 = vand.u32 4294901760, %v2201_v20 }
 0x358   :  { %v11043_v8 = vsub.f32 %v2201_v20, %v2220_v33 }
 0x359   :  { %8770 = vmatpush3.bf16.msra.mxu1 %v10741_v30  ;;  %v11007_v30 = vsub.f32 %v2197_v40, %v11002_v35 }
 0x35a   :  { %8772 = vmatprep.subr.bf16.mxu1 %v10746_v55  ;;  %v2327_v53 = vand.u32 4294901760, %v11043_v8 }
 0x35c   :  { %v2328_v18 = vsub.f32 %v11043_v8, %v2327_v53 }
 0x35d   :  { %8774 = vmatpush3.bf16.msra.mxu1 %v10746_v55  ;;  %v2217_v55 = vand.u32 4294901760, %v2200_v4 }
 0x35e   :  { %8776 = vmatprep.subr.bf16.mxu1 %v10750_v54  ;;  %v2329_v12 = vand.u32 4294901760, %v2328_v18 }
 0x35f   :  { %v11041_v17 = vsub.f32 %v2200_v4, %v2217_v55  ;;  %v11093_v4 = vsub.f32 %v2206_v52, %v2235_v42  ;;  %v11120_v52 = vsub.f32 %v2208_v62, %v2241_v34 }
 0x361   :  { %8778 = vmatpush3.bf16.msra.mxu1 %v10750_v54  ;;  %v2299_v54 = vand.u32 4294901760, %v11007_v30  ;;  %v2320_v60 = vand.u32 4294901760, %v11041_v17 }
 0x362   :  { %8780 = vmatprep.subr.bf16.mxu1 %v10766_v31 }
 0x363   :  { %v2321_v24 = vsub.f32 %v11041_v17, %v2320_v60 }
 0x365   :  { %8782 = vmatpush3.bf16.msra.mxu1 %v10766_v31  ;;  %v11014_v31 = vpack.c.bf16 %v2220_v33, %v2217_v55  ;;  %v11102_v55 = vpack.c.bf16 %v2262_v27, %v2259_v28  ;;  %v2309_v33 = vand.u32 4294901760, %v11075_v5  ;;  %v2322_v32 = vand.u32 4294901760, %v2321_v24 }
 0x366   :  { %8784 = vmatprep.subr.bf16.mxu1 %v10779_v9 }
 0x369   :  { %8786 = vmatpush3.bf16.msra.mxu1 %v10779_v9  ;;  %v2300_v9 = vsub.f32 %v11007_v30, %v2299_v54 }
 0x36a   :  { %8788 = vmatprep.subr.bf16.mxu1 %v10793_v0 }
 0x36b   :  { %v2301_v37 = vand.u32 4294901760, %v2300_v9  ;;  %v12393_v9 = vand.u32 4294901760, %v11089_v25 }
 0x36d   :  { %8790 = vmatpush3.bf16.msra.mxu1 %v10793_v0  ;;  %v2232_v0 = vand.u32 4294901760, %v2205_v21  ;;  %v2349_v56 = vsub.f32 %v11089_v25, %v12393_v9 }
 0x36e   :  { %8792 = vmatprep.subr.bf16.mxu1 %v10824_v14 }
 0x36f   :  { %v11026_v47 = vpack.c.bf16 %v2232_v0, %v2229_v45  ;;  %v11091_v40 = vsub.f32 %v2205_v21, %v2232_v0  ;;  %v12390_v21 = vand.u32 4294901760, %v11093_v4  ;;  %v2310_v0 = vsub.f32 %v11075_v5, %v2309_v33 }
 0x371   :  { %8794 = vmatpush3.bf16.msra.mxu1 %v10824_v14  ;;  %v2238_v14 = vand.u32 4294901760, %v2207_v58  ;;  %v12391_v41 = vand.u32 4294901760, %v11091_v40  ;;  %v2363_v18 = vsub.f32 %v11093_v4, %v12390_v21 }
 0x372   :  { %8796 = vmatprep.subr.bf16.mxu1 %v11014_v31 }
 0x373   :  { %v11030_v10 = vpack.c.bf16 %v2238_v14, %v2235_v42  ;;  %v11095_v20 = vsub.f32 %v2207_v58, %v2238_v14  ;;  %v11122_v58 = vsub.f32 %v2209_v46, %v2244_v23  ;;  %v2336_v42 = vand.u32 4294901760, %v2335_v63 }
 0x374   :  { %7215 = vmatmul.mubr.f32.vlgmr.msra.gmra.mrb[2].mxu1 %v10773_v19  ;;  %v11032_v19 = vld [vmem:[#allocation9 + $0x150] sm:$0xff]  ;;  %v2343_v14 = vand.u32 4294901760, %v2342_v36  ;;  %v2356_v24 = vsub.f32 %v11091_v40, %v12391_v41  ;;  %v2376_v46 = vand.u32 4294901760, %v11120_v52  ;;  %v2350_v36 = vand.u32 4294901760, %v2349_v56 }
 0x375   :  { %8798 = vmatpush3.bf16.msra.mxu1 %v11014_v31  ;;  %7249 = vmatprep.mubr.f32.mxu1 %v2301_v37  ;;  %v2247_v59 = vand.u32 4294901760, %v11032_v19  ;;  %v12392_v45 = vand.u32 4294901760, %v11095_v20  ;;  %v8827_v37 = vpack.c.bf16 %v2329_v12, %v2322_v32  ;;  %v2383_v34 = vand.u32 4294901760, %v11122_v58 }
 0x376   :  { %8800 = vmatprep.subr.bf16.mxu1 %v11021_v44  ;;  %v11144_v32 = vsub.f32 %v11034_v2, %v2250_v7  ;;  %v2311_v12 = vand.u32 4294901760, %v2310_v0  ;;  %v8831_v63 = vpack.c.bf16 %v2343_v14, %v2336_v42  ;;  %v2357_v21 = vand.u32 4294901760, %v2356_v24 }
 0x377   :  { %v11058_v15 = vpack.c.bf16 %v2250_v7, %v2247_v59  ;;  %v2370_v62 = vsub.f32 %v11095_v20, %v12392_v45  ;;  %v11141_v23 = vsub.f32 %v11032_v19, %v2247_v59  ;;  %v2364_v41 = vand.u32 4294901760, %v2363_v18 }
 0x378   :  { %v2377_v9 = vsub.f32 %v11120_v52, %v2376_v46  ;;  %v2384_v19 = vsub.f32 %v11122_v58, %v2383_v34  ;;  %v2397_v59 = vand.u32 4294901760, %v11144_v32  ;;  %v8835_v7 = vpack.c.bf16 %v2357_v21, %v2350_v36 }
 0x379   :  { %8802 = vmatpush3.bf16.msra.mxu1 %v11021_v44  ;;  %v2371_v45 = vand.u32 4294901760, %v2370_v62  ;;  %v2390_v2 = vand.u32 4294901760, %v11141_v23  ;;  %v11158_v0 = vsub.f32 %v11037_v43, %v2253_v29 }
 0x37a   :  { %8804 = vmatprep.subr.bf16.mxu1 %v11026_v47  ;;  %v2378_v14 = vand.u32 4294901760, %v2377_v9  ;;  %v2385_v56 = vand.u32 4294901760, %v2384_v19  ;;  %v2398_v21 = vsub.f32 %v11144_v32, %v2397_v59 }
 0x37b   :  { %v8839_v42 = vpack.c.bf16 %v2371_v45, %v2364_v41  ;;  %v2391_v24 = vsub.f32 %v11141_v23, %v2390_v2  ;;  %v2404_v43 = vand.u32 4294901760, %v11158_v0 }
 0x37c   :  { %v8843_v9 = vpack.c.bf16 %v2385_v56, %v2378_v14  ;;  %v2399_v45 = vand.u32 4294901760, %v2398_v21  ;;  %v8859_v56 = vpack.c.bf16 %v11043_v8, %v11041_v17  ;;  %v8867_v21 = vpack.c.bf16 %v11091_v40, %v11089_v25 }
 0x37d   :  { %8806 = vmatpush3.bf16.msra.mxu1 %v11026_v47  ;;  %v2392_v41 = vand.u32 4294901760, %v2391_v24  ;;  %v2405_v18 = vsub.f32 %v11158_v0, %v2404_v43  ;;  %v8863_v24 = vpack.c.bf16 %v11066_v38, %v11064_v48  ;;  %v12460_v17 = vand.u32 4294901760, %v11089_v25 }
 0x37e   :  { %8808 = vmatprep.subr.bf16.mxu1 %v11030_v10  ;;  %v12461_v8 = vand.u32 4294901760, %v11091_v40  ;;  %v12463_v48 = vand.u32 4294901760, %v11095_v20 }
 0x381   :  { %8810 = vmatpush3.bf16.msra.mxu1 %v11030_v10 }
 0x382   :  { %8812 = vmatprep.subr.bf16.mxu1 %v11046_v49 }
 0x385   :  { %8814 = vmatpush3.bf16.msra.mxu1 %v11046_v49 }
 0x386   :  { %8816 = vmatprep.subr.bf16.mxu1 %v11058_v15 }
 0x389   :  { %8818 = vmatpush3.bf16.msra.mxu1 %v11058_v15 }
 0x38a   :  { %8820 = vmatprep.subr.bf16.mxu1 %v11072_v13 }
 0x38d   :  { %8822 = vmatpush3.bf16.msra.mxu1 %v11072_v13 }
 0x38e   :  { %8824 = vmatprep.subr.bf16.mxu1 %v11102_v55 }
 0x391   :  { %8826 = vmatpush3.bf16.msra.mxu1 %v11102_v55 }
 0x392   :  { %8828 = vmatprep.subr.bf16.mxu1 %v8827_v37 }
 0x394   :  { %7250 = vmatmul.mubr.f32.vlgmr.msra.gmra.mrb[2].mxu1 %v2311_v12 }
 0x395   :  { %8830 = vmatpush3.bf16.msra.mxu1 %v8827_v37  ;;  %7284 = vmatprep.mubr.f32.mxu1 %v11002_v35  ;;  %v11163_v37 = vsub.f32 %v11039_v1, %v2256_v6  ;;  %v11176_v1 = vsub.f32 %v11060_v16, %v2259_v28  ;;  %v11181_v6 = vsub.f32 %v11062_v26, %v2262_v27  ;;  %v2406_v27 = vand.u32 4294901760, %v2405_v18 }
 0x396   :  { %8832 = vmatprep.subr.bf16.mxu1 %v8831_v63  ;;  %v8847_v26 = vpack.c.bf16 %v2399_v45, %v2392_v41  ;;  %v8875_v41 = vpack.c.bf16 %v11122_v58, %v11120_v52  ;;  %v8879_v45 = vpack.c.bf16 %v11144_v32, %v11141_v23 }
 0x397   :  { %v2411_v29 = vand.u32 4294901760, %v11163_v37  ;;  %v2418_v16 = vand.u32 4294901760, %v11176_v1  ;;  %v2425_v28 = vand.u32 4294901760, %v11181_v6  ;;  %v8883_v18 = vpack.c.bf16 %v11163_v37, %v11158_v0 }
 0x399   :  { %8834 = vmatpush3.bf16.msra.mxu1 %v8831_v63  ;;  %v2412_v62 = vsub.f32 %v11163_v37, %v2411_v29  ;;  %v2419_v63 = vsub.f32 %v11176_v1, %v2418_v16  ;;  %v2426_v36 = vsub.f32 %v11181_v6, %v2425_v28  ;;  %v8951_v25 = vpack.c.bf16 %v2425_v28, %v2418_v16 }
 0x39a   :  { %8836 = vmatprep.subr.bf16.mxu1 %v8835_v7  ;;  %v12464_v28 = vmov 0.0  }
 0x39b   :  { %v2413_v12 = vand.u32 4294901760, %v2412_v62  ;;  %v2427_v14 = vand.u32 4294901760, %v2426_v36  ;;  %v8887_v62 = vpack.c.bf16 %v11181_v6, %v11176_v1  ;;  %v12472_v36 = vld [vmem:[#allocation38_spill] sm:$0xff] }
 0x39d   :  { %8838 = vmatpush3.bf16.msra.mxu1 %v8835_v7  ;;  %v8851_v19 = vpack.c.bf16 %v2413_v12, %v2406_v27  ;;  %v2420_v7 = vand.u32 4294901760, %v2419_v63  ;;  %v12466_v27 = vld [vmem:[#allocation32_spill] sm:$0xff]  ;;  %v12467_v12 = vld [vmem:[#allocation33_spill] sm:$0xff]  ;;  %v12469_v63 = vld [vmem:[#allocation35_spill] sm:$0xff] }
 0x39e   :  { %8840 = vmatprep.subr.bf16.mxu1 %v8839_v42 }
 0x3a1   :  { %8842 = vmatpush3.bf16.msra.mxu1 %v8839_v42  ;;  %v8855_v42 = vpack.c.bf16 %v2427_v14, %v2420_v7  ;;  %v12474_v7 = vld [vmem:[#allocation40_spill] sm:$0xff]  ;;  %v12475_v14 = vld [vmem:[#allocation41_spill] sm:$0xff] }
 0x3a2   :  { %8844 = vmatprep.subr.bf16.mxu1 %v8843_v9 }
 0x3a5   :  { %8846 = vmatpush3.bf16.msra.mxu1 %v8843_v9  ;;  %v8871_v9 = vpack.c.bf16 %v11095_v20, %v11093_v4 }
 0x3a6   :  { %8848 = vmatprep.subr.bf16.mxu1 %v8847_v26 }
 0x3a9   :  { %8850 = vmatpush3.bf16.msra.mxu1 %v8847_v26  ;;  %v12465_v26 = vmov 0.0|0.0  }
 0x3aa   :  { %8852 = vmatprep.subr.bf16.mxu1 %v8851_v19 }
 0x3ad   :  { %8854 = vmatpush3.bf16.msra.mxu1 %v8851_v19  ;;  %v12473_v19 = vld [vmem:[#allocation39_spill] sm:$0xff] }
 0x3ae   :  { %8856 = vmatprep.subr.bf16.mxu1 %v8855_v42 }
 0x3b1   :  { %8858 = vmatpush3.bf16.msra.mxu1 %v8855_v42  ;;  %v12476_v42 = vld [vmem:[#allocation42_spill] sm:$0xff] }
 0x3b2   :  { %8860 = vmatprep.subr.bf16.mxu1 %v8859_v56 }
 0x3b4   :  { %7285 = vmatmul.mubr.f32.vlgmr.msra.gmra.mrb[2].mxu1 %v11052_v11 }
 0x3b5   :  { %8862 = vmatpush3.bf16.msra.mxu1 %v8859_v56  ;;  %7319 = vmatprep.mubr.f32.mxu1 %v11007_v30  ;;  %v8923_v30 = vpack.c.bf16 %v2327_v53, %v2320_v60  ;;  %v8931_v60 = vpack.c.bf16 %v12461_v8, %v12460_v17  ;;  %v12462_v53 = vand.u32 4294901760, %v11093_v4  ;;  %v12477_v56 = vld [vmem:[#allocation43_spill] sm:$0xff]  ;;  %v12487_v17 = vld [vmem:[#allocation24_spill] sm:$0xff]  ;;  %v12488_v8 = vld [vmem:[#allocation25_spill] sm:$0xff] }
 0x3b6   :  { %8864 = vmatprep.subr.bf16.mxu1 %v8863_v24 }
 0x3b7   :  { %v8935_v38 = vpack.c.bf16 %v12463_v48, %v12462_v53  ;;  %v12490_v53 = vld [vmem:[#allocation27_spill] sm:$0xff]  ;;  %v12491_v48 = vld [vmem:[#allocation28_spill] sm:$0xff] }
 0x3b9   :  { %8866 = vmatpush3.bf16.msra.mxu1 %v8863_v24  ;;  %v12478_v24 = vld [vmem:[#allocation44_spill] sm:$0xff] }
 0x3ba   :  { %8868 = vmatprep.subr.bf16.mxu1 %v8867_v21 }
 0x3bd   :  { %8870 = vmatpush3.bf16.msra.mxu1 %v8867_v21  ;;  %v12479_v21 = vld [vmem:[#allocation16_spill] sm:$0xff] }
 0x3be   :  { %8872 = vmatprep.subr.bf16.mxu1 %v8871_v9 }
 0x3c1   :  { %8874 = vmatpush3.bf16.msra.mxu1 %v8871_v9  ;;  %v12480_v9 = vld [vmem:[#allocation17_spill] sm:$0xff] }
 0x3c2   :  { %8876 = vmatprep.subr.bf16.mxu1 %v8875_v41 }
 0x3c5   :  { %8878 = vmatpush3.bf16.msra.mxu1 %v8875_v41  ;;  %v12481_v41 = vld [vmem:[#allocation18_spill] sm:$0xff] }
 0x3c6   :  { %8880 = vmatprep.subr.bf16.mxu1 %v8879_v45 }
 0x3c9   :  { %8882 = vmatpush3.bf16.msra.mxu1 %v8879_v45  ;;  %v12482_v45 = vld [vmem:[#allocation19_spill] sm:$0xff] }
 0x3ca   :  { %8884 = vmatprep.subr.bf16.mxu1 %v8883_v18 }
 0x3cd   :  { %8886 = vmatpush3.bf16.msra.mxu1 %v8883_v18  ;;  %v12483_v18 = vld [vmem:[#allocation20_spill] sm:$0xff] }
 0x3ce   :  { %8888 = vmatprep.subr.bf16.mxu1 %v8887_v62 }
 0x3d1   :  { %8890 = vmatpush3.bf16.msra.mxu1 %v8887_v62  ;;  %v12484_v62 = vld [vmem:[#allocation21_spill] sm:$0xff] }
 0x3d2   :  { %8892 = vmatprep.subr.bf16.mxu1 %v11014_v31 }
 0x3d4   :  { %7320 = vmatmul.mubr.f32.vlgmr.msra.gmra.mrb[2].mxu1 %v11075_v5  ;;  %v8939_v5 = vpack.c.bf16 %v2383_v34, %v2376_v46 }
 0x3d5   :  { %8894 = vmatpush3.bf16.msra.mxu1 %v11014_v31  ;;  %7354 = vmatprep.mubr.f32.mxu1 %v2299_v54  ;;  %v8927_v54 = vpack.c.bf16 %v2341_v39, %v2334_v57  ;;  %v8943_v57 = vpack.c.bf16 %v2397_v59, %v2390_v2  ;;  %v8947_v39 = vpack.c.bf16 %v2411_v29, %v2404_v43 }
 0x3d6   :  { %8896 = vmatprep.subr.bf16.mxu1 %v11021_v44 }
 0x3d9   :  { %8898 = vmatpush3.bf16.msra.mxu1 %v11021_v44 }
 0x3da   :  { %8900 = vmatprep.subr.bf16.mxu1 %v11026_v47 }
 0x3dd   :  { %8902 = vmatpush3.bf16.msra.mxu1 %v11026_v47 }
 0x3de   :  { %8904 = vmatprep.subr.bf16.mxu1 %v11030_v10 }
 0x3e1   :  { %8906 = vmatpush3.bf16.msra.mxu1 %v11030_v10 }
 0x3e2   :  { %8908 = vmatprep.subr.bf16.mxu1 %v11046_v49 }
 0x3e5   :  { %8910 = vmatpush3.bf16.msra.mxu1 %v11046_v49 }
 0x3e6   :  { %8912 = vmatprep.subr.bf16.mxu1 %v11058_v15 }
 0x3e9   :  { %8914 = vmatpush3.bf16.msra.mxu1 %v11058_v15 }
 0x3ea   :  { %8916 = vmatprep.subr.bf16.mxu1 %v11072_v13 }
 0x3ed   :  { %8918 = vmatpush3.bf16.msra.mxu1 %v11072_v13 }
 0x3ee   :  { %8920 = vmatprep.subr.bf16.mxu1 %v11102_v55 }
 0x3f1   :  { %8922 = vmatpush3.bf16.msra.mxu1 %v11102_v55 }
 0x3f2   :  { %8924 = vmatprep.subr.bf16.mxu1 %v8923_v30 }
 0x3f4   :  { %7355 = vmatmul.mubr.f32.vlgmr.msra.gmra.mrb[2].mxu1 %v2309_v33 }
 0x3f5   :  { %8926 = vmatpush3.bf16.msra.mxu1 %v8923_v30  ;;  %7389 = vmatprep.mubr.f32.mxu1 %v11002_v35  ;;  %v12485_v30 = vld [vmem:[#allocation22_spill] sm:$0xff] }
 0x3f6   :  { %8928 = vmatprep.subr.bf16.mxu1 %v8927_v54 }
 0x3f9   :  { %8930 = vmatpush3.bf16.msra.mxu1 %v8927_v54  ;;  %v12486_v54 = vld [vmem:[#allocation23_spill] sm:$0xff] }
 0x3fa   :  { %8932 = vmatprep.subr.bf16.mxu1 %v8931_v60 }
 0x3fd   :  { %8934 = vmatpush3.bf16.msra.mxu1 %v8931_v60  ;;  %v12489_v60 = vld [vmem:[#allocation26_spill] sm:$0xff] }
 0x3fe   :  { %8936 = vmatprep.subr.bf16.mxu1 %v8935_v38 }
 0x401   :  { %8938 = vmatpush3.bf16.msra.mxu1 %v8935_v38  ;;  %v12492_v38 = vld [vmem:[#allocation29_spill] sm:$0xff] }
 0x402   :  { %8940 = vmatprep.subr.bf16.mxu1 %v8939_v5 }
 0x405   :  { %8942 = vmatpush3.bf16.msra.mxu1 %v8939_v5  ;;  %v12493_v5 = vld [vmem:[#allocation30_spill] sm:$0xff] }
 0x406   :  { %8944 = vmatprep.subr.bf16.mxu1 %v8943_v57 }
 0x409   :  { %8946 = vmatpush3.bf16.msra.mxu1 %v8943_v57  ;;  %v12494_v57 = vld [vmem:[#allocation31_spill] sm:$0xff] }
 0x40a   :  { %8948 = vmatprep.subr.bf16.mxu1 %v8947_v39 }
 0x40d   :  { %8950 = vmatpush3.bf16.msra.mxu1 %v8947_v39  ;;  %v3596_v39 = vld [vmem:[#allocation9 + $0x180] sm:$0xff] }
 0x40e   :  { %8952 = vmatprep.subr.bf16.mxu1 %v8951_v25 }
 0x411   :  { %8954 = vmatpush3.bf16.msra.mxu1 %v8951_v25  ;;  %v3597_v25 = vld [vmem:[#allocation9 + $0x188] sm:$0xff] }
 0x412   :  { %8956 = vmatprep.subr.bf16.mxu1 %v11014_v31 }
 0x414   :  { %7390 = vmatmul.mubr.f32.vlgmr.msra.gmra.mrb[2].mxu1 %v11052_v11 }
 0x415   :  { %8958 = vmatpush3.bf16.msra.mxu1 %v11014_v31  ;;  %7424 = vmatprep.mubr.f32.mxu1 %v11002_v35  ;;  %v1488_v35 = vsub.s32 2, %v10600_v51  ;;  %v11289_v31 = vld [vmem:[#allocation8] sm:$0xff] }
 0x416   :  { %8960 = vmatprep.subr.bf16.mxu1 %v11021_v44 }
 0x419   :  { %8962 = vmatpush3.bf16.msra.mxu1 %v11021_v44  ;;  %v1489_v44 = vrot.slane %v11289_v31, %v1488_v35  ;;  %v3613_v35 = vand.u32 4294901760, %v3596_v39 }
 0x41a   :  { %8964 = vmatprep.subr.bf16.mxu1 %v11026_v47 }
 0x41d   :  { %8966 = vmatpush3.bf16.msra.mxu1 %v11026_v47 }
 0x41e   :  { %8968 = vmatprep.subr.bf16.mxu1 %v11030_v10 }
 0x421   :  { %8970 = vmatpush3.bf16.msra.mxu1 %v11030_v10 }
 0x422   :  { %8972 = vmatprep.subr.bf16.mxu1 %v11046_v49 }
 0x425   :  { %8974 = vmatpush3.bf16.msra.mxu1 %v11046_v49 }
 0x426   :  { %8976 = vmatprep.subr.bf16.mxu1 %v11058_v15 }
 0x429   :  { %8978 = vmatpush3.bf16.msra.mxu1 %v11058_v15 }
 0x42a   :  { %8980 = vmatprep.subr.bf16.mxu1 %v11072_v13 }
 0x42d   :  { %8982 = vmatpush3.bf16.msra.mxu1 %v11072_v13 }
 0x42e   :  { %8984 = vmatprep.subr.bf16.mxu1 %v11102_v55 }
 0x431   :  { %8986 = vmatpush3.bf16.msra.mxu1 %v11102_v55 }
 0x434   :  { %7425 = vmatmul.mubr.f32.vlgmr.msra.gmra.mrb[2].mxu1 %v11052_v11 }
 0x507   :  { %v7426_v47 = vpop.f32.mrb[2].mxu1 }
 0x508   :  { %v11292_v10 = vadd.f32 %v7426_v47, %v1489_v44  ;;  %v2890_v49 = vpop.f32.mrb[3].mxu1 }
 0x509   :  { %v11294_v15 = vadd.f32 %v2890_v49, %v1489_v44  ;;  %v3616_v44 = vand.u32 4294901760, %v3597_v25  ;;  %v3598_v49 = vld [vmem:[#allocation9 + $0x190] sm:$0xff] }
 0x50a   :  { %v2910_v13 = vmul.f32 %v11292_v10, %v11292_v10 }
 0x50b   :  { %v2902_v40 = vadd.f32 %v11294_v15, %v11292_v10  ;;  %v2909_v11 = vmul.f32 %v11294_v15, %v11294_v15  ;;  %v11398_v47 = vpack.c.bf16 %v3616_v44, %v3613_v35 }
 0x50d   :  { %v2903_v4 = vrot.slane %v2902_v40, 4  ;;  %v2911_v20 = vadd.f32 %v2910_v13, %v2909_v11  ;;  %v3599_v13 = vld [vmem:[#allocation9 + $0x198] sm:$0xff] }
 0x50e   :  { %v3622_v11 = vand.u32 4294901760, %v3599_v13 }
 0x50f   :  { %v2904_v55 = vadd.f32 %v2903_v4, %v2902_v40  ;;  %v2912_v33 = vrot.slane %v2911_v20, 4  ;;  %v3619_v40 = vand.u32 4294901760, %v3598_v49 }
 0x511   :  { %v2905_v52 = vrot.slane %v2904_v55, 2  ;;  %v2913_v58 = vadd.f32 %v2912_v33, %v2911_v20  ;;  %v11402_v4 = vpack.c.bf16 %v3622_v11, %v3619_v40  ;;  %v3600_v20 = vld [vmem:[#allocation9 + $0x1a0] sm:$0xff] }
 0x512   :  { %v3625_v33 = vand.u32 4294901760, %v3600_v20 }
 0x513   :  { %v2906_v46 = vadd.f32 %v2905_v52, %v2904_v55  ;;  %v2914_v34 = vrot.slane %v2913_v58, 2  ;;  %v3601_v55 = vld [vmem:[#allocation9 + $0x1a8] sm:$0xff] }
 0x514   :  { %v3628_v52 = vand.u32 4294901760, %v3601_v55 }
 0x515   :  { %v2907_v23 = vrot.slane %v2906_v46, 1  ;;  %v2915_v32 = vadd.f32 %v2914_v34, %v2913_v58  ;;  %v3603_v34 = vld [vmem:[#allocation9 + $0x1b8] sm:$0xff] }
 0x516   :  { %v11406_v58 = vpack.c.bf16 %v3628_v52, %v3625_v33 }
 0x517   :  { %v2916_v2 = vrot.slane %v2915_v32, 1  ;;  %v2908_v59 = vadd.f32 %v2907_v23, %v2906_v46  ;;  %v3602_v46 = vld [vmem:[#allocation9 + $0x1b0] sm:$0xff] }
 0x518   :  { %v3631_v23 = vand.u32 4294901760, %v3602_v46 }
 0x519   :  { %v2917_v0 = vadd.f32 %v2916_v2, %v2915_v32  ;;  %v3634_v32 = vand.u32 4294901760, %v3603_v34 }
 0x51b   :  { %v2918_v37 = vsel %vm108_vm1, %v2908_v59, %v2917_v0  ;;  %v11410_v2 = vpack.c.bf16 %v3634_v32, %v3631_v23  ;;  %v11412_v59 = vld [vmem:[#allocation9 + $0x1c0] sm:$0xff]  ;;  %v11414_v0 = vld [vmem:[#allocation9 + $0x1c8] sm:$0xff] }
 0x51c   :  { %v11303_v43 = vand.u32 4294901760, %v2918_v37 }
 0x51e   :  { %v3001_v29 = vsub.f32 %v2918_v37, %v11303_v43  ;;  %v3637_v37 = vand.u32 4294901760, %v11412_v59 }
 0x520   :  { %v3002_v1 = vand.u32 4294901760, %v3001_v29 }
 0x522   :  { %v3003_v6 = vsub.f32 %v3001_v29, %v3002_v1 }
 0x524   :  { %v3004_v16 = vand.u32 4294901760, %v3003_v6  ;;  %v11424_v6 = vld [vmem:[#allocation9 + $0x1d8] sm:$0xff] }
 0x526   :  { %7460 = vmatmul.mubr.f32.vlgmr.msra.gmra.mrb[0].mxu0 %v3004_v16  ;;  %v11426_v16 = vld [vmem:[#allocation9 + $0x1e0] sm:$0xff] }
 0x527   :  { %9013 = vmatpush3.bf16.msra.mxu0 %v10208_v61  ;;  %7494 = vmatprep.mubr.msk.f32.mxu0 %vm9942_vm0, %v12464_v28  ;;  %v12468_v61 = vld [vmem:[#allocation34_spill] sm:$0xff] }
 0x528   :  { %9014 = vmatprep.subr.bf16.mxu0 %v12465_v26 }
 0x52b   :  { %9016 = vmatpush3.bf16.msra.mxu0 %v10225_v3  ;;  %v12470_v3 = vld [vmem:[#allocation36_spill] sm:$0xff] }
 0x52c   :  { %9017 = vmatprep.subr.bf16.mxu0 %v12465_v26 }
 0x52f   :  { %9019 = vmatpush3.bf16.msra.mxu0 %v10234_v22  ;;  %v12471_v22 = vld [vmem:[#allocation37_spill] sm:$0xff] }
 0x530   :  { %9020 = vmatprep.subr.bf16.mxu0 %v12465_v26 }
 0x533   :  { %9022 = vmatpush3.bf16.msra.mxu0 %v12466_v27  ;;  %v11430_v27 = vld [vmem:[#allocation9 + $0x1e8] sm:$0xff] }
 0x534   :  { %9023 = vmatprep.subr.bf16.mxu0 %v12465_v26 }
 0x537   :  { %9025 = vmatpush3.bf16.msra.mxu0 %v12467_v12  ;;  %v3649_v12 = vand.u32 4294901760, %v11426_v16 }
 0x538   :  { %9026 = vmatprep.subr.bf16.mxu0 %v12465_v26 }
 0x53b   :  { %9028 = vmatpush3.bf16.msra.mxu0 %v12468_v61  ;;  %v11433_v61 = vld [vmem:[#allocation9 + $0x1f0] sm:$0xff] }
 0x53c   :  { %9029 = vmatprep.subr.bf16.mxu0 %v12465_v26 }
 0x53f   :  { %9031 = vmatpush3.bf16.msra.mxu0 %v12469_v63  ;;  %v11435_v63 = vld [vmem:[#allocation9 + $0x1f8] sm:$0xff] }
 0x540   :  { %9032 = vmatprep.subr.bf16.mxu0 %v12465_v26 }
 0x543   :  { %9034 = vmatpush3.bf16.msra.mxu0 %v12470_v3  ;;  %v3652_v3 = vand.u32 4294901760, %v11430_v27 }
 0x544   :  { %9035 = vmatprep.subr.bf16.mxu0 %v12465_v26 }
 0x546   :  { %7495 = vmatmul.mubr.f32.vlgmr.msra.gmra.mrb[0].mxu0 %v11303_v43 }
 0x547   :  { %9037 = vmatpush3.bf16.msra.mxu0 %v12471_v22  ;;  %7529 = vmatprep.mubr.msk.f32.mxu0 %vm9942_vm0, %v12464_v28 }
 0x548   :  { %9038 = vmatprep.subr.bf16.mxu0 %v12465_v26 }
 0x54b   :  { %9040 = vmatpush3.bf16.msra.mxu0 %v12472_v36  ;;  %v11446_v36 = vpack.c.bf16 %v3652_v3, %v3649_v12 }
 0x54c   :  { %9041 = vmatprep.subr.bf16.mxu0 %v12465_v26 }
 0x54f   :  { %9043 = vmatpush3.bf16.msra.mxu0 %v12473_v19  ;;  %v3655_v19 = vand.u32 4294901760, %v11433_v61 }
 0x550   :  { %9044 = vmatprep.subr.bf16.mxu0 %v12465_v26 }
 0x553   :  { %9046 = vmatpush3.bf16.msra.mxu0 %v12474_v7  ;;  %v3658_v7 = vand.u32 4294901760, %v11435_v63 }
 0x554   :  { %9047 = vmatprep.subr.bf16.mxu0 %v12465_v26 }
 0x557   :  { %9049 = vmatpush3.bf16.msra.mxu0 %v12475_v14  ;;  %v11457_v14 = vpack.c.bf16 %v3658_v7, %v3655_v19 }
 0x558   :  { %9050 = vmatprep.subr.bf16.mxu0 %v12465_v26 }
 0x55b   :  { %9052 = vmatpush3.bf16.msra.mxu0 %v12476_v42  ;;  %v11459_v42 = vsub.f32 %v3596_v39, %v3613_v35 }
 0x55c   :  { %9053 = vmatprep.subr.bf16.mxu0 %v12465_v26 }
 0x55f   :  { %9055 = vmatpush3.bf16.msra.mxu0 %v12477_v56  ;;  %v11461_v56 = vsub.f32 %v3597_v25, %v3616_v44 }
 0x560   :  { %9056 = vmatprep.subr.bf16.mxu0 %v12465_v26 }
 0x563   :  { %9058 = vmatpush3.bf16.msra.mxu0 %v12478_v24  ;;  %v3716_v24 = vand.u32 4294901760, %v11459_v42 }
 0x564   :  { %9059 = vmatprep.subr.bf16.mxu0 %v12465_v26 }
 0x566   :  { %7530 = vmatmul.mubr.f32.vlgmr.msra.gmra.mrb[0].mxu0 %v3001_v29 }
 0x567   :  { %9061 = vmatpush3.bf16.msra.mxu0 %v12479_v21  ;;  %7564 = vmatprep.mubr.msk.f32.mxu0 %vm9942_vm0, %v12464_v28 }
 0x568   :  { %9062 = vmatprep.subr.bf16.mxu0 %v12465_v26 }
 0x56b   :  { %9064 = vmatpush3.bf16.msra.mxu0 %v12480_v9 }
 0x56c   :  { %9065 = vmatprep.subr.bf16.mxu0 %v12465_v26 }
 0x56f   :  { %9067 = vmatpush3.bf16.msra.mxu0 %v12481_v41 }
 0x570   :  { %9068 = vmatprep.subr.bf16.mxu0 %v12465_v26 }
 0x573   :  { %9070 = vmatpush3.bf16.msra.mxu0 %v12482_v45 }
 0x574   :  { %9071 = vmatprep.subr.bf16.mxu0 %v12465_v26 }
 0x577   :  { %9073 = vmatpush3.bf16.msra.mxu0 %v12483_v18 }
 0x578   :  { %9074 = vmatprep.subr.bf16.mxu0 %v12465_v26 }
 0x57b   :  { %9076 = vmatpush3.bf16.msra.mxu0 %v12484_v62 }
 0x57c   :  { %9077 = vmatprep.subr.bf16.mxu0 %v12465_v26 }
 0x57f   :  { %9079 = vmatpush3.bf16.msra.mxu0 %v12485_v30 }
 0x580   :  { %9080 = vmatprep.subr.bf16.mxu0 %v12465_v26 }
 0x583   :  { %9082 = vmatpush3.bf16.msra.mxu0 %v12486_v54 }
 0x584   :  { %9083 = vmatprep.subr.bf16.mxu0 %v12465_v26 }
 0x586   :  { %7565 = vmatmul.mubr.f32.vlgmr.msra.gmra.mrb[0].mxu0 %v3002_v1  ;;  %v11422_v1 = vld [vmem:[#allocation9 + $0x1d0] sm:$0xff] }
 0x587   :  { %9085 = vmatpush3.bf16.msra.mxu0 %v12487_v17  ;;  %7599 = vmatprep.mubr.msk.f32.mxu0 %vm9942_vm0, %v12464_v28 }
 0x588   :  { %9086 = vmatprep.subr.bf16.mxu0 %v12465_v26 }
 0x58b   :  { %9088 = vmatpush3.bf16.msra.mxu0 %v12488_v8 }
 0x58c   :  { %9089 = vmatprep.subr.bf16.mxu0 %v12465_v26 }
 0x58f   :  { %9091 = vmatpush3.bf16.msra.mxu0 %v12489_v60 }
 0x590   :  { %9092 = vmatprep.subr.bf16.mxu0 %v12465_v26 }
 0x593   :  { %9094 = vmatpush3.bf16.msra.mxu0 %v12490_v53 }
 0x594   :  { %9095 = vmatprep.subr.bf16.mxu0 %v12465_v26 }
 0x597   :  { %9097 = vmatpush3.bf16.msra.mxu0 %v12491_v48  ;;  %v11488_v48 = vsub.f32 %v3600_v20, %v3625_v33 }
 0x598   :  { %9098 = vmatprep.subr.bf16.mxu0 %v12465_v26 }
 0x599   :  { %v12405_v39 = vand.u32 4294901760, %v11488_v48 }
 0x59b   :  { %9100 = vmatpush3.bf16.msra.mxu0 %v12492_v38  ;;  %v11490_v38 = vsub.f32 %v3601_v55, %v3628_v52  ;;  %v3745_v44 = vsub.f32 %v11488_v48, %v12405_v39 }
 0x59c   :  { %9101 = vmatprep.subr.bf16.mxu0 %v12465_v26 }
 0x59d   :  { %v12404_v25 = vand.u32 4294901760, %v11490_v38 }
 0x59f   :  { %9103 = vmatpush3.bf16.msra.mxu0 %v12493_v5 }
 0x5a0   :  { %9104 = vmatprep.subr.bf16.mxu0 %v12465_v26 }
 0x5a3   :  { %9106 = vmatpush3.bf16.msra.mxu0 %v12494_v57 }
 0x5a4   :  { %9107 = vmatprep.subr.bf16.mxu0 %v12465_v26 }
 0x5a6   :  { %7600 = vmatmul.mubr.f32.vlgmr.msra.gmra.mrb[0].mxu0 %v11303_v43 }
 0x5a7   :  { %9109 = vmatpush3.bf16.msra.mxu0 %v12479_v21  ;;  %7634 = vmatprep.mubr.msk.f32.mxu0 %vm9942_vm0, %v12464_v28  ;;  %v3643_v28 = vand.u32 4294901760, %v11422_v1  ;;  %v3723_v21 = vand.u32 4294901760, %v11461_v56 }
 0x5a8   :  { %9110 = vmatprep.subr.bf16.mxu0 %v12465_v26 }
 0x5ab   :  { %9112 = vmatpush3.bf16.msra.mxu0 %v12480_v9  ;;  %v3717_v9 = vsub.f32 %v11459_v42, %v3716_v24 }
 0x5ac   :  { %9113 = vmatprep.subr.bf16.mxu0 %v12465_v26 }
 0x5af   :  { %9115 = vmatpush3.bf16.msra.mxu0 %v12481_v41  ;;  %v3724_v41 = vsub.f32 %v11461_v56, %v3723_v21 }
 0x5b0   :  { %9116 = vmatprep.subr.bf16.mxu0 %v12465_v26 }
 0x5b3   :  { %9118 = vmatpush3.bf16.msra.mxu0 %v12482_v45  ;;  %v11473_v45 = vsub.f32 %v3598_v49, %v3619_v40  ;;  %v3752_v49 = vsub.f32 %v11490_v38, %v12404_v25  ;;  %v11505_v40 = vsub.f32 %v3603_v34, %v3634_v32 }
 0x5b4   :  { %9119 = vmatprep.subr.bf16.mxu0 %v12465_v26 }
 0x5b5   :  { %v3753_v20 = vand.u32 4294901760, %v3752_v49  ;;  %v12402_v33 = vand.u32 4294901760, %v11505_v40 }
 0x5b7   :  { %9121 = vmatpush3.bf16.msra.mxu0 %v12483_v18  ;;  %v11475_v18 = vsub.f32 %v3599_v13, %v3622_v11  ;;  %v11503_v13 = vsub.f32 %v3602_v46, %v3631_v23  ;;  %v3746_v11 = vand.u32 4294901760, %v3745_v44  ;;  %v3766_v34 = vsub.f32 %v11505_v40, %v12402_v33 }
 0x5b8   :  { %9122 = vmatprep.subr.bf16.mxu0 %v12465_v26 }
 0x5b9   :  { %v12406_v17 = vand.u32 4294901760, %v11475_v18  ;;  %v12403_v55 = vand.u32 4294901760, %v11503_v13  ;;  %v11509_v52 = vpack.c.bf16 %v3753_v20, %v3746_v11 }
 0x5bb   :  { %9124 = vmatpush3.bf16.msra.mxu0 %v12484_v62  ;;  %v3718_v62 = vand.u32 4294901760, %v3717_v9  ;;  %v3738_v53 = vsub.f32 %v11475_v18, %v12406_v17  ;;  %v3759_v9 = vsub.f32 %v11503_v13, %v12403_v55 }
 0x5bc   :  { %9125 = vmatprep.subr.bf16.mxu0 %v12465_v26 }
 0x5bd   :  { %v3739_v57 = vand.u32 4294901760, %v3738_v53  ;;  %v3760_v23 = vand.u32 4294901760, %v3759_v9 }
 0x5bf   :  { %9127 = vmatpush3.bf16.msra.mxu0 %v12485_v30  ;;  %v3725_v30 = vand.u32 4294901760, %v3724_v41  ;;  %v11515_v41 = vsub.f32 %v11412_v59, %v3637_v37 }
 0x5c0   :  { %9128 = vmatprep.subr.bf16.mxu0 %v12465_v26  ;;  %v3646_v26 = vand.u32 4294901760, %v11424_v6 }
 0x5c1   :  { %v11480_v8 = vpack.c.bf16 %v3725_v30, %v3718_v62  ;;  %v12401_v32 = vand.u32 4294901760, %v11515_v41  ;;  %v3767_v30 = vand.u32 4294901760, %v3766_v34 }
 0x5c2   :  { %v11440_v22 = vpack.c.bf16 %v3646_v26, %v3643_v28 }
 0x5c3   :  { %9130 = vmatpush3.bf16.msra.mxu0 %v12486_v54  ;;  %v3730_v54 = vand.u32 4294901760, %v11473_v45 }
 0x5c4   :  { %9132 = vmatprep.subr.bf16.mxu0 %v11398_v47 }
 0x5c5   :  { %v3731_v60 = vsub.f32 %v11473_v45, %v3730_v54 }
 0x5c6   :  { %7635 = vmatmul.mubr.f32.vlgmr.msra.gmra.mrb[0].mxu0 %v11303_v43  ;;  %v3640_v43 = vand.u32 4294901760, %v11414_v0 }
 0x5c7   :  { %9134 = vmatpush3.bf16.msra.mxu0 %v11398_v47  ;;  %v3732_v5 = vand.u32 4294901760, %v3731_v60  ;;  %v3773_v60 = vsub.f32 %v11515_v41, %v12401_v32  ;;  %v3585_v32 = vsub.s32 4, %v10600_v51 }
 0x5c8   :  { %9136 = vmatprep.subr.bf16.mxu0 %v11402_v4  ;;  %v11420_v29 = vpack.c.bf16 %v3640_v43, %v3637_v37  ;;  %v11518_v46 = vsub.f32 %v11414_v0, %v3640_v43  ;;  %v11532_v0 = vsub.f32 %v11422_v1, %v3643_v28  ;;  %v11535_v37 = vsub.f32 %v11424_v6, %v3646_v26 }
 0x5c9   :  { %v11495_v35 = vpack.c.bf16 %v3739_v57, %v3732_v5  ;;  %v11537_v43 = vpack.c.bf16 %v3767_v30, %v3760_v23  ;;  %v3774_v53 = vand.u32 4294901760, %v3773_v60  ;;  %v11552_v6 = vsub.f32 %v11426_v16, %v3649_v12 }
 0x5ca   :  { %v12400_v62 = vand.u32 4294901760, %v11518_v46  ;;  %v12399_v57 = vand.u32 4294901760, %v11532_v0  ;;  %v12398_v44 = vand.u32 4294901760, %v11535_v37  ;;  %v11557_v28 = vsub.f32 %v11430_v27, %v3652_v3 }
 0x5cb   :  { %9138 = vmatpush3.bf16.msra.mxu0 %v11402_v4  ;;  %v12397_v9 = vand.u32 4294901760, %v11552_v6  ;;  %v11569_v16 = vsub.f32 %v11433_v61, %v3655_v19  ;;  %v11574_v27 = vsub.f32 %v11435_v63, %v3658_v7 }
 0x5cc   :  { %9140 = vmatprep.subr.bf16.mxu0 %v11406_v58  ;;  %v3780_v59 = vsub.f32 %v11518_v46, %v12400_v62  ;;  %v3787_v11 = vsub.f32 %v11532_v0, %v12399_v57  ;;  %v3794_v1 = vsub.f32 %v11535_v37, %v12398_v44  ;;  %v12396_v34 = vand.u32 4294901760, %v11557_v28 }
 0x5cd   :  { %v3801_v30 = vsub.f32 %v11552_v6, %v12397_v9  ;;  %v12395_v60 = vand.u32 4294901760, %v11569_v16  ;;  %v3579_v62 = vsub.s32 3, %v10600_v51 }
 0x5ce   :  { %v3781_v5 = vand.u32 4294901760, %v3780_v59  ;;  %v3788_v26 = vand.u32 4294901760, %v3787_v11  ;;  %v3795_v20 = vand.u32 4294901760, %v3794_v1  ;;  %v3808_v12 = vsub.f32 %v11557_v28, %v12396_v34 }
 0x5cf   :  { %9142 = vmatpush3.bf16.msra.mxu0 %v11406_v58  ;;  %v3802_v3 = vand.u32 4294901760, %v3801_v30  ;;  %v12394_v59 = vand.u32 4294901760, %v11574_v27  ;;  %v3815_v61 = vsub.f32 %v11569_v16, %v12395_v60  ;;  %v11591_v1 = vpack.c.bf16 %v11461_v56, %v11459_v42 }
 0x5d0   :  { %9144 = vmatprep.subr.bf16.mxu0 %v11410_v2  ;;  %v11541_v49 = vpack.c.bf16 %v3781_v5, %v3774_v53  ;;  %v11561_v23 = vpack.c.bf16 %v3795_v20, %v3788_v26  ;;  %v3809_v53 = vand.u32 4294901760, %v3808_v12  ;;  %v11595_v26 = vpack.c.bf16 %v11475_v18, %v11473_v45 }
 0x5d1   :  { %v3822_v19 = vsub.f32 %v11574_v27, %v12394_v59  ;;  %v3816_v7 = vand.u32 4294901760, %v3815_v61  ;;  %v11599_v20 = vpack.c.bf16 %v11490_v38, %v11488_v48  ;;  %v11603_v30 = vpack.c.bf16 %v11505_v40, %v11503_v13 }
 0x5d2   :  { %v11587_v63 = vpack.c.bf16 %v3809_v53, %v3802_v3  ;;  %v11607_v12 = vpack.c.bf16 %v11518_v46, %v11515_v41  ;;  %v11611_v3 = vpack.c.bf16 %v11535_v37, %v11532_v0  ;;  %v11615_v53 = vpack.c.bf16 %v11557_v28, %v11552_v6 }
 0x5d3   :  { %9146 = vmatpush3.bf16.msra.mxu0 %v11410_v2  ;;  %v3823_v5 = vand.u32 4294901760, %v3822_v19  ;;  %v11619_v61 = vpack.c.bf16 %v11574_v27, %v11569_v16  ;;  %v12497_v42 = vand.u32 4294901760, %v11490_v38  ;;  %v12498_v56 = vand.u32 4294901760, %v11503_v13 }
 0x5d4   :  { %9148 = vmatprep.subr.bf16.mxu0 %v11420_v29  ;;  %v12500_v45 = vand.u32 4294901760, %v11515_v41  ;;  %v12503_v38 = vand.u32 4294901760, %v11535_v37  ;;  %v12504_v13 = vand.u32 4294901760, %v11552_v6  ;;  %v12506_v41 = vand.u32 4294901760, %v11569_v16  ;;  %v4306_v37 = vld [vmem:[#allocation9 + $0x208] sm:$0xff]  ;;  %v4308_v16 = vld [vmem:[#allocation9 + $0x218] sm:$0xff] }
 0x5d5   :  { %v9191_v11 = vpack.c.bf16 %v3823_v5, %v3816_v7 }
 0x5d7   :  { %9150 = vmatpush3.bf16.msra.mxu0 %v11420_v29 }
 0x5d8   :  { %9152 = vmatprep.subr.bf16.mxu0 %v11440_v22 }
 0x5db   :  { %9154 = vmatpush3.bf16.msra.mxu0 %v11440_v22 }
 0x5dc   :  { %9156 = vmatprep.subr.bf16.mxu0 %v11446_v36 }
 0x5df   :  { %9158 = vmatpush3.bf16.msra.mxu0 %v11446_v36 }
 0x5e0   :  { %9160 = vmatprep.subr.bf16.mxu0 %v11457_v14 }
 0x5e3   :  { %9162 = vmatpush3.bf16.msra.mxu0 %v11457_v14 }
 0x5e4   :  { %9164 = vmatprep.subr.bf16.mxu0 %v11480_v8 }
 0x699   :  { %v3556_v19 = vpop.f32.mrb[0].mxu0 }
 0x69a   :  { %v3560_v7 = vmul.f32 %v3556_v19, %v3556_v19  ;;  %v7636_v5 = vpop.f32.mrb[1].mxu0  ;;  %v3570_v44 = vrot.slane %v3556_v19, %v10603_v50 }
 0x69c   :  { %v3562_v59 = vrot.slane %v3560_v7, 7  ;;  %v3571_v55 = vsub.f32 %v11294_v15, %v3570_v44  ;;  %v3572_v25 = vsub.f32 %v11292_v10, %v3570_v44  ;;  %v3586_v7 = vrot.slane %v11289_v31, %v3585_v32 }
 0x69e   :  { %v3564_v60 = vsub.f32 %v3556_v19, %v3562_v59 }
 0x6a0   :  { %v3565_v34 = vadd.f32 1e-05, %v3564_v60 }
 0x6a2   :  { %9811 = vrsqrt.f32 %v3565_v34 }
 0x6ac   :  { %v9812_v9 = vpop.eup %9811 }
 0x6ad   :  { %v3574_v57 = vrot.slane %v9812_v9, 6 }
 0x6af   :  { %v3576_v33 = vmul.f32 %v11289_v31, %v3574_v57 }
 0x6b1   :  { %v3580_v39 = vrot.slane %v3576_v33, %v3579_v62 }
 0x6b3   :  { %v3581_v59 = vmul.f32 %v3580_v39, %v3571_v55  ;;  %v3582_v60 = vmul.f32 %v3580_v39, %v3572_v25 }
 0x6b5   :  { %v3587_v34 = vadd.f32 %v3586_v7, %v3581_v59  ;;  %v3588_v5 = vadd.f32 %v3586_v7, %v3582_v60  ;;  %v4313_v7 = vld [vmem:[#allocation9 + $0x240] sm:$0xff]  ;;  %v4314_v59 = vld [vmem:[#allocation9 + $0x248] sm:$0xff] }
 0x6b7   :  { %v11628_v17 = vmax.f32 %v3587_v34, 0.0  ;;  %v11630_v50 = vmax.f32 %v3588_v5, 0.0  ;;  %v4346_v34 = vand.u32 4294901760, %v4313_v7  ;;  %v4349_v5 = vand.u32 4294901760, %v4314_v59 }
 0x6b9   :  { %3591 = vst [vmem:[#allocation2 + $0x1] sm:$0xff] %v11628_v17  ;;  %3592 = vst [vmem:[#allocation2 + $0x9] sm:$0xff] %v11630_v50 }
 0x6c0   :  { %v3593_v57 = vld [vmem:[#allocation2] sm:$0xff]  ;;  %v3594_v9 = vld [vmem:[#allocation2 + $0x8] sm:$0xff] }
 0x6c1   :  { %v11634_v15 = vand.u32 4294901760, %v3593_v57  ;;  %v11636_v10 = vand.u32 4294901760, %v3594_v9 }
 0x6c3   :  { %v3694_v31 = vsub.f32 %v3593_v57, %v11634_v15  ;;  %v11640_v39 = vsub.f32 %v3594_v9, %v11636_v10  ;;  %v11768_v57 = vld [vmem:[#allocation9 + $0x250] sm:$0xff]  ;;  %v11770_v9 = vld [vmem:[#allocation9 + $0x258] sm:$0xff] }
 0x6c5   :  { %v3695_v25 = vand.u32 4294901760, %v3694_v31  ;;  %v3705_v55 = vand.u32 4294901760, %v11640_v39 }
 0x6c7   :  { %v3696_v33 = vsub.f32 %v3694_v31, %v3695_v25  ;;  %v3706_v32 = vsub.f32 %v11640_v39, %v3705_v55 }
 0x6c9   :  { %v3697_v62 = vand.u32 4294901760, %v3696_v33  ;;  %v3707_v44 = vand.u32 4294901760, %v3706_v32  ;;  %v4355_v33 = vand.u32 4294901760, %v11770_v9 }
 0x6cb   :  { %7669 = vmatprep.mubr.f32.mxu0 %v3697_v62 }
 0x6cc   :  { %7670 = vmatmul.mubr.f32.vlgmr.msra.gmra.mrb[2].mxu0 %v3707_v44  ;;  %v11789_v44 = vand.u32 4294901760, %v11630_v50 }
 0x6cd   :  { %9166 = vmatpush3.bf16.msra.mxu0 %v11480_v8  ;;  %7704 = vmatprep.mubr.f32.mxu0 %v11634_v15  ;;  %v9259_v8 = vpack.c.bf16 %v3723_v21, %v3716_v24  ;;  %v12499_v24 = vand.u32 4294901760, %v11505_v40  ;;  %v12505_v40 = vand.u32 4294901760, %v11557_v28  ;;  %v4307_v28 = vld [vmem:[#allocation9 + $0x210] sm:$0xff] }
 0x6ce   :  { %9168 = vmatprep.subr.bf16.mxu0 %v11495_v35 }
 0x6cf   :  { %v9271_v21 = vpack.c.bf16 %v12499_v24, %v12498_v56 }
 0x6d1   :  { %9170 = vmatpush3.bf16.msra.mxu0 %v11495_v35  ;;  %v12495_v35 = vand.u32 4294901760, %v11475_v18  ;;  %v12501_v18 = vand.u32 4294901760, %v11518_v46  ;;  %v12507_v46 = vand.u32 4294901760, %v11574_v27  ;;  %v4328_v27 = vand.u32 4294901760, %v4307_v28 }
 0x6d2   :  { %9172 = vmatprep.subr.bf16.mxu0 %v11509_v52 }
 0x6d5   :  { %9174 = vmatpush3.bf16.msra.mxu0 %v11509_v52  ;;  %v9263_v52 = vpack.c.bf16 %v12495_v35, %v3730_v54  ;;  %v9275_v54 = vpack.c.bf16 %v12501_v18, %v12500_v45 }
 0x6d6   :  { %9176 = vmatprep.subr.bf16.mxu0 %v11537_v43 }
 0x6d9   :  { %9178 = vmatpush3.bf16.msra.mxu0 %v11537_v43  ;;  %v12496_v43 = vand.u32 4294901760, %v11488_v48  ;;  %v12502_v48 = vand.u32 4294901760, %v11532_v0  ;;  %v11737_v0 = vand.u32 4294901760, %v11628_v17 }
 0x6da   :  { %9180 = vmatprep.subr.bf16.mxu0 %v11541_v49 }
 0x6dd   :  { %9182 = vmatpush3.bf16.msra.mxu0 %v11541_v49  ;;  %v9267_v49 = vpack.c.bf16 %v12497_v42, %v12496_v43  ;;  %v11797_v43 = vld [vmem:[#allocation9 + $0x270] sm:$0xff]  ;;  %v11799_v42 = vld [vmem:[#allocation9 + $0x278] sm:$0xff] }
 0x6de   :  { %9184 = vmatprep.subr.bf16.mxu0 %v11561_v23  ;;  %v4364_v45 = vand.u32 4294901760, %v11797_v43  ;;  %v4367_v18 = vand.u32 4294901760, %v11799_v42 }
 0x6e1   :  { %9186 = vmatpush3.bf16.msra.mxu0 %v11561_v23  ;;  %v9279_v23 = vpack.c.bf16 %v12503_v38, %v12502_v48 }
 0x6e2   :  { %9188 = vmatprep.subr.bf16.mxu0 %v11587_v63 }
 0x6e5   :  { %9190 = vmatpush3.bf16.msra.mxu0 %v11587_v63  ;;  %v9283_v63 = vpack.c.bf16 %v12505_v40, %v12504_v13 }
 0x6e6   :  { %9192 = vmatprep.subr.bf16.mxu0 %v9191_v11 }
 0x6e9   :  { %9194 = vmatpush3.bf16.msra.mxu0 %v9191_v11  ;;  %v9287_v11 = vpack.c.bf16 %v12507_v46, %v12506_v41  ;;  %v11840_v41 = vpack.c.bf16 %v4367_v18, %v4364_v45 }
 0x6ea   :  { %9196 = vmatprep.subr.bf16.mxu0 %v11591_v1 }
 0x6ec   :  { %7705 = vmatmul.mubr.f32.vlgmr.msra.gmra.mrb[2].mxu0 %v11636_v10 }
 0x6ed   :  { %9198 = vmatpush3.bf16.msra.mxu0 %v11591_v1  ;;  %7739 = vmatprep.mubr.f32.mxu0 %v3694_v31  ;;  %v4331_v1 = vand.u32 4294901760, %v4308_v16 }
 0x6ee   :  { %9200 = vmatprep.subr.bf16.mxu0 %v11595_v26 }
 0x6ef   :  { %v11803_v56 = vsub.f32 %v4308_v16, %v4331_v1 }
 0x6f1   :  { %9202 = vmatpush3.bf16.msra.mxu0 %v11595_v26  ;;  %v4310_v26 = vld [vmem:[#allocation9 + $0x228] sm:$0xff] }
 0x6f2   :  { %9204 = vmatprep.subr.bf16.mxu0 %v11599_v20 }
 0x6f5   :  { %9206 = vmatpush3.bf16.msra.mxu0 %v11599_v20  ;;  %v11757_v20 = vpack.c.bf16 %v4331_v1, %v4328_v27 }
 0x6f6   :  { %9208 = vmatprep.subr.bf16.mxu0 %v11603_v30 }
 0x6f9   :  { %9210 = vmatpush3.bf16.msra.mxu0 %v11603_v30 }
 0x6fa   :  { %9212 = vmatprep.subr.bf16.mxu0 %v11607_v12 }
 0x6fd   :  { %9214 = vmatpush3.bf16.msra.mxu0 %v11607_v12 }
 0x6fe   :  { %9216 = vmatprep.subr.bf16.mxu0 %v11611_v3 }
 0x701   :  { %9218 = vmatpush3.bf16.msra.mxu0 %v11611_v3  ;;  %v4311_v3 = vld [vmem:[#allocation9 + $0x230] sm:$0xff] }
 0x702   :  { %9220 = vmatprep.subr.bf16.mxu0 %v11615_v53  ;;  %v4340_v19 = vand.u32 4294901760, %v4311_v3 }
 0x704   :  { %v11831_v40 = vsub.f32 %v4311_v3, %v4340_v19 }
 0x705   :  { %9222 = vmatpush3.bf16.msra.mxu0 %v11615_v53  ;;  %v4312_v53 = vld [vmem:[#allocation9 + $0x238] sm:$0xff] }
 0x706   :  { %9224 = vmatprep.subr.bf16.mxu0 %v11619_v61  ;;  %v4467_v16 = vand.u32 4294901760, %v11831_v40 }
 0x709   :  { %9226 = vmatpush3.bf16.msra.mxu0 %v11619_v61 }
 0x70a   :  { %9228 = vmatprep.subr.bf16.mxu0 %v11398_v47 }
 0x70c   :  { %7740 = vmatmul.mubr.f32.vlgmr.msra.gmra.mrb[2].mxu0 %v11640_v39 }
 0x70d   :  { %9230 = vmatpush3.bf16.msra.mxu0 %v11398_v47  ;;  %7774 = vmatprep.mubr.f32.mxu0 %v3695_v25  ;;  %v11782_v25 = vpack.c.bf16 %v4349_v5, %v4346_v34 }
 0x70e   :  { %9232 = vmatprep.subr.bf16.mxu0 %v11402_v4 }
 0x711   :  { %9234 = vmatpush3.bf16.msra.mxu0 %v11402_v4 }
 0x712   :  { %9236 = vmatprep.subr.bf16.mxu0 %v11406_v58 }
 0x715   :  { %9238 = vmatpush3.bf16.msra.mxu0 %v11406_v58 }
 0x716   :  { %9240 = vmatprep.subr.bf16.mxu0 %v11410_v2 }
 0x719   :  { %9242 = vmatpush3.bf16.msra.mxu0 %v11410_v2 }
 0x71a   :  { %9244 = vmatprep.subr.bf16.mxu0 %v11420_v29 }
 0x71d   :  { %9246 = vmatpush3.bf16.msra.mxu0 %v11420_v29 }
 0x71e   :  { %9248 = vmatprep.subr.bf16.mxu0 %v11440_v22 }
 0x721   :  { %9250 = vmatpush3.bf16.msra.mxu0 %v11440_v22 }
 0x722   :  { %9252 = vmatprep.subr.bf16.mxu0 %v11446_v36 }
 0x725   :  { %9254 = vmatpush3.bf16.msra.mxu0 %v11446_v36 }
 0x726   :  { %9256 = vmatprep.subr.bf16.mxu0 %v11457_v14 }
 0x729   :  { %9258 = vmatpush3.bf16.msra.mxu0 %v11457_v14 }
 0x72a   :  { %9260 = vmatprep.subr.bf16.mxu0 %v9259_v8 }
 0x72c   :  { %7775 = vmatmul.mubr.f32.vlgmr.msra.gmra.mrb[2].mxu0 %v3705_v55  ;;  %v4352_v55 = vand.u32 4294901760, %v11768_v57 }
 0x72d   :  { %9262 = vmatpush3.bf16.msra.mxu0 %v9259_v8  ;;  %7809 = vmatprep.mubr.f32.mxu0 %v11634_v15 }
 0x72e   :  { %9264 = vmatprep.subr.bf16.mxu0 %v9263_v52 }
 0x731   :  { %9266 = vmatpush3.bf16.msra.mxu0 %v9263_v52  ;;  %v11795_v52 = vpack.c.bf16 %v4355_v33, %v4352_v55 }
 0x732   :  { %9268 = vmatprep.subr.bf16.mxu0 %v9267_v49 }
 0x735   :  { %9270 = vmatpush3.bf16.msra.mxu0 %v9267_v49  ;;  %v11801_v49 = vsub.f32 %v4307_v28, %v4328_v27 }
 0x736   :  { %9272 = vmatprep.subr.bf16.mxu0 %v9271_v21 }
 0x737   :  { %v4439_v38 = vand.u32 4294901760, %v11801_v49 }
 0x739   :  { %9274 = vmatpush3.bf16.msra.mxu0 %v9271_v21  ;;  %v11813_v21 = vsub.f32 %v11630_v50, %v11789_v44  ;;  %v4446_v50 = vand.u32 4294901760, %v11803_v56 }
 0x73a   :  { %9276 = vmatprep.subr.bf16.mxu0 %v9275_v54 }
 0x73b   :  { %v4414_v46 = vand.u32 4294901760, %v11813_v21 }
 0x73d   :  { %9278 = vmatpush3.bf16.msra.mxu0 %v9275_v54  ;;  %v4415_v1 = vsub.f32 %v11813_v21, %v4414_v46 }
 0x73e   :  { %9280 = vmatprep.subr.bf16.mxu0 %v9279_v23 }
 0x741   :  { %9282 = vmatpush3.bf16.msra.mxu0 %v9279_v23 }
 0x742   :  { %9284 = vmatprep.subr.bf16.mxu0 %v9283_v63 }
 0x745   :  { %9286 = vmatpush3.bf16.msra.mxu0 %v9283_v63 }
 0x746   :  { %9288 = vmatprep.subr.bf16.mxu0 %v9287_v11 }
 0x749   :  { %9290 = vmatpush3.bf16.msra.mxu0 %v9287_v11 }
 0x74a   :  { %9292 = vmatprep.subr.bf16.mxu0 %v11398_v47 }
 0x74c   :  { %7810 = vmatmul.mubr.f32.vlgmr.msra.gmra.mrb[2].mxu0 %v11636_v10 }
 0x74d   :  { %9294 = vmatpush3.bf16.msra.mxu0 %v11398_v47  ;;  %7844 = vmatprep.mubr.f32.mxu0 %v11634_v15  ;;  %v4305_v47 = vld [vmem:[#allocation9 + $0x200] sm:$0xff] }
 0x74e   :  { %9296 = vmatprep.subr.bf16.mxu0 %v11402_v4  ;;  %v11773_v15 = vld [vmem:[#allocation9 + $0x260] sm:$0xff] }
 0x74f   :  { %v4358_v32 = vand.u32 4294901760, %v11773_v15 }
 0x751   :  { %9298 = vmatpush3.bf16.msra.mxu0 %v11402_v4  ;;  %v11743_v4 = vsub.f32 %v11628_v17, %v11737_v0  ;;  %v4309_v17 = vld [vmem:[#allocation9 + $0x220] sm:$0xff] }
 0x752   :  { %9300 = vmatprep.subr.bf16.mxu0 %v11406_v58  ;;  %v4334_v30 = vand.u32 4294901760, %v4309_v17 }
 0x753   :  { %v4404_v6 = vand.u32 4294901760, %v11743_v4 }
 0x754   :  { %v11827_v23 = vsub.f32 %v4309_v17, %v4334_v30  ;;  %v11858_v17 = vsub.f32 %v4313_v7, %v4346_v34  ;;  %v11882_v34 = vsub.f32 %v11770_v9, %v4355_v33 }
 0x755   :  { %9302 = vmatpush3.bf16.msra.mxu0 %v11406_v58  ;;  %v4322_v58 = vand.u32 4294901760, %v4305_v47 }
 0x756   :  { %9304 = vmatprep.subr.bf16.mxu0 %v11410_v2 }
 0x757   :  { %v11777_v31 = vsub.f32 %v4305_v47, %v4322_v58 }
 0x759   :  { %9306 = vmatpush3.bf16.msra.mxu0 %v11410_v2  ;;  %v4325_v2 = vand.u32 4294901760, %v4306_v37  ;;  %v4425_v8 = vand.u32 4294901760, %v11777_v31 }
 0x75a   :  { %9308 = vmatprep.subr.bf16.mxu0 %v11420_v29 }
 0x75b   :  { %v11779_v39 = vsub.f32 %v4306_v37, %v4325_v2  ;;  %v4426_v54 = vsub.f32 %v11777_v31, %v4425_v8  ;;  %v4440_v37 = vsub.f32 %v11801_v49, %v4439_v38 }
 0x75d   :  { %9310 = vmatpush3.bf16.msra.mxu0 %v11420_v29  ;;  %v11750_v29 = vpack.c.bf16 %v4325_v2, %v4322_v58  ;;  %v4432_v35 = vand.u32 4294901760, %v11779_v39  ;;  %v4427_v11 = vand.u32 4294901760, %v4426_v54  ;;  %v4447_v58 = vsub.f32 %v11803_v56, %v4446_v50 }
 0x75e   :  { %9312 = vmatprep.subr.bf16.mxu0 %v11440_v22  ;;  %v4453_v2 = vand.u32 4294901760, %v11827_v23 }
 0x75f   :  { %v4433_v48 = vsub.f32 %v11779_v39, %v4432_v35 }
 0x761   :  { %9314 = vmatpush3.bf16.msra.mxu0 %v11440_v22  ;;  %v4405_v22 = vsub.f32 %v11743_v4, %v4404_v6  ;;  %v4434_v47 = vand.u32 4294901760, %v4433_v48 }
 0x762   :  { %9316 = vmatprep.subr.bf16.mxu0 %v11446_v36 }
 0x763   :  { %v4406_v12 = vand.u32 4294901760, %v4405_v22  ;;  %v9355_v22 = vpack.c.bf16 %v4434_v47, %v4427_v11 }
 0x765   :  { %9318 = vmatpush3.bf16.msra.mxu0 %v11446_v36  ;;  %v4337_v36 = vand.u32 4294901760, %v4310_v26 }
 0x766   :  { %9320 = vmatprep.subr.bf16.mxu0 %v11457_v14 }
 0x767   :  { %v11762_v61 = vpack.c.bf16 %v4337_v36, %v4334_v30  ;;  %v11829_v13 = vsub.f32 %v4310_v26, %v4337_v36  ;;  %v11860_v26 = vsub.f32 %v4314_v59, %v4349_v5  ;;  %v4441_v30 = vand.u32 4294901760, %v4440_v37 }
 0x768   :  { %v4448_v36 = vand.u32 4294901760, %v4447_v58  ;;  %v11879_v59 = vsub.f32 %v11768_v57, %v4352_v55  ;;  %v4416_v5 = vand.u32 4294901760, %v4415_v1  ;;  %v4502_v55 = vand.u32 4294901760, %v11882_v34 }
 0x769   :  { %9322 = vmatpush3.bf16.msra.mxu0 %v11457_v14  ;;  %v4343_v14 = vand.u32 4294901760, %v4312_v53  ;;  %v4460_v28 = vand.u32 4294901760, %v11829_v13  ;;  %v4488_v7 = vand.u32 4294901760, %v11860_v26  ;;  %v11896_v1 = vsub.f32 %v11773_v15, %v4358_v32 }
 0x76a   :  { %9324 = vmatprep.subr.bf16.mxu0 %v11750_v29  ;;  %v9359_v54 = vpack.c.bf16 %v4448_v36, %v4441_v30  ;;  %v4495_v9 = vand.u32 4294901760, %v11879_v59 }
 0x76b   :  { %v11766_v60 = vpack.c.bf16 %v4343_v14, %v4340_v19  ;;  %v11833_v63 = vsub.f32 %v4312_v53, %v4343_v14  ;;  %v4461_v3 = vsub.f32 %v11829_v13, %v4460_v28  ;;  %v4468_v53 = vsub.f32 %v11831_v40, %v4467_v16 }
 0x76c   :  { %7845 = vmatmul.mubr.f32.vlgmr.msra.gmra.mrb[2].mxu0 %v11636_v10  ;;  %v11775_v10 = vld [vmem:[#allocation9 + $0x268] sm:$0xff]  ;;  %v4481_v14 = vand.u32 4294901760, %v11858_v17  ;;  %v4489_v57 = vsub.f32 %v11860_v26, %v4488_v7  ;;  %v4509_v15 = vand.u32 4294901760, %v11896_v1 }
 0x76d   :  { %9326 = vmatpush3.bf16.msra.mxu0 %v11750_v29  ;;  %7879 = vmatprep.mubr.f32.mxu0 %v4406_v12  ;;  %v4361_v62 = vand.u32 4294901760, %v11775_v10  ;;  %v4474_v27 = vand.u32 4294901760, %v11833_v63  ;;  %v4454_v12 = vsub.f32 %v11827_v23, %v4453_v2  ;;  %v4462_v11 = vand.u32 4294901760, %v4461_v3 }
 0x76e   :  { %9328 = vmatprep.subr.bf16.mxu0 %v11757_v20  ;;  %v4469_v47 = vand.u32 4294901760, %v4468_v53  ;;  %v4482_v58 = vsub.f32 %v11858_v17, %v4481_v14  ;;  %v4496_v3 = vsub.f32 %v11879_v59, %v4495_v9  ;;  %v4503_v53 = vsub.f32 %v11882_v34, %v4502_v55 }
 0x76f   :  { %v11809_v24 = vpack.c.bf16 %v4361_v62, %v4358_v32  ;;  %v4475_v19 = vsub.f32 %v11833_v63, %v4474_v27  ;;  %v4455_v48 = vand.u32 4294901760, %v4454_v12  ;;  %v4490_v12 = vand.u32 4294901760, %v4489_v57 }
 0x770   :  { %v4483_v36 = vand.u32 4294901760, %v4482_v58 }
 0x771   :  { %9330 = vmatpush3.bf16.msra.mxu0 %v11757_v20  ;;  %v4476_v37 = vand.u32 4294901760, %v4475_v19  ;;  %v9363_v33 = vpack.c.bf16 %v4462_v11, %v4455_v48  ;;  %v4510_v48 = vsub.f32 %v11896_v1, %v4509_v15 }
 0x772   :  { %9332 = vmatprep.subr.bf16.mxu0 %v11762_v61  ;;  %v9371_v19 = vpack.c.bf16 %v4490_v12, %v4483_v36  ;;  %v9387_v12 = vpack.c.bf16 %v11779_v39, %v11777_v31  ;;  %v9459_v31 = vpack.c.bf16 %v4460_v28, %v4453_v2  ;;  %v9463_v39 = vpack.c.bf16 %v4474_v27, %v4467_v16  ;;  %v5015_v2 = vld [vmem:[#allocation9 + $0x2a8] sm:$0xff] }
 0x773   :  { %v9367_v30 = vpack.c.bf16 %v4476_v37, %v4469_v47 }
 0x775   :  { %9334 = vmatpush3.bf16.msra.mxu0 %v11762_v61 }
 0x776   :  { %9336 = vmatprep.subr.bf16.mxu0 %v11766_v60 }
 0x779   :  { %9338 = vmatpush3.bf16.msra.mxu0 %v11766_v60 }
 0x77a   :  { %9340 = vmatprep.subr.bf16.mxu0 %v11782_v25 }
 0x77d   :  { %9342 = vmatpush3.bf16.msra.mxu0 %v11782_v25 }
 0x77e   :  { %9344 = vmatprep.subr.bf16.mxu0 %v11795_v52 }
 0x781   :  { %9346 = vmatpush3.bf16.msra.mxu0 %v11795_v52 }
 0x782   :  { %9348 = vmatprep.subr.bf16.mxu0 %v11809_v24 }
 0x785   :  { %9350 = vmatpush3.bf16.msra.mxu0 %v11809_v24 }
 0x786   :  { %9352 = vmatprep.subr.bf16.mxu0 %v11840_v41 }
 0x789   :  { %9354 = vmatpush3.bf16.msra.mxu0 %v11840_v41 }
 0x78a   :  { %9356 = vmatprep.subr.bf16.mxu0 %v9355_v22 }
 0x78c   :  { %7880 = vmatmul.mubr.f32.vlgmr.msra.gmra.mrb[2].mxu0 %v4416_v5  ;;  %v4497_v5 = vand.u32 4294901760, %v4496_v3  ;;  %v9391_v3 = vpack.c.bf16 %v11803_v56, %v11801_v49 }
 0x78d   :  { %9358 = vmatpush3.bf16.msra.mxu0 %v9355_v22  ;;  %7914 = vmatprep.mubr.f32.mxu0 %v11737_v0  ;;  %v11901_v22 = vsub.f32 %v11775_v10, %v4361_v62  ;;  %v11914_v10 = vsub.f32 %v11797_v43, %v4364_v45  ;;  %v11919_v62 = vsub.f32 %v11799_v42, %v4367_v18  ;;  %v4511_v18 = vand.u32 4294901760, %v4510_v48 }
 0x78e   :  { %9360 = vmatprep.subr.bf16.mxu0 %v9359_v54 }
 0x78f   :  { %v4516_v32 = vand.u32 4294901760, %v11901_v22  ;;  %v4523_v43 = vand.u32 4294901760, %v11914_v10  ;;  %v4530_v45 = vand.u32 4294901760, %v11919_v62  ;;  %v9411_v48 = vpack.c.bf16 %v11901_v22, %v11896_v1 }
 0x791   :  { %9362 = vmatpush3.bf16.msra.mxu0 %v9359_v54  ;;  %v4504_v54 = vand.u32 4294901760, %v4503_v53  ;;  %v4517_v11 = vsub.f32 %v11901_v22, %v4516_v32  ;;  %v4524_v37 = vsub.f32 %v11914_v10, %v4523_v43  ;;  %v4531_v58 = vsub.f32 %v11919_v62, %v4530_v45  ;;  %v12050_v22 = vld [vmem:[#allocation9 + $0x2d8] sm:$0xff] }
 0x792   :  { %9364 = vmatprep.subr.bf16.mxu0 %v9363_v33  ;;  %v9395_v53 = vpack.c.bf16 %v11829_v13, %v11827_v23  ;;  %v9475_v49 = vpack.c.bf16 %v4516_v32, %v4509_v15  ;;  %v9479_v56 = vpack.c.bf16 %v4530_v45, %v4523_v43  ;;  %v5012_v23 = vld [vmem:[#allocation9 + $0x290] sm:$0xff]  ;;  %v5013_v13 = vld [vmem:[#allocation9 + $0x298] sm:$0xff]  ;;  %v12053_v15 = vld [vmem:[#allocation9 + $0x2e0] sm:$0xff] }
 0x793   :  { %v9375_v42 = vpack.c.bf16 %v4504_v54, %v4497_v5  ;;  %v4518_v47 = vand.u32 4294901760, %v4517_v11  ;;  %v4532_v36 = vand.u32 4294901760, %v4531_v58  ;;  %v9403_v5 = vpack.c.bf16 %v11860_v26, %v11858_v17  ;;  %v5016_v17 = vld [vmem:[#allocation9 + $0x2b0] sm:$0xff]  ;;  %v5017_v26 = vld [vmem:[#allocation9 + $0x2b8] sm:$0xff]  ;;  %v12055_v32 = vld [vmem:[#allocation9 + $0x2e8] sm:$0xff] }
 0x794   :  { %v9407_v54 = vpack.c.bf16 %v11882_v34, %v11879_v59  ;;  %v9415_v11 = vpack.c.bf16 %v11919_v62, %v11914_v10  ;;  %v5018_v59 = vld [vmem:[#allocation9 + $0x2c0] sm:$0xff]  ;;  %v5019_v34 = vld [vmem:[#allocation9 + $0x2c8] sm:$0xff] }
 0x795   :  { %9366 = vmatpush3.bf16.msra.mxu0 %v9363_v33  ;;  %v9379_v57 = vpack.c.bf16 %v4518_v47, %v4511_v18  ;;  %v4525_v33 = vand.u32 4294901760, %v4524_v37  ;;  %v5054_v1 = vand.u32 4294901760, %v5019_v34  ;;  %v5008_v10 = vld [vmem:[#allocation2 + $0xa] sm:$0xff]  ;;  %v5060_v18 = vand.u32 4294901760, %v12050_v22 }
 0x796   :  { %9368 = vmatprep.subr.bf16.mxu0 %v9367_v30  ;;  %v5063_v47 = vand.u32 4294901760, %v12053_v15  ;;  %v5066_v37 = vand.u32 4294901760, %v12055_v32  ;;  %v12068_v58 = vand.u32 4294901760, %v5008_v10 }
 0x799   :  { %9370 = vmatpush3.bf16.msra.mxu0 %v9367_v30  ;;  %v9383_v30 = vpack.c.bf16 %v4532_v36, %v4525_v33 }
 0x79a   :  { %9372 = vmatprep.subr.bf16.mxu0 %v9371_v19 }
 0x79d   :  { %9374 = vmatpush3.bf16.msra.mxu0 %v9371_v19  ;;  %v9399_v19 = vpack.c.bf16 %v11833_v63, %v11831_v40  ;;  %v5033_v40 = vand.u32 4294901760, %v5012_v23  ;;  %v5036_v63 = vand.u32 4294901760, %v5013_v13 }
 0x79e   :  { %9376 = vmatprep.subr.bf16.mxu0 %v9375_v42 }
 0x79f   :  { %v12037_v28 = vpack.c.bf16 %v5036_v63, %v5033_v40 }
 0x7a1   :  { %9378 = vmatpush3.bf16.msra.mxu0 %v9375_v42 }
 0x7a2   :  { %9380 = vmatprep.subr.bf16.mxu0 %v9379_v57 }
 0x7a5   :  { %9382 = vmatpush3.bf16.msra.mxu0 %v9379_v57 }
 0x7a6   :  { %9384 = vmatprep.subr.bf16.mxu0 %v9383_v30 }
 0x7a9   :  { %9386 = vmatpush3.bf16.msra.mxu0 %v9383_v30  ;;  %v12076_v30 = vld [vmem:[#allocation9 + $0x2f0] sm:$0xff] }
 0x7aa   :  { %9388 = vmatprep.subr.bf16.mxu0 %v9387_v12 }
 0x7ac   :  { %7915 = vmatmul.mubr.f32.vlgmr.msra.gmra.mrb[2].mxu0 %v11789_v44 }
 0x7ad   :  { %9390 = vmatpush3.bf16.msra.mxu0 %v9387_v12  ;;  %7949 = vmatprep.mubr.f32.mxu0 %v11743_v4  ;;  %v9451_v4 = vpack.c.bf16 %v4432_v35, %v4425_v8  ;;  %v9467_v8 = vpack.c.bf16 %v4488_v7, %v4481_v14  ;;  %v9471_v35 = vpack.c.bf16 %v4502_v55, %v4495_v9  ;;  %v5045_v7 = vand.u32 4294901760, %v5016_v17  ;;  %v12078_v12 = vld [vmem:[#allocation9 + $0x2f8] sm:$0xff] }
 0x7ae   :  { %9392 = vmatprep.subr.bf16.mxu0 %v9391_v3  ;;  %v5051_v55 = vand.u32 4294901760, %v5018_v59 }
 0x7b0   :  { %v12062_v45 = vpack.c.bf16 %v5054_v1, %v5051_v55 }
 0x7b1   :  { %9394 = vmatpush3.bf16.msra.mxu0 %v9391_v3  ;;  %v12080_v3 = vsub.f32 %v5012_v23, %v5033_v40 }
 0x7b2   :  { %9396 = vmatprep.subr.bf16.mxu0 %v9395_v53 }
 0x7b5   :  { %9398 = vmatpush3.bf16.msra.mxu0 %v9395_v53  ;;  %v12082_v53 = vsub.f32 %v5013_v13, %v5036_v63 }
 0x7b6   :  { %9400 = vmatprep.subr.bf16.mxu0 %v9399_v19 }
 0x7b9   :  { %9402 = vmatpush3.bf16.msra.mxu0 %v9399_v19  ;;  %v12088_v19 = vpack.c.bf16 %v5066_v37, %v5063_v47 }
 0x7ba   :  { %9404 = vmatprep.subr.bf16.mxu0 %v9403_v5 }
 0x7bd   :  { %9406 = vmatpush3.bf16.msra.mxu0 %v9403_v5  ;;  %v12091_v5 = vsub.f32 %v5008_v10, %v12068_v58 }
 0x7be   :  { %9408 = vmatprep.subr.bf16.mxu0 %v9407_v54 }
 0x7c1   :  { %9410 = vmatpush3.bf16.msra.mxu0 %v9407_v54  ;;  %v5069_v54 = vand.u32 4294901760, %v12076_v30 }
 0x7c2   :  { %9412 = vmatprep.subr.bf16.mxu0 %v9411_v48 }
 0x7c5   :  { %9414 = vmatpush3.bf16.msra.mxu0 %v9411_v48  ;;  %v5072_v48 = vand.u32 4294901760, %v12078_v12 }
 0x7c6   :  { %9416 = vmatprep.subr.bf16.mxu0 %v9415_v11 }
 0x7c9   :  { %9418 = vmatpush3.bf16.msra.mxu0 %v9415_v11 }
 0x7ca   :  { %9420 = vmatprep.subr.bf16.mxu0 %v11750_v29 }
 0x7cc   :  { %7950 = vmatmul.mubr.f32.vlgmr.msra.gmra.mrb[2].mxu0 %v11813_v21  ;;  %v5007_v21 = vld [vmem:[#allocation2 + $0x2] sm:$0xff] }
 0x7cd   :  { %9422 = vmatpush3.bf16.msra.mxu0 %v11750_v29  ;;  %7984 = vmatprep.mubr.f32.mxu0 %v4404_v6  ;;  %v9455_v6 = vpack.c.bf16 %v4446_v50, %v4439_v38  ;;  %v12018_v38 = vand.u32 4294901760, %v5007_v21 }
 0x7ce   :  { %9424 = vmatprep.subr.bf16.mxu0 %v11757_v20 }
 0x7d1   :  { %9426 = vmatpush3.bf16.msra.mxu0 %v11757_v20 }
 0x7d2   :  { %9428 = vmatprep.subr.bf16.mxu0 %v11762_v61 }
 0x7d5   :  { %9430 = vmatpush3.bf16.msra.mxu0 %v11762_v61 }
 0x7d6   :  { %9432 = vmatprep.subr.bf16.mxu0 %v11766_v60 }
 0x7d9   :  { %9434 = vmatpush3.bf16.msra.mxu0 %v11766_v60 }
 0x7da   :  { %9436 = vmatprep.subr.bf16.mxu0 %v11782_v25 }
 0x7dd   :  { %9438 = vmatpush3.bf16.msra.mxu0 %v11782_v25 }
 0x7de   :  { %9440 = vmatprep.subr.bf16.mxu0 %v11795_v52 }
 0x7e1   :  { %9442 = vmatpush3.bf16.msra.mxu0 %v11795_v52 }
 0x7e2   :  { %9444 = vmatprep.subr.bf16.mxu0 %v11809_v24 }
 0x7e5   :  { %9446 = vmatpush3.bf16.msra.mxu0 %v11809_v24 }
 0x7e6   :  { %9448 = vmatprep.subr.bf16.mxu0 %v11840_v41 }
 0x7e9   :  { %9450 = vmatpush3.bf16.msra.mxu0 %v11840_v41 }
 0x7ea   :  { %9452 = vmatprep.subr.bf16.mxu0 %v9451_v4 }
 0x7ec   :  { %7985 = vmatmul.mubr.f32.vlgmr.msra.gmra.mrb[2].mxu0 %v4414_v46  ;;  %v5014_v46 = vld [vmem:[#allocation9 + $0x2a0] sm:$0xff] }
 0x7ed   :  { %9454 = vmatpush3.bf16.msra.mxu0 %v9451_v4  ;;  %8019 = vmatprep.mubr.f32.mxu0 %v11737_v0  ;;  %v5039_v16 = vand.u32 4294901760, %v5014_v46 }
 0x7ee   :  { %9456 = vmatprep.subr.bf16.mxu0 %v9455_v6 }
 0x7f1   :  { %9458 = vmatpush3.bf16.msra.mxu0 %v9455_v6  ;;  %v5144_v6 = vand.u32 4294901760, %v12080_v3 }
 0x7f2   :  { %9460 = vmatprep.subr.bf16.mxu0 %v9459_v31 }
 0x7f5   :  { %9462 = vmatpush3.bf16.msra.mxu0 %v9459_v31  ;;  %v5151_v31 = vand.u32 4294901760, %v12082_v53 }
 0x7f6   :  { %9464 = vmatprep.subr.bf16.mxu0 %v9463_v39 }
 0x7f9   :  { %9466 = vmatpush3.bf16.msra.mxu0 %v9463_v39  ;;  %v12105_v39 = vsub.f32 %v5014_v46, %v5039_v16 }
 0x7fa   :  { %9468 = vmatprep.subr.bf16.mxu0 %v9467_v8 }
 0x7fb   :  { %v5158_v23 = vand.u32 4294901760, %v12105_v39 }
 0x7fd   :  { %9470 = vmatpush3.bf16.msra.mxu0 %v9467_v8 }
 0x7fe   :  { %9472 = vmatprep.subr.bf16.mxu0 %v9471_v35 }
 0x801   :  { %9474 = vmatpush3.bf16.msra.mxu0 %v9471_v35  ;;  %v12109_v35 = vsub.f32 %v5016_v17, %v5045_v7  ;;  %v5159_v17 = vsub.f32 %v12105_v39, %v5158_v23 }
 0x802   :  { %9476 = vmatprep.subr.bf16.mxu0 %v9475_v49 }
 0x803   :  { %v5172_v40 = vand.u32 4294901760, %v12109_v35 }
 0x805   :  { %9478 = vmatpush3.bf16.msra.mxu0 %v9475_v49 }
 0x806   :  { %9480 = vmatprep.subr.bf16.mxu0 %v9479_v56 }
 0x809   :  { %9482 = vmatpush3.bf16.msra.mxu0 %v9479_v56  ;;  %v12118_v56 = vpack.c.bf16 %v5072_v48, %v5069_v54 }
 0x80a   :  { %9484 = vmatprep.subr.bf16.mxu0 %v11750_v29 }
 0x80c   :  { %8020 = vmatmul.mubr.f32.vlgmr.msra.gmra.mrb[2].mxu0 %v11789_v44 }
 0x80d   :  { %9486 = vmatpush3.bf16.msra.mxu0 %v11750_v29  ;;  %8054 = vmatprep.mubr.f32.mxu0 %v11737_v0  ;;  %v5010_v0 = vld [vmem:[#allocation9 + $0x280] sm:$0xff]  ;;  %v5011_v29 = vld [vmem:[#allocation9 + $0x288] sm:$0xff] }
 0x80e   :  { %9488 = vmatprep.subr.bf16.mxu0 %v11757_v20  ;;  %v5030_v50 = vand.u32 4294901760, %v5011_v29 }
 0x810   :  { %v12059_v43 = vsub.f32 %v5011_v29, %v5030_v50 }
 0x811   :  { %9490 = vmatpush3.bf16.msra.mxu0 %v11757_v20  ;;  %v12023_v20 = vsub.f32 %v5007_v21, %v12018_v38  ;;  %v5119_v21 = vand.u32 4294901760, %v12091_v5 }
 0x812   :  { %9492 = vmatprep.subr.bf16.mxu0 %v11762_v61  ;;  %v5137_v33 = vand.u32 4294901760, %v12059_v43 }
 0x814   :  { %v5138_v4 = vsub.f32 %v12059_v43, %v5137_v33 }
 0x815   :  { %9494 = vmatpush3.bf16.msra.mxu0 %v11762_v61  ;;  %v5027_v61 = vand.u32 4294901760, %v5010_v0 }
 0x816   :  { %9496 = vmatprep.subr.bf16.mxu0 %v11766_v60  ;;  %v5139_v29 = vand.u32 4294901760, %v5138_v4  ;;  %v5160_v4 = vand.u32 4294901760, %v5159_v17 }
 0x817   :  { %v12057_v62 = vsub.f32 %v5010_v0, %v5027_v61 }
 0x819   :  { %9498 = vmatpush3.bf16.msra.mxu0 %v11766_v60  ;;  %v5109_v60 = vand.u32 4294901760, %v12023_v20  ;;  %v5130_v57 = vand.u32 4294901760, %v12057_v62 }
 0x81a   :  { %9500 = vmatprep.subr.bf16.mxu0 %v11782_v25 }
 0x81b   :  { %v5131_v11 = vsub.f32 %v12057_v62, %v5130_v57 }
 0x81d   :  { %9502 = vmatpush3.bf16.msra.mxu0 %v11782_v25  ;;  %v12030_v25 = vpack.c.bf16 %v5030_v50, %v5027_v61  ;;  %v5132_v0 = vand.u32 4294901760, %v5131_v11  ;;  %v5145_v61 = vsub.f32 %v12080_v3, %v5144_v6  ;;  %v5152_v50 = vsub.f32 %v12082_v53, %v5151_v31 }
 0x81e   :  { %9504 = vmatprep.subr.bf16.mxu0 %v11795_v52 }
 0x81f   :  { %v9547_v46 = vpack.c.bf16 %v5139_v29, %v5132_v0 }
 0x821   :  { %9506 = vmatpush3.bf16.msra.mxu0 %v11795_v52  ;;  %v5110_v52 = vsub.f32 %v12023_v20, %v5109_v60 }
 0x822   :  { %9508 = vmatprep.subr.bf16.mxu0 %v11809_v24 }
 0x823   :  { %v5111_v27 = vand.u32 4294901760, %v5110_v52  ;;  %v5120_v52 = vsub.f32 %v12091_v5, %v5119_v21 }
 0x825   :  { %9510 = vmatpush3.bf16.msra.mxu0 %v11809_v24  ;;  %v5042_v24 = vand.u32 4294901760, %v5015_v2  ;;  %v5121_v10 = vand.u32 4294901760, %v5120_v52  ;;  %v12174_v52 = vsub.f32 %v12053_v15, %v5063_v47 }
 0x826   :  { %9512 = vmatprep.subr.bf16.mxu0 %v11840_v41 }
 0x827   :  { %v12042_v14 = vpack.c.bf16 %v5042_v24, %v5039_v16  ;;  %v12107_v8 = vsub.f32 %v5015_v2, %v5042_v24  ;;  %v12136_v2 = vsub.f32 %v5018_v59, %v5051_v55  ;;  %v12138_v16 = vsub.f32 %v5019_v34, %v5054_v1 }
 0x828   :  { %v5146_v24 = vand.u32 4294901760, %v5145_v61  ;;  %v12160_v1 = vsub.f32 %v12050_v22, %v5060_v18  ;;  %v5214_v15 = vand.u32 4294901760, %v12174_v52 }
 0x829   :  { %9514 = vmatpush3.bf16.msra.mxu0 %v11840_v41  ;;  %v5048_v41 = vand.u32 4294901760, %v5017_v26  ;;  %v5165_v13 = vand.u32 4294901760, %v12107_v8  ;;  %v5186_v59 = vand.u32 4294901760, %v12136_v2  ;;  %v5193_v34 = vand.u32 4294901760, %v12138_v16 }
 0x82a   :  { %9516 = vmatprep.subr.bf16.mxu0 %v12030_v25 }
 0x82b   :  { %v12046_v9 = vpack.c.bf16 %v5048_v41, %v5045_v7  ;;  %v12111_v49 = vsub.f32 %v5017_v26, %v5048_v41  ;;  %v5166_v26 = vsub.f32 %v12107_v8, %v5165_v13  ;;  %v5173_v7 = vsub.f32 %v12109_v35, %v5172_v40 }
 0x82c   :  { %8055 = vmatmul.mubr.f32.vlgmr.msra.gmra.mrb[2].mxu0 %v11789_v44  ;;  %v12048_v44 = vld [vmem:[#allocation9 + $0x2d0] sm:$0xff] }
 0x82d   :  { %9518 = vmatpush3.bf16.msra.mxu0 %v12030_v25  ;;  %8089 = vmatprep.mubr.f32.mxu0 %v5111_v27  ;;  %v5057_v42 = vand.u32 4294901760, %v12048_v44  ;;  %v5179_v63 = vand.u32 4294901760, %v12111_v49  ;;  %v5153_v27 = vand.u32 4294901760, %v5152_v50  ;;  %v5167_v0 = vand.u32 4294901760, %v5166_v26 }
 0x82e   :  { %9520 = vmatprep.subr.bf16.mxu0 %v12037_v28  ;;  %v5174_v29 = vand.u32 4294901760, %v5173_v7  ;;  %v5187_v50 = vsub.f32 %v12136_v2, %v5186_v59 }
 0x82f   :  { %v12074_v36 = vpack.c.bf16 %v5060_v18, %v5057_v42  ;;  %v5180_v41 = vsub.f32 %v12111_v49, %v5179_v63  ;;  %v12157_v55 = vsub.f32 %v12048_v44, %v5057_v42  ;;  %v9551_v11 = vpack.c.bf16 %v5153_v27, %v5146_v24 }
 0x830   :  { %v5194_v44 = vsub.f32 %v12138_v16, %v5193_v34  ;;  %v5207_v42 = vand.u32 4294901760, %v12160_v1  ;;  %v9555_v18 = vpack.c.bf16 %v5167_v0, %v5160_v4  ;;  %v5188_v27 = vand.u32 4294901760, %v5187_v50 }
 0x831   :  { %9522 = vmatpush3.bf16.msra.mxu0 %v12037_v28  ;;  %v5181_v61 = vand.u32 4294901760, %v5180_v41  ;;  %v5200_v22 = vand.u32 4294901760, %v12157_v55  ;;  %v5215_v4 = vsub.f32 %v12174_v52, %v5214_v15 }
 0x832   :  { %9524 = vmatprep.subr.bf16.mxu0 %v12042_v14  ;;  %v5195_v17 = vand.u32 4294901760, %v5194_v44  ;;  %v5208_v7 = vsub.f32 %v12160_v1, %v5207_v42 }
 0x833   :  { %v9559_v24 = vpack.c.bf16 %v5181_v61, %v5174_v29  ;;  %v5201_v26 = vsub.f32 %v12157_v55, %v5200_v22 }
 0x834   :  { %v9563_v41 = vpack.c.bf16 %v5195_v17, %v5188_v27  ;;  %v9579_v17 = vpack.c.bf16 %v12059_v43, %v12057_v62  ;;  %v9651_v62 = vpack.c.bf16 %v5165_v13, %v5158_v23  ;;  %v9655_v43 = vpack.c.bf16 %v5179_v63, %v5172_v40 }
 0x835   :  { %9526 = vmatpush3.bf16.msra.mxu0 %v12042_v14 }
 0x836   :  { %9528 = vmatprep.subr.bf16.mxu0 %v12046_v9 }
 0x839   :  { %9530 = vmatpush3.bf16.msra.mxu0 %v12046_v9 }
 0x83a   :  { %9532 = vmatprep.subr.bf16.mxu0 %v12062_v45 }
 0x83d   :  { %9534 = vmatpush3.bf16.msra.mxu0 %v12062_v45 }
 0x83e   :  { %9536 = vmatprep.subr.bf16.mxu0 %v12074_v36 }
 0x841   :  { %9538 = vmatpush3.bf16.msra.mxu0 %v12074_v36 }
 0x842   :  { %9540 = vmatprep.subr.bf16.mxu0 %v12088_v19 }
 0x845   :  { %9542 = vmatpush3.bf16.msra.mxu0 %v12088_v19 }
 0x846   :  { %9544 = vmatprep.subr.bf16.mxu0 %v12118_v56 }
 0x849   :  { %9546 = vmatpush3.bf16.msra.mxu0 %v12118_v56 }
 0x84a   :  { %9548 = vmatprep.subr.bf16.mxu0 %v9547_v46 }
 0x84c   :  { %8090 = vmatmul.mubr.f32.vlgmr.msra.gmra.mrb[2].mxu0 %v5121_v10  ;;  %v5202_v10 = vand.u32 4294901760, %v5201_v26  ;;  %v9583_v26 = vpack.c.bf16 %v12082_v53, %v12080_v3 }
 0x84d   :  { %9550 = vmatpush3.bf16.msra.mxu0 %v9547_v46  ;;  %8124 = vmatprep.mubr.f32.mxu0 %v12018_v38  ;;  %v12179_v46 = vsub.f32 %v12055_v32, %v5066_v37  ;;  %v12192_v32 = vsub.f32 %v12076_v30, %v5069_v54  ;;  %v12197_v37 = vsub.f32 %v12078_v12, %v5072_v48  ;;  %v5216_v48 = vand.u32 4294901760, %v5215_v4 }
 0x84e   :  { %9552 = vmatprep.subr.bf16.mxu0 %v9551_v11 }
 0x84f   :  { %v5221_v47 = vand.u32 4294901760, %v12179_v46  ;;  %v5228_v30 = vand.u32 4294901760, %v12192_v32  ;;  %v5235_v54 = vand.u32 4294901760, %v12197_v37  ;;  %v9603_v4 = vpack.c.bf16 %v12179_v46, %v12174_v52 }
 0x851   :  { %9554 = vmatpush3.bf16.msra.mxu0 %v9551_v11  ;;  %v5209_v11 = vand.u32 4294901760, %v5208_v7  ;;  %v5222_v0 = vsub.f32 %v12179_v46, %v5221_v47  ;;  %v5229_v61 = vsub.f32 %v12192_v32, %v5228_v30  ;;  %v5236_v50 = vsub.f32 %v12197_v37, %v5235_v54 }
 0x852   :  { %9556 = vmatprep.subr.bf16.mxu0 %v9555_v18  ;;  %v9587_v7 = vpack.c.bf16 %v12107_v8, %v12105_v39  ;;  %v9667_v3 = vpack.c.bf16 %v5221_v47, %v5214_v15  ;;  %v9671_v53 = vpack.c.bf16 %v5235_v54, %v5228_v30 }
 0x853   :  { %v9567_v12 = vpack.c.bf16 %v5209_v11, %v5202_v10  ;;  %v5223_v29 = vand.u32 4294901760, %v5222_v0  ;;  %v5237_v27 = vand.u32 4294901760, %v5236_v50  ;;  %v9595_v10 = vpack.c.bf16 %v12138_v16, %v12136_v2 }
 0x854   :  { %v9599_v11 = vpack.c.bf16 %v12160_v1, %v12157_v55  ;;  %v9607_v0 = vpack.c.bf16 %v12197_v37, %v12192_v32 }
 0x855   :  { %9558 = vmatpush3.bf16.msra.mxu0 %v9555_v18  ;;  %v9571_v44 = vpack.c.bf16 %v5223_v29, %v5216_v48  ;;  %v5230_v18 = vand.u32 4294901760, %v5229_v61 }
 0x856   :  { %9560 = vmatprep.subr.bf16.mxu0 %v9559_v24 }
 0x859   :  { %9562 = vmatpush3.bf16.msra.mxu0 %v9559_v24  ;;  %v9575_v24 = vpack.c.bf16 %v5237_v27, %v5230_v18 }
 0x85a   :  { %9564 = vmatprep.subr.bf16.mxu0 %v9563_v41 }
 0x85d   :  { %9566 = vmatpush3.bf16.msra.mxu0 %v9563_v41  ;;  %v9591_v41 = vpack.c.bf16 %v12111_v49, %v12109_v35 }
 0x85e   :  { %9568 = vmatprep.subr.bf16.mxu0 %v9567_v12 }
 0x861   :  { %9570 = vmatpush3.bf16.msra.mxu0 %v9567_v12 }
 0x862   :  { %9572 = vmatprep.subr.bf16.mxu0 %v9571_v44 }
 0x865   :  { %9574 = vmatpush3.bf16.msra.mxu0 %v9571_v44 }
 0x866   :  { %9576 = vmatprep.subr.bf16.mxu0 %v9575_v24 }
 0x869   :  { %9578 = vmatpush3.bf16.msra.mxu0 %v9575_v24 }
 0x86a   :  { %9580 = vmatprep.subr.bf16.mxu0 %v9579_v17 }
 0x86c   :  { %8125 = vmatmul.mubr.f32.vlgmr.msra.gmra.mrb[2].mxu0 %v12068_v58 }
 0x86d   :  { %9582 = vmatpush3.bf16.msra.mxu0 %v9579_v17  ;;  %8159 = vmatprep.mubr.f32.mxu0 %v12023_v20  ;;  %v9643_v20 = vpack.c.bf16 %v5137_v33, %v5130_v57  ;;  %v9659_v57 = vpack.c.bf16 %v5193_v34, %v5186_v59  ;;  %v9663_v33 = vpack.c.bf16 %v5207_v42, %v5200_v22 }
 0x86e   :  { %9584 = vmatprep.subr.bf16.mxu0 %v9583_v26 }
 0x871   :  { %9586 = vmatpush3.bf16.msra.mxu0 %v9583_v26 }
 0x872   :  { %9588 = vmatprep.subr.bf16.mxu0 %v9587_v7 }
 0x875   :  { %9590 = vmatpush3.bf16.msra.mxu0 %v9587_v7 }
 0x876   :  { %9592 = vmatprep.subr.bf16.mxu0 %v9591_v41 }
 0x879   :  { %9594 = vmatpush3.bf16.msra.mxu0 %v9591_v41 }
 0x87a   :  { %9596 = vmatprep.subr.bf16.mxu0 %v9595_v10 }
 0x87d   :  { %9598 = vmatpush3.bf16.msra.mxu0 %v9595_v10 }
 0x87e   :  { %9600 = vmatprep.subr.bf16.mxu0 %v9599_v11 }
 0x881   :  { %9602 = vmatpush3.bf16.msra.mxu0 %v9599_v11 }
 0x882   :  { %9604 = vmatprep.subr.bf16.mxu0 %v9603_v4 }
 0x885   :  { %9606 = vmatpush3.bf16.msra.mxu0 %v9603_v4 }
 0x886   :  { %9608 = vmatprep.subr.bf16.mxu0 %v9607_v0 }
 0x889   :  { %9610 = vmatpush3.bf16.msra.mxu0 %v9607_v0 }
 0x88a   :  { %9612 = vmatprep.subr.bf16.mxu0 %v12030_v25 }
 0x88c   :  { %8160 = vmatmul.mubr.f32.vlgmr.msra.gmra.mrb[2].mxu0 %v12091_v5  ;;  %v9815_v5 = vld [vmem:[#allocation3 + $0x8] sm:$0xff] }
 0x88d   :  { %9614 = vmatpush3.bf16.msra.mxu0 %v12030_v25  ;;  %8194 = vmatprep.mubr.f32.mxu0 %v5109_v60  ;;  %v9647_v60 = vpack.c.bf16 %v5151_v31, %v5144_v6  ;;  %v9816_v31 = vld [vmem:[#allocation3] sm:$0xff] }
 0x88e   :  { %9616 = vmatprep.subr.bf16.mxu0 %v12037_v28 }
 0x891   :  { %9618 = vmatpush3.bf16.msra.mxu0 %v12037_v28 }
 0x892   :  { %9620 = vmatprep.subr.bf16.mxu0 %v12042_v14 }
 0x895   :  { %9622 = vmatpush3.bf16.msra.mxu0 %v12042_v14 }
 0x896   :  { %9624 = vmatprep.subr.bf16.mxu0 %v12046_v9 }
 0x899   :  { %9626 = vmatpush3.bf16.msra.mxu0 %v12046_v9 }
 0x89a   :  { %9628 = vmatprep.subr.bf16.mxu0 %v12062_v45 }
 0x89d   :  { %9630 = vmatpush3.bf16.msra.mxu0 %v12062_v45 }
 0x89e   :  { %9632 = vmatprep.subr.bf16.mxu0 %v12074_v36 }
 0x8a1   :  { %9634 = vmatpush3.bf16.msra.mxu0 %v12074_v36 }
 0x8a2   :  { %9636 = vmatprep.subr.bf16.mxu0 %v12088_v19 }
 0x8a5   :  { %9638 = vmatpush3.bf16.msra.mxu0 %v12088_v19 }
 0x8a6   :  { %9640 = vmatprep.subr.bf16.mxu0 %v12118_v56 }
 0x8a9   :  { %9642 = vmatpush3.bf16.msra.mxu0 %v12118_v56 }
 0x8aa   :  { %9644 = vmatprep.subr.bf16.mxu0 %v9643_v20 }
 0x8ac   :  { %8195 = vmatmul.mubr.f32.vlgmr.msra.gmra.mrb[2].mxu0 %v5119_v21 }
 0x8ad   :  { %9646 = vmatpush3.bf16.msra.mxu0 %v9643_v20  ;;  %8229 = vmatprep.mubr.f32.mxu0 %v12018_v38 }
 0x8ae   :  { %9648 = vmatprep.subr.bf16.mxu0 %v9647_v60 }
 0x8b1   :  { %9650 = vmatpush3.bf16.msra.mxu0 %v9647_v60 }
 0x8b2   :  { %9652 = vmatprep.subr.bf16.mxu0 %v9651_v62 }
 0x8b5   :  { %9654 = vmatpush3.bf16.msra.mxu0 %v9651_v62 }
 0x8b6   :  { %9656 = vmatprep.subr.bf16.mxu0 %v9655_v43 }
 0x8b9   :  { %9658 = vmatpush3.bf16.msra.mxu0 %v9655_v43 }
 0x8ba   :  { %9660 = vmatprep.subr.bf16.mxu0 %v9659_v57 }
 0x8bd   :  { %9662 = vmatpush3.bf16.msra.mxu0 %v9659_v57 }
 0x8be   :  { %9664 = vmatprep.subr.bf16.mxu0 %v9663_v33 }
 0x8c1   :  { %9666 = vmatpush3.bf16.msra.mxu0 %v9663_v33 }
 0x8c2   :  { %9668 = vmatprep.subr.bf16.mxu0 %v9667_v3 }
 0x8c5   :  { %9670 = vmatpush3.bf16.msra.mxu0 %v9667_v3 }
 0x8c6   :  { %9672 = vmatprep.subr.bf16.mxu0 %v9671_v53 }
 0x8c9   :  { %9674 = vmatpush3.bf16.msra.mxu0 %v9671_v53 }
 0x8ca   :  { %9676 = vmatprep.subr.bf16.mxu0 %v12030_v25 }
 0x8cc   :  { %8230 = vmatmul.mubr.f32.vlgmr.msra.gmra.mrb[2].mxu0 %v12068_v58 }
 0x8cd   :  { %9678 = vmatpush3.bf16.msra.mxu0 %v12030_v25  ;;  %8264 = vmatprep.mubr.f32.mxu0 %v12018_v38  ;;  %v4298_v38 = vsub.s32 5, %v10600_v51  ;;  %v9814_v25 = vld [vmem:[#allocation8] sm:$0xff] }
 0x8ce   :  { %9680 = vmatprep.subr.bf16.mxu0 %v12037_v28 }
 0x8d1   :  { %9682 = vmatpush3.bf16.msra.mxu0 %v12037_v28  ;;  %v4299_v28 = vrot.slane %v9814_v25, %v4298_v38 }
 0x8d2   :  { %9684 = vmatprep.subr.bf16.mxu0 %v12042_v14 }
 0x8d5   :  { %9686 = vmatpush3.bf16.msra.mxu0 %v12042_v14 }
 0x8d6   :  { %9688 = vmatprep.subr.bf16.mxu0 %v12046_v9 }
 0x8d9   :  { %9690 = vmatpush3.bf16.msra.mxu0 %v12046_v9 }
 0x8da   :  { %9692 = vmatprep.subr.bf16.mxu0 %v12062_v45 }
 0x8dd   :  { %9694 = vmatpush3.bf16.msra.mxu0 %v12062_v45 }
 0x8de   :  { %9696 = vmatprep.subr.bf16.mxu0 %v12074_v36 }
 0x8e1   :  { %9698 = vmatpush3.bf16.msra.mxu0 %v12074_v36 }
 0x8e2   :  { %9700 = vmatprep.subr.bf16.mxu0 %v12088_v19 }
 0x8e5   :  { %9702 = vmatpush3.bf16.msra.mxu0 %v12088_v19 }
 0x8e6   :  { %9704 = vmatprep.subr.bf16.mxu0 %v12118_v56 }
 0x8e9   :  { %9706 = vmatpush3.bf16.msra.mxu0 %v12118_v56 }
 0x8ec   :  { %8265 = vmatmul.mubr.f32.vlgmr.msra.gmra.mrb[2].mxu0 %v12068_v58 }
 0x9bf   :  { %v8266_v14 = vpop.f32.mrb[2].mxu0 }
 0x9c0   :  { %v9709_v9 = vadd.f32 %v8266_v14, %v4299_v28  ;;  %v5700_v45 = vpop.f32.mrb[3].mxu0 }
 0x9c1   :  { %v9710_v36 = vadd.f32 %v5700_v45, %v4299_v28 }
 0x9c2   :  { %v5713_v6 = vadd.f32 %v9815_v5, %v9709_v9 }
 0x9c3   :  { %v5712_v19 = vadd.f32 %v9816_v31, %v9710_v36 }
 0x9c4   :  { %5715 = vst [vmem:[#allocation11 + $0x8] sm:$0xff] %v5713_v6 }
 0x9c5   :  { %5714 = vst [vmem:[#allocation11] sm:$0xff] %v5712_v19 }
 0x9c6   :  { %9916 = shalt.err (!%p9913_p8)
}
 0x9c7   :  { %s9917_s15 = scalar_lea.hbm %s12324_s4, 256 }
 0x9c8   :  { %p9918_p9 = scmp.ne.s32.totalorder %s12324_s4, %s9917_s15  ;;  %p9921_p10 = scmp.lt.u32.totalorder %s9917_s15, %s12324_s4 }
 0x9ca   :  { %p9923_p11 = pnand %p9921_p10, %p9918_p9 }
 0x9cc   :  { %9926 = shalt.err (!%p9923_p11)
}
 0x9cd   :  { %5727 = dma.vmem_to_hbm [thread:$0]  %s5722_s12, 256, %s12324_s4, [#allocation5], %s9937_s27, %s9937_s27, %s9938_s28  }
 0x9ce   :  { %9933 = dma.done.wait [#allocation5], 256  }
 0x9cf   :  { %9934 = vsyncadd [#allocation5], 4294967040 }
 0x9d0   :  { %5731 = vsyncpa [#allocation4], 1 }
 0x9d1   :  { %5732 = vsyncpa [#allocation7], 1 }
 0x9d2   :  { %5733 = vsyncpa [#allocation10], 1 }
 0x9d3   :  { %5734 = vsyncpa [#allocation5], 1 }

</bundles_post_ra>
